<compile_context>
chip_gen: v5e
topology: v5e:2x2
jax: 0.10.0
libtpu: 0.0.40
codegen_flags: <defaults>
</compile_context>

<pallas_src>
import functools

import jax
import jax.numpy as jnp
from jax.experimental import pallas as pl
from jax.experimental.pallas import tpu as pltpu


def _round_up(x, m):
    return ((x + m - 1) // m) * m


def _shift_zfill(x, off, axis):
    """y[..., i, ...] = x[..., i + off, ...], zero-filled at the array edges.

    Lowers to cheap vreg shift/select ops (sublane shift for axis 0, lane shift
    for axis 1); used for the depthwise-conv window taps.
    """
    if off == 0:
        return x
    size = x.shape[axis]
    if abs(off) >= size:
        return jnp.zeros_like(x)
    if axis == 0:
        zeros = jnp.zeros((abs(off), x.shape[1]), x.dtype)
        return (jnp.concatenate([x[off:, :], zeros], axis=0) if off > 0
                else jnp.concatenate([zeros, x[:off, :]], axis=0))
    zeros = jnp.zeros((x.shape[0], abs(off)), x.dtype)
    return (jnp.concatenate([x[:, off:], zeros], axis=1) if off > 0
            else jnp.concatenate([zeros, x[:, :off]], axis=1))


# ----------------------------------------------------------------------------
# Fused stage kernel
# ----------------------------------------------------------------------------
def _stage_kernel(*refs, n, h, w, c, k, nblocks, conv_relu, final):
    """Strided-conv prologue -> `nblocks` MobileNet blocks -> downstream-BN
    post-affine [-> global-avg-pool -> linear], whole batch, one invocation.

    Activation lives in registers as (N*H, W*C) f32 (lane-dense, W*C = 256).
    """
    wc, nh, pad, kk = w * c, n * h, k // 2, k * k

    it = iter(refs)
    patches_ref, cw_ref, cs_ref, cb_ref = next(it), next(it), next(it), next(it)
    if nblocks:
        hmask_ref, dw_ref, bna_ref, pw_ref, bnbs_ref, bnbb_ref = (
            next(it), next(it), next(it), next(it), next(it), next(it))
    ps_ref, pb_ref = next(it), next(it)
    if final:
        lw_ref, lb_ref = next(it), next(it)
    o_ref = next(it)

    # ---- strided-conv prologue on the MXU. Block-diagonal weight => output is
    # already in the lane-dense (N*H, W*C) layout; fused affine (+ ReLU). ------
    act = jnp.dot(patches_ref[...], cw_ref[...],
                  preferred_element_type=jnp.float32)
    act = act * cs_ref[...] + cb_ref[...]
    if conv_relu:
        act = jnp.maximum(act, 0.0)

    # ---- all MobileNet blocks of this layer, activation stays resident -------
    for b in range(nblocks):
        # depthwise k x k 'same' conv: unrolled zero-fill shifts + f32 MAC.
        # BN_a scale & W-boundary mask are pre-folded into dw_ref rows; the
        # H/image-boundary mask is hmask_ref.
        acc = jnp.zeros((nh, wc), jnp.float32)
        for di in range(k):
            oi = di - pad
            if abs(oi) >= h:
                continue
            rows = _shift_zfill(act, oi, axis=0) * hmask_ref[:, di:di + 1]
            for dj in range(k):
                oj = dj - pad
                if abs(oj) >= w:
                    continue
                t = b * kk + di * k + dj
                acc = acc + _shift_zfill(rows, oj * c, axis=1) * dw_ref[t:t + 1, :]
        y = jnp.maximum(acc + bna_ref[b:b + 1, :], 0.0)        # BN_a bias + ReLU
        # 1x1 conv as a block-diagonal (W*C, W*C) MXU matmul: keeps the layout
        # and fills the MXU's K/N dims; bf16 inputs, f32 accumulation.
        z = jnp.dot(y.astype(jnp.bfloat16), pw_ref[b * wc:(b + 1) * wc, :],
                    preferred_element_type=jnp.float32)
        act = jnp.maximum(z * bnbs_ref[b:b + 1, :] + bnbb_ref[b:b + 1, :], 0.0)

    act = act * ps_ref[...] + pb_ref[...]          # downstream BN (or identity)

    if final:
        # global average pool + classifier; class dim padded to 128 lanes so the
        # final store is unmasked (caller slices back to num_classes).
        pooled = []
        for i in range(n):
            img = act[i * h:(i + 1) * h, :]
            s = img[:, 0:c]
            for wj in range(1, w):
                s = s + img[:, wj * c:(wj + 1) * c]
            pooled.append(jnp.sum(s, axis=0, keepdims=True))
        pooled = jnp.concatenate(pooled, axis=0) * (1.0 / (h * w))     # (N, C)
        o_ref[...] = jnp.dot(pooled.astype(jnp.bfloat16), lw_ref[...],
                             preferred_element_type=jnp.float32) + lb_ref[...]
    else:
        o_ref[...] = act.astype(o_ref.dtype)


# ----------------------------------------------------------------------------
# Host-side packing (weight folding, layouts) and the stage wrapper
# ----------------------------------------------------------------------------
def _pack_blocks(blocks, *, w, c, k):
    """Stack per-block params: fold BN_a scale + W-boundary mask into the DW tap
    weights, tile per-channel vectors over W to match the (W*C) lane layout, and
    build block-diagonal 1x1-conv weights."""
    pad, kk = k // 2, k * k
    eye_w = jnp.eye(w, dtype=jnp.float32)
    wpos = jnp.arange(w)
    dw_rows, bna, pwbd, bnbs, bnbb = [], [], [], [], []
    for blk in blocks:
        dwk = blk["dw_w"].reshape(c, kk)                     # (C, k*k)
        for di in range(k):
            for dj in range(k):
                base = dwk[:, di * k + dj] * blk["bn_a_s"]   # (C,)
                wmask = ((wpos + (dj - pad) >= 0) &
                         (wpos + (dj - pad) < w)).astype(jnp.float32)
                dw_rows.append(jnp.tile(base, w) * jnp.repeat(wmask, c))
        bna.append(jnp.tile(blk["bn_a_b"], w))
        pwbd.append(jnp.kron(eye_w, blk["pw_w"].reshape(c, c).T))
        bnbs.append(jnp.tile(blk["bn_b_s"], w))
        bnbb.append(jnp.tile(blk["bn_b_b"], w))
    return (jnp.stack(dw_rows, 0),                                   # (B*k*k, W*C) f32
            jnp.stack(bna, 0),                                       # (B, W*C)     f32
            jnp.concatenate(pwbd, 0).astype(jnp.bfloat16),           # (B*W*C, W*C) bf16
            jnp.stack(bnbs, 0),                                      # (B, W*C)     f32
            jnp.stack(bnbb, 0))                                      # (B, W*C)     f32


def _conv_weight_blockdiag(w_oihw, wo):
    """(Cout, Cin, k, k) torch conv weight -> kron(I_wo, (k*k*Cin, Cout)) bf16."""
    cout, cin, k, _ = w_oihw.shape
    w2 = jnp.transpose(w_oihw, (2, 3, 1, 0)).reshape(k * k * cin, cout)
    return jnp.kron(jnp.eye(wo, dtype=jnp.float32), w2).astype(jnp.bfloat16)


def _im2col(x, k, stride, pad):
    """NHWC -> patches laid out (N*Ho, Wo*k*k*Cin) for the block-diag conv."""
    n, h, w, cin = x.shape
    xp = jnp.pad(x, ((0, 0), (pad, pad), (pad, pad), (0, 0)))
    ho = (h + 2 * pad - k) // stride + 1
    wo = (w + 2 * pad - k) // stride + 1
    cols = [xp[:, i:i + stride * ho:stride, j:j + stride * wo:stride, :]
            for i in range(k) for j in range(k)]
    patches = jnp.stack(cols, axis=3)                # (N, Ho, Wo, k*k, Cin)
    return patches.reshape(n * ho, wo * k * k * cin), ho, wo


def stage(patches, conv_w_bd, conv_s, conv_b, blocks, post_s, post_b, *,
          n, h, w, c, k, conv_relu, final=False, lin_w=None, lin_b=None):
    """One fused stage = a single grid-less pallas_call over the whole batch."""
    wc, nh = w * c, n * h
    patches = patches.astype(jnp.bfloat16)
    kdim = patches.shape[1]
    kp = _round_up(kdim, 128)                        # keep the MXU K dim lane-aligned
    if kp != kdim:
        patches = jnp.pad(patches, ((0, 0), (0, kp - kdim)))
        conv_w_bd = jnp.pad(conv_w_bd, ((0, kp - kdim), (0, 0)))

    ins = [patches, conv_w_bd,
           conv_s.reshape(1, wc).astype(jnp.float32),
           conv_b.reshape(1, wc).astype(jnp.float32)]
    nblocks = len(blocks)
    if nblocks:
        hh = jnp.arange(nh, dtype=jnp.int32) % h
        off = jnp.arange(k, dtype=jnp.int32) - k // 2
        hmask = ((hh[:, None] + off[None, :] >= 0) &
                 (hh[:, None] + off[None, :] < h)).astype(jnp.float32)   # (N*H, k)
        ins += [hmask, *_pack_blocks(blocks, w=w, c=c, k=k)]
    ins += [post_s.reshape(1, wc).astype(jnp.float32),
            post_b.reshape(1, wc).astype(jnp.float32)]
    if final:
        ins += [lin_w, lin_b]
        out_shape = jax.ShapeDtypeStruct((n, lin_w.shape[1]), jnp.float32)
    else:
        out_shape = jax.ShapeDtypeStruct((nh, wc), jnp.bfloat16)

    return pl.pallas_call(
        functools.partial(_stage_kernel, n=n, h=h, w=w, c=c, k=k,
                          nblocks=nblocks, conv_relu=conv_relu, final=final),
        out_shape=out_shape,
        # Whole arrays (a few hundred KB per stage) live in VMEM: far below the
        # 32 MiB scoped default and v7x's 64 MiB physical budget.
        compiler_params=pltpu.CompilerParams(vmem_limit_bytes=32 * 1024 * 1024),
    )(*ins)


# ----------------------------------------------------------------------------
# Parameters (PyTorch-equivalent init) and the forward pass
# ----------------------------------------------------------------------------
def _bn_scale_bias(c, eps=1e-5):
    gamma = jnp.ones((c,), jnp.float32)
    beta = jnp.zeros((c,), jnp.float32)
    mean = jnp.zeros((c,), jnp.float32)
    var = jnp.ones((c,), jnp.float32)
    s = gamma / jnp.sqrt(var + eps)
    return s, beta - mean * s


def _kaiming(key, shape, fan_out):
    return jax.random.normal(key, shape, jnp.float32) * jnp.sqrt(2.0 / fan_out)


def make_params(key, num_blocks, num_classes=10, image_channels=3):
    keys = iter(jax.random.split(key, 256))
    p = {}
    p["conv1_w"] = _kaiming(next(keys), (32, image_channels, 3, 3), 32 * 9)
    p["bn1_s"], p["bn1_b"] = _bn_scale_bias(32)

    def make_block(c, k):
        s_a, b_a = _bn_scale_bias(c)
        s_b, b_b = _bn_scale_bias(c)
        return {"dw_w": _kaiming(next(keys), (c, 1, k, k), c * k * k),
                "bn_a_s": s_a, "bn_a_b": b_a,
                "pw_w": _kaiming(next(keys), (c, c, 1, 1), c),
                "bn_b_s": s_b, "bn_b_b": b_b}

    p["layer1"] = [make_block(32, 3) for _ in range(num_blocks[0])]
    p["layer2"] = [make_block(64, 5) for _ in range(num_blocks[1])]
    p["layer3"] = [make_block(128, 5) for _ in range(num_blocks[2])]

    p["ds1_bn_s"], p["ds1_bn_b"] = _bn_scale_bias(32)
    p["ds1_w"] = _kaiming(next(keys), (64, 32, 3, 3), 64 * 9)
    p["ds2_bn_s"], p["ds2_bn_b"] = _bn_scale_bias(64)
    p["ds2_w"] = _kaiming(next(keys), (128, 64, 3, 3), 128 * 9)

    p["lin_w"] = (jax.random.normal(next(keys), (num_classes, 128), jnp.float32)
                  * 0.001).T                                   # (128, num_classes)
    p["lin_b"] = jnp.zeros((1, num_classes), jnp.float32)      # init.constant_(0)
    return p


def forward(params, x_nhwc):
    p = params
    n = x_nhwc.shape[0]
    num_classes = p["lin_w"].shape[1]
    ncp = _round_up(max(num_classes, 128), 128)

    # stage 1: conv1 + bn1 + relu + layer1 + downstream1.BN
    c1 = p["conv1_w"].shape[0]
    pat1, h1, w1 = _im2col(x_nhwc, 3, 2, 1)
    out1 = stage(pat1, _conv_weight_blockdiag(p["conv1_w"], w1),
                 jnp.tile(p["bn1_s"], w1), jnp.tile(p["bn1_b"], w1),
                 p["layer1"],
                 jnp.tile(p["ds1_bn_s"], w1), jnp.tile(p["ds1_bn_b"], w1),
                 n=n, h=h1, w=w1, c=c1, k=3, conv_relu=True)

    # stage 2: downstream1.conv + layer2 + downstream2.BN
    c2 = p["ds1_w"].shape[0]
    pat2, h2, w2 = _im2col(out1.reshape(n, h1, w1, c1), 3, 2, 1)
    out2 = stage(pat2, _conv_weight_blockdiag(p["ds1_w"], w2),
                 jnp.ones((w2 * c2,), jnp.float32), jnp.zeros((w2 * c2,), jnp.float32),
                 p["layer2"],
                 jnp.tile(p["ds2_bn_s"], w2), jnp.tile(p["ds2_bn_b"], w2),
                 n=n, h=h2, w=w2, c=c2, k=5, conv_relu=False)

    # stage 3: downstream2.conv + layer3 + global-avg-pool + linear
    c3 = p["ds2_w"].shape[0]
    pat3, h3, w3 = _im2col(out2.reshape(n, h2, w2, c2), 3, 2, 1)
    lin_w = jnp.pad(p["lin_w"], ((0, 0), (0, ncp - num_classes))).astype(jnp.bfloat16)
    lin_b = jnp.pad(p["lin_b"], ((0, 0), (0, ncp - num_classes)))
    logits = stage(pat3, _conv_weight_blockdiag(p["ds2_w"], w3),
                   jnp.ones((w3 * c3,), jnp.float32), jnp.zeros((w3 * c3,), jnp.float32),
                   p["layer3"],
                   jnp.ones((w3 * c3,), jnp.float32), jnp.zeros((w3 * c3,), jnp.float32),
                   n=n, h=h3, w=w3, c=c3, k=5, conv_relu=False,
                   final=True, lin_w=lin_w, lin_b=lin_b)
    return logits[:, :num_classes]


# ----------------------------------------------------------------------------
# Pure-JAX float32 reference (same BN-inference convention) for validation
# ----------------------------------------------------------------------------
def reference_forward(params, x):
    p = params
    hp = jax.lax.Precision.HIGHEST

    def conv(x, w, stride, pad, groups=1):
        return jax.lax.conv_general_dilated(
            x, jnp.transpose(w, (2, 3, 1, 0)), (stride, stride),
            ((pad, pad), (pad, pad)),
            dimension_numbers=("NHWC", "HWIO", "NHWC"),
            feature_group_count=groups, precision=hp)

    def block(x, blk, k):
        c = x.shape[-1]
        y = conv(x, blk["dw_w"], 1, k // 2, groups=c)
        y = jnp.maximum(y * blk["bn_a_s"] + blk["bn_a_b"], 0.0)
        z = conv(y, blk["pw_w"], 1, 0)
        return jnp.maximum(z * blk["bn_b_s"] + blk["bn_b_b"], 0.0)

    out = conv(x, p["conv1_w"], 2, 1)
    out = jnp.maximum(out * p["bn1_s"] + p["bn1_b"], 0.0)
    for blk in p["layer1"]:
        out = block(out, blk, 3)
    out = conv(out * p["ds1_bn_s"] + p["ds1_bn_b"], p["ds1_w"], 2, 1)
    for blk in p["layer2"]:
        out = block(out, blk, 5)
    out = conv(out * p["ds2_bn_s"] + p["ds2_bn_b"], p["ds2_w"], 2, 1)
    for blk in p["layer3"]:
        out = block(out, blk, 5)
    pooled = jnp.mean(out, axis=(1, 2))
    return jnp.dot(pooled, p["lin_w"], precision=hp) + p["lin_b"]


if __name__ == "__main__":
    key = jax.random.PRNGKey(0)
    kp, kx = jax.random.split(key)
    params = make_params(kp, num_blocks=(1, 1, 1), num_classes=10, image_channels=3)

    x_nchw = jax.random.normal(kx, (2, 3, 16, 16), jnp.float32)   # PyTorch NCHW input
    x_nhwc = jnp.transpose(x_nchw, (0, 2, 3, 1))

    logits = jax.jit(forward)(params, x_nhwc)
    jax.block_until_ready(logits)
    assert logits.shape == (2, 10) and logits.dtype == jnp.float32

    ref = jax.jit(reference_forward)(params, x_nhwc)
    err = float(jnp.max(jnp.abs(logits - ref)))
    scale = float(jnp.max(jnp.abs(ref)))
    assert err <= 2e-3 + 5e-2 * scale, f"numerics mismatch: err={err} ref_max={scale}"
    print("KERNEL_OK")
</pallas_src>

<mosaic_0001>
module attributes {stable_mosaic.version = 11 : i64} {
  func.func @_stage_kernel(%arg0: memref<16x256xbf16, #tpu.memory_space<vmem>>, %arg1: memref<256x256xbf16, #tpu.memory_space<vmem>>, %arg2: memref<1x256xf32, #tpu.memory_space<vmem>>, %arg3: memref<1x256xf32, #tpu.memory_space<vmem>>, %arg4: memref<16x3xf32, #tpu.memory_space<vmem>>, %arg5: memref<9x256xf32, #tpu.memory_space<vmem>>, %arg6: memref<1x256xf32, #tpu.memory_space<vmem>>, %arg7: memref<256x256xbf16, #tpu.memory_space<vmem>>, %arg8: memref<1x256xf32, #tpu.memory_space<vmem>>, %arg9: memref<1x256xf32, #tpu.memory_space<vmem>>, %arg10: memref<1x256xf32, #tpu.memory_space<vmem>>, %arg11: memref<1x256xf32, #tpu.memory_space<vmem>>, %arg12: memref<16x256xbf16, #tpu.memory_space<vmem>>) attributes {dimension_semantics = [], scalar_prefetch = 0 : i64, scratch_operands = 0 : i64, tpu.core_type = #tpu.core_type<tc>} {
    %c0 = arith.constant 0 : index
    %c0_0 = arith.constant 0 : index
    %0 = vector.load %arg0[%c0, %c0_0] : memref<16x256xbf16, #tpu.memory_space<vmem>>, vector<16x256xbf16>
    %c0_1 = arith.constant 0 : index
    %c0_2 = arith.constant 0 : index
    %1 = vector.load %arg1[%c0_1, %c0_2] : memref<256x256xbf16, #tpu.memory_space<vmem>>, vector<256x256xbf16>
    %cst = arith.constant dense<0.000000e+00> : vector<16x256xf32>
    %2 = tpu.matmul %0, %1, %cst {dimension_numbers = #tpu.dot_dimension_numbers<[1], [0], [0], [1], [0, 0, 1, 1], [], []>} : vector<16x256xbf16>, vector<256x256xbf16>, vector<16x256xf32> -> vector<16x256xf32>
    %c0_3 = arith.constant 0 : index
    %c0_4 = arith.constant 0 : index
    %3 = vector.load %arg2[%c0_3, %c0_4] : memref<1x256xf32, #tpu.memory_space<vmem>>, vector<1x256xf32>
    %4 = vector.broadcast %3 : vector<1x256xf32> to vector<16x256xf32>
    %5 = arith.mulf %2, %4 : vector<16x256xf32>
    %c0_5 = arith.constant 0 : index
    %c0_6 = arith.constant 0 : index
    %6 = vector.load %arg3[%c0_5, %c0_6] : memref<1x256xf32, #tpu.memory_space<vmem>>, vector<1x256xf32>
    %7 = vector.broadcast %6 : vector<1x256xf32> to vector<16x256xf32>
    %8 = arith.addf %5, %7 : vector<16x256xf32>
    %cst_7 = arith.constant 0.000000e+00 : f32
    %9 = vector.broadcast %cst_7 : f32 to vector<16x256xf32>
    %10 = arith.maximumf %8, %9 : vector<16x256xf32>
    %cst_8 = arith.constant 0.000000e+00 : f32
    %11 = vector.broadcast %cst_8 : f32 to vector<16x256xf32>
    %cst_9 = arith.constant 0.000000e+00 : f32
    %12 = vector.broadcast %cst_9 : f32 to vector<1x256xf32>
    %13 = vector.extract_strided_slice %10 {offsets = [0, 0], sizes = [15, 256], strides = [1, 1]} : vector<16x256xf32> to vector<15x256xf32>
    %14 = tpu.concatenate %12, %13 in 0 : vector<1x256xf32>, vector<15x256xf32> -> vector<16x256xf32>
    %c0_10 = arith.constant 0 : index
    %c0_11 = arith.constant 0 : index
    %15 = vector.load %arg4[%c0_10, %c0_11] : memref<16x3xf32, #tpu.memory_space<vmem>>, vector<16x1xf32>
    %16 = vector.broadcast %15 : vector<16x1xf32> to vector<16x256xf32>
    %17 = arith.mulf %14, %16 : vector<16x256xf32>
    %cst_12 = arith.constant 0.000000e+00 : f32
    %18 = vector.broadcast %cst_12 : f32 to vector<16x32xf32>
    %19 = vector.extract_strided_slice %17 {offsets = [0, 0], sizes = [16, 224], strides = [1, 1]} : vector<16x256xf32> to vector<16x224xf32>
    %20 = tpu.concatenate %18, %19 in 1 : vector<16x32xf32>, vector<16x224xf32> -> vector<16x256xf32>
    %c0_13 = arith.constant 0 : index
    %c0_14 = arith.constant 0 : index
    %21 = vector.load %arg5[%c0_13, %c0_14] : memref<9x256xf32, #tpu.memory_space<vmem>>, vector<1x256xf32>
    %22 = vector.broadcast %21 : vector<1x256xf32> to vector<16x256xf32>
    %23 = arith.mulf %20, %22 : vector<16x256xf32>
    %24 = arith.addf %11, %23 : vector<16x256xf32>
    %c1 = arith.constant 1 : index
    %c0_15 = arith.constant 0 : index
    %25 = vector.load %arg5[%c1, %c0_15] : memref<9x256xf32, #tpu.memory_space<vmem>>, vector<1x256xf32>
    %26 = vector.broadcast %25 : vector<1x256xf32> to vector<16x256xf32>
    %27 = arith.mulf %17, %26 : vector<16x256xf32>
    %28 = arith.addf %24, %27 : vector<16x256xf32>
    %cst_16 = arith.constant 0.000000e+00 : f32
    %29 = vector.broadcast %cst_16 : f32 to vector<16x32xf32>
    %30 = vector.extract_strided_slice %17 {offsets = [0, 32], sizes = [16, 224], strides = [1, 1]} : vector<16x256xf32> to vector<16x224xf32>
    %31 = tpu.concatenate %30, %29 in 1 : vector<16x224xf32>, vector<16x32xf32> -> vector<16x256xf32>
    %c2 = arith.constant 2 : index
    %c0_17 = arith.constant 0 : index
    %32 = vector.load %arg5[%c2, %c0_17] : memref<9x256xf32, #tpu.memory_space<vmem>>, vector<1x256xf32>
    %33 = vector.broadcast %32 : vector<1x256xf32> to vector<16x256xf32>
    %34 = arith.mulf %31, %33 : vector<16x256xf32>
    %35 = arith.addf %28, %34 : vector<16x256xf32>
    %c0_18 = arith.constant 0 : index
    %c1_19 = arith.constant 1 : index
    %36 = vector.load %arg4[%c0_18, %c1_19] : memref<16x3xf32, #tpu.memory_space<vmem>>, vector<16x1xf32>
    %37 = vector.broadcast %36 : vector<16x1xf32> to vector<16x256xf32>
    %38 = arith.mulf %10, %37 : vector<16x256xf32>
    %cst_20 = arith.constant 0.000000e+00 : f32
    %39 = vector.broadcast %cst_20 : f32 to vector<16x32xf32>
    %40 = vector.extract_strided_slice %38 {offsets = [0, 0], sizes = [16, 224], strides = [1, 1]} : vector<16x256xf32> to vector<16x224xf32>
    %41 = tpu.concatenate %39, %40 in 1 : vector<16x32xf32>, vector<16x224xf32> -> vector<16x256xf32>
    %c3 = arith.constant 3 : index
    %c0_21 = arith.constant 0 : index
    %42 = vector.load %arg5[%c3, %c0_21] : memref<9x256xf32, #tpu.memory_space<vmem>>, vector<1x256xf32>
    %43 = vector.broadcast %42 : vector<1x256xf32> to vector<16x256xf32>
    %44 = arith.mulf %41, %43 : vector<16x256xf32>
    %45 = arith.addf %35, %44 : vector<16x256xf32>
    %c4 = arith.constant 4 : index
    %c0_22 = arith.constant 0 : index
    %46 = vector.load %arg5[%c4, %c0_22] : memref<9x256xf32, #tpu.memory_space<vmem>>, vector<1x256xf32>
    %47 = vector.broadcast %46 : vector<1x256xf32> to vector<16x256xf32>
    %48 = arith.mulf %38, %47 : vector<16x256xf32>
    %49 = arith.addf %45, %48 : vector<16x256xf32>
    %cst_23 = arith.constant 0.000000e+00 : f32
    %50 = vector.broadcast %cst_23 : f32 to vector<16x32xf32>
    %51 = vector.extract_strided_slice %38 {offsets = [0, 32], sizes = [16, 224], strides = [1, 1]} : vector<16x256xf32> to vector<16x224xf32>
    %52 = tpu.concatenate %51, %50 in 1 : vector<16x224xf32>, vector<16x32xf32> -> vector<16x256xf32>
    %c5 = arith.constant 5 : index
    %c0_24 = arith.constant 0 : index
    %53 = vector.load %arg5[%c5, %c0_24] : memref<9x256xf32, #tpu.memory_space<vmem>>, vector<1x256xf32>
    %54 = vector.broadcast %53 : vector<1x256xf32> to vector<16x256xf32>
    %55 = arith.mulf %52, %54 : vector<16x256xf32>
    %56 = arith.addf %49, %55 : vector<16x256xf32>
    %cst_25 = arith.constant 0.000000e+00 : f32
    %57 = vector.broadcast %cst_25 : f32 to vector<1x256xf32>
    %58 = vector.extract_strided_slice %10 {offsets = [1, 0], sizes = [15, 256], strides = [1, 1]} : vector<16x256xf32> to vector<15x256xf32>
    %59 = tpu.concatenate %58, %57 in 0 : vector<15x256xf32>, vector<1x256xf32> -> vector<16x256xf32>
    %c0_26 = arith.constant 0 : index
    %c2_27 = arith.constant 2 : index
    %60 = vector.load %arg4[%c0_26, %c2_27] : memref<16x3xf32, #tpu.memory_space<vmem>>, vector<16x1xf32>
    %61 = vector.broadcast %60 : vector<16x1xf32> to vector<16x256xf32>
    %62 = arith.mulf %59, %61 : vector<16x256xf32>
    %cst_28 = arith.constant 0.000000e+00 : f32
    %63 = vector.broadcast %cst_28 : f32 to vector<16x32xf32>
    %64 = vector.extract_strided_slice %62 {offsets = [0, 0], sizes = [16, 224], strides = [1, 1]} : vector<16x256xf32> to vector<16x224xf32>
    %65 = tpu.concatenate %63, %64 in 1 : vector<16x32xf32>, vector<16x224xf32> -> vector<16x256xf32>
    %c6 = arith.constant 6 : index
    %c0_29 = arith.constant 0 : index
    %66 = vector.load %arg5[%c6, %c0_29] : memref<9x256xf32, #tpu.memory_space<vmem>>, vector<1x256xf32>
    %67 = vector.broadcast %66 : vector<1x256xf32> to vector<16x256xf32>
    %68 = arith.mulf %65, %67 : vector<16x256xf32>
    %69 = arith.addf %56, %68 : vector<16x256xf32>
    %c7 = arith.constant 7 : index
    %c0_30 = arith.constant 0 : index
    %70 = vector.load %arg5[%c7, %c0_30] : memref<9x256xf32, #tpu.memory_space<vmem>>, vector<1x256xf32>
    %71 = vector.broadcast %70 : vector<1x256xf32> to vector<16x256xf32>
    %72 = arith.mulf %62, %71 : vector<16x256xf32>
    %73 = arith.addf %69, %72 : vector<16x256xf32>
    %cst_31 = arith.constant 0.000000e+00 : f32
    %74 = vector.broadcast %cst_31 : f32 to vector<16x32xf32>
    %75 = vector.extract_strided_slice %62 {offsets = [0, 32], sizes = [16, 224], strides = [1, 1]} : vector<16x256xf32> to vector<16x224xf32>
    %76 = tpu.concatenate %75, %74 in 1 : vector<16x224xf32>, vector<16x32xf32> -> vector<16x256xf32>
    %c8 = arith.constant 8 : index
    %c0_32 = arith.constant 0 : index
    %77 = vector.load %arg5[%c8, %c0_32] : memref<9x256xf32, #tpu.memory_space<vmem>>, vector<1x256xf32>
    %78 = vector.broadcast %77 : vector<1x256xf32> to vector<16x256xf32>
    %79 = arith.mulf %76, %78 : vector<16x256xf32>
    %80 = arith.addf %73, %79 : vector<16x256xf32>
    %c0_33 = arith.constant 0 : index
    %c0_34 = arith.constant 0 : index
    %81 = vector.load %arg6[%c0_33, %c0_34] : memref<1x256xf32, #tpu.memory_space<vmem>>, vector<1x256xf32>
    %82 = vector.broadcast %81 : vector<1x256xf32> to vector<16x256xf32>
    %83 = arith.addf %80, %82 : vector<16x256xf32>
    %cst_35 = arith.constant 0.000000e+00 : f32
    %84 = vector.broadcast %cst_35 : f32 to vector<16x256xf32>
    %85 = arith.maximumf %83, %84 : vector<16x256xf32>
    %86 = arith.truncf %85 : vector<16x256xf32> to vector<16x256xbf16>
    %c0_36 = arith.constant 0 : index
    %c0_37 = arith.constant 0 : index
    %87 = vector.load %arg7[%c0_36, %c0_37] : memref<256x256xbf16, #tpu.memory_space<vmem>>, vector<256x256xbf16>
    %cst_38 = arith.constant dense<0.000000e+00> : vector<16x256xf32>
    %88 = tpu.matmul %86, %87, %cst_38 {dimension_numbers = #tpu.dot_dimension_numbers<[1], [0], [0], [1], [0, 0, 1, 1], [], []>} : vector<16x256xbf16>, vector<256x256xbf16>, vector<16x256xf32> -> vector<16x256xf32>
    %c0_39 = arith.constant 0 : index
    %c0_40 = arith.constant 0 : index
    %89 = vector.load %arg8[%c0_39, %c0_40] : memref<1x256xf32, #tpu.memory_space<vmem>>, vector<1x256xf32>
    %90 = vector.broadcast %89 : vector<1x256xf32> to vector<16x256xf32>
    %91 = arith.mulf %88, %90 : vector<16x256xf32>
    %c0_41 = arith.constant 0 : index
    %c0_42 = arith.constant 0 : index
    %92 = vector.load %arg9[%c0_41, %c0_42] : memref<1x256xf32, #tpu.memory_space<vmem>>, vector<1x256xf32>
    %93 = vector.broadcast %92 : vector<1x256xf32> to vector<16x256xf32>
    %94 = arith.addf %91, %93 : vector<16x256xf32>
    %cst_43 = arith.constant 0.000000e+00 : f32
    %95 = vector.broadcast %cst_43 : f32 to vector<16x256xf32>
    %96 = arith.maximumf %94, %95 : vector<16x256xf32>
    %c0_44 = arith.constant 0 : index
    %c0_45 = arith.constant 0 : index
    %97 = vector.load %arg10[%c0_44, %c0_45] : memref<1x256xf32, #tpu.memory_space<vmem>>, vector<1x256xf32>
    %98 = vector.broadcast %97 : vector<1x256xf32> to vector<16x256xf32>
    %99 = arith.mulf %96, %98 : vector<16x256xf32>
    %c0_46 = arith.constant 0 : index
    %c0_47 = arith.constant 0 : index
    %100 = vector.load %arg11[%c0_46, %c0_47] : memref<1x256xf32, #tpu.memory_space<vmem>>, vector<1x256xf32>
    %101 = vector.broadcast %100 : vector<1x256xf32> to vector<16x256xf32>
    %102 = arith.addf %99, %101 : vector<16x256xf32>
    %103 = arith.truncf %102 : vector<16x256xf32> to vector<16x256xbf16>
    %c0_48 = arith.constant 0 : index
    %c0_49 = arith.constant 0 : index
    %104 = vector.load %arg12[%c0_48, %c0_49] : memref<16x256xbf16, #tpu.memory_space<vmem>>, vector<16x256xbf16>
    tpu.vector_store %arg12[%c0_48, %c0_49], %103 {strides = array<i32>} : memref<16x256xbf16, #tpu.memory_space<vmem>>, vector<16x256xbf16>,
    return
  }
}

module attributes {stable_mosaic.version = 11 : i64} {
  func.func @_stage_kernel(%arg0: memref<8x1152xbf16, #tpu.memory_space<vmem>>, %arg1: memref<1152x256xbf16, #tpu.memory_space<vmem>>, %arg2: memref<1x256xf32, #tpu.memory_space<vmem>>, %arg3: memref<1x256xf32, #tpu.memory_space<vmem>>, %arg4: memref<8x5xf32, #tpu.memory_space<vmem>>, %arg5: memref<25x256xf32, #tpu.memory_space<vmem>>, %arg6: memref<1x256xf32, #tpu.memory_space<vmem>>, %arg7: memref<256x256xbf16, #tpu.memory_space<vmem>>, %arg8: memref<1x256xf32, #tpu.memory_space<vmem>>, %arg9: memref<1x256xf32, #tpu.memory_space<vmem>>, %arg10: memref<1x256xf32, #tpu.memory_space<vmem>>, %arg11: memref<1x256xf32, #tpu.memory_space<vmem>>, %arg12: memref<8x256xbf16, #tpu.memory_space<vmem>>) attributes {dimension_semantics = [], scalar_prefetch = 0 : i64, scratch_operands = 0 : i64, tpu.core_type = #tpu.core_type<tc>} {
    %c0 = arith.constant 0 : index
    %c0_0 = arith.constant 0 : index
    %0 = vector.load %arg0[%c0, %c0_0] : memref<8x1152xbf16, #tpu.memory_space<vmem>>, vector<8x1152xbf16>
    %c0_1 = arith.constant 0 : index
    %c0_2 = arith.constant 0 : index
    %1 = vector.load %arg1[%c0_1, %c0_2] : memref<1152x256xbf16, #tpu.memory_space<vmem>>, vector<1152x256xbf16>
    %cst = arith.constant dense<0.000000e+00> : vector<8x256xf32>
    %2 = tpu.matmul %0, %1, %cst {dimension_numbers = #tpu.dot_dimension_numbers<[1], [0], [0], [1], [0, 0, 1, 1], [], []>} : vector<8x1152xbf16>, vector<1152x256xbf16>, vector<8x256xf32> -> vector<8x256xf32>
    %c0_3 = arith.constant 0 : index
    %c0_4 = arith.constant 0 : index
    %3 = vector.load %arg2[%c0_3, %c0_4] : memref<1x256xf32, #tpu.memory_space<vmem>>, vector<1x256xf32>
    %4 = vector.broadcast %3 : vector<1x256xf32> to vector<8x256xf32>
    %5 = arith.mulf %2, %4 : vector<8x256xf32>
    %c0_5 = arith.constant 0 : index
    %c0_6 = arith.constant 0 : index
    %6 = vector.load %arg3[%c0_5, %c0_6] : memref<1x256xf32, #tpu.memory_space<vmem>>, vector<1x256xf32>
    %7 = vector.broadcast %6 : vector<1x256xf32> to vector<8x256xf32>
    %8 = arith.addf %5, %7 : vector<8x256xf32>
    %cst_7 = arith.constant 0.000000e+00 : f32
    %9 = vector.broadcast %cst_7 : f32 to vector<8x256xf32>
    %cst_8 = arith.constant 0.000000e+00 : f32
    %10 = vector.broadcast %cst_8 : f32 to vector<2x256xf32>
    %11 = vector.extract_strided_slice %8 {offsets = [0, 0], sizes = [6, 256], strides = [1, 1]} : vector<8x256xf32> to vector<6x256xf32>
    %12 = tpu.concatenate %10, %11 in 0 : vector<2x256xf32>, vector<6x256xf32> -> vector<8x256xf32>
    %c0_9 = arith.constant 0 : index
    %c0_10 = arith.constant 0 : index
    %13 = vector.load %arg4[%c0_9, %c0_10] : memref<8x5xf32, #tpu.memory_space<vmem>>, vector<8x1xf32>
    %14 = vector.broadcast %13 : vector<8x1xf32> to vector<8x256xf32>
    %15 = arith.mulf %12, %14 : vector<8x256xf32>
    %cst_11 = arith.constant 0.000000e+00 : f32
    %16 = vector.broadcast %cst_11 : f32 to vector<8x128xf32>
    %17 = vector.extract_strided_slice %15 {offsets = [0, 0], sizes = [8, 128], strides = [1, 1]} : vector<8x256xf32> to vector<8x128xf32>
    %18 = tpu.concatenate %16, %17 in 1 : vector<8x128xf32>, vector<8x128xf32> -> vector<8x256xf32>
    %c0_12 = arith.constant 0 : index
    %c0_13 = arith.constant 0 : index
    %19 = vector.load %arg5[%c0_12, %c0_13] : memref<25x256xf32, #tpu.memory_space<vmem>>, vector<1x256xf32>
    %20 = vector.broadcast %19 : vector<1x256xf32> to vector<8x256xf32>
    %21 = arith.mulf %18, %20 : vector<8x256xf32>
    %22 = arith.addf %9, %21 : vector<8x256xf32>
    %cst_14 = arith.constant 0.000000e+00 : f32
    %23 = vector.broadcast %cst_14 : f32 to vector<8x64xf32>
    %24 = vector.extract_strided_slice %15 {offsets = [0, 0], sizes = [8, 192], strides = [1, 1]} : vector<8x256xf32> to vector<8x192xf32>
    %25 = tpu.concatenate %23, %24 in 1 : vector<8x64xf32>, vector<8x192xf32> -> vector<8x256xf32>
    %c1 = arith.constant 1 : index
    %c0_15 = arith.constant 0 : index
    %26 = vector.load %arg5[%c1, %c0_15] : memref<25x256xf32, #tpu.memory_space<vmem>>, vector<1x256xf32>
    %27 = vector.broadcast %26 : vector<1x256xf32> to vector<8x256xf32>
    %28 = arith.mulf %25, %27 : vector<8x256xf32>
    %29 = arith.addf %22, %28 : vector<8x256xf32>
    %c2 = arith.constant 2 : index
    %c0_16 = arith.constant 0 : index
    %30 = vector.load %arg5[%c2, %c0_16] : memref<25x256xf32, #tpu.memory_space<vmem>>, vector<1x256xf32>
    %31 = vector.broadcast %30 : vector<1x256xf32> to vector<8x256xf32>
    %32 = arith.mulf %15, %31 : vector<8x256xf32>
    %33 = arith.addf %29, %32 : vector<8x256xf32>
    %cst_17 = arith.constant 0.000000e+00 : f32
    %34 = vector.broadcast %cst_17 : f32 to vector<8x64xf32>
    %35 = vector.extract_strided_slice %15 {offsets = [0, 64], sizes = [8, 192], strides = [1, 1]} : vector<8x256xf32> to vector<8x192xf32>
    %36 = tpu.concatenate %35, %34 in 1 : vector<8x192xf32>, vector<8x64xf32> -> vector<8x256xf32>
    %c3 = arith.constant 3 : index
    %c0_18 = arith.constant 0 : index
    %37 = vector.load %arg5[%c3, %c0_18] : memref<25x256xf32, #tpu.memory_space<vmem>>, vector<1x256xf32>
    %38 = vector.broadcast %37 : vector<1x256xf32> to vector<8x256xf32>
    %39 = arith.mulf %36, %38 : vector<8x256xf32>
    %40 = arith.addf %33, %39 : vector<8x256xf32>
    %cst_19 = arith.constant 0.000000e+00 : f32
    %41 = vector.broadcast %cst_19 : f32 to vector<8x128xf32>
    %42 = vector.extract_strided_slice %15 {offsets = [0, 128], sizes = [8, 128], strides = [1, 1]} : vector<8x256xf32> to vector<8x128xf32>
    %43 = tpu.concatenate %42, %41 in 1 : vector<8x128xf32>, vector<8x128xf32> -> vector<8x256xf32>
    %c4 = arith.constant 4 : index
    %c0_20 = arith.constant 0 : index
    %44 = vector.load %arg5[%c4, %c0_20] : memref<25x256xf32, #tpu.memory_space<vmem>>, vector<1x256xf32>
    %45 = vector.broadcast %44 : vector<1x256xf32> to vector<8x256xf32>
    %46 = arith.mulf %43, %45 : vector<8x256xf32>
    %47 = arith.addf %40, %46 : vector<8x256xf32>
    %cst_21 = arith.constant 0.000000e+00 : f32
    %48 = vector.broadcast %cst_21 : f32 to vector<1x256xf32>
    %49 = vector.extract_strided_slice %8 {offsets = [0, 0], sizes = [7, 256], strides = [1, 1]} : vector<8x256xf32> to vector<7x256xf32>
    %50 = tpu.concatenate %48, %49 in 0 : vector<1x256xf32>, vector<7x256xf32> -> vector<8x256xf32>
    %c0_22 = arith.constant 0 : index
    %c1_23 = arith.constant 1 : index
    %51 = vector.load %arg4[%c0_22, %c1_23] : memref<8x5xf32, #tpu.memory_space<vmem>>, vector<8x1xf32>
    %52 = vector.broadcast %51 : vector<8x1xf32> to vector<8x256xf32>
    %53 = arith.mulf %50, %52 : vector<8x256xf32>
    %cst_24 = arith.constant 0.000000e+00 : f32
    %54 = vector.broadcast %cst_24 : f32 to vector<8x128xf32>
    %55 = vector.extract_strided_slice %53 {offsets = [0, 0], sizes = [8, 128], strides = [1, 1]} : vector<8x256xf32> to vector<8x128xf32>
    %56 = tpu.concatenate %54, %55 in 1 : vector<8x128xf32>, vector<8x128xf32> -> vector<8x256xf32>
    %c5 = arith.constant 5 : index
    %c0_25 = arith.constant 0 : index
    %57 = vector.load %arg5[%c5, %c0_25] : memref<25x256xf32, #tpu.memory_space<vmem>>, vector<1x256xf32>
    %58 = vector.broadcast %57 : vector<1x256xf32> to vector<8x256xf32>
    %59 = arith.mulf %56, %58 : vector<8x256xf32>
    %60 = arith.addf %47, %59 : vector<8x256xf32>
    %cst_26 = arith.constant 0.000000e+00 : f32
    %61 = vector.broadcast %cst_26 : f32 to vector<8x64xf32>
    %62 = vector.extract_strided_slice %53 {offsets = [0, 0], sizes = [8, 192], strides = [1, 1]} : vector<8x256xf32> to vector<8x192xf32>
    %63 = tpu.concatenate %61, %62 in 1 : vector<8x64xf32>, vector<8x192xf32> -> vector<8x256xf32>
    %c6 = arith.constant 6 : index
    %c0_27 = arith.constant 0 : index
    %64 = vector.load %arg5[%c6, %c0_27] : memref<25x256xf32, #tpu.memory_space<vmem>>, vector<1x256xf32>
    %65 = vector.broadcast %64 : vector<1x256xf32> to vector<8x256xf32>
    %66 = arith.mulf %63, %65 : vector<8x256xf32>
    %67 = arith.addf %60, %66 : vector<8x256xf32>
    %c7 = arith.constant 7 : index
    %c0_28 = arith.constant 0 : index
    %68 = vector.load %arg5[%c7, %c0_28] : memref<25x256xf32, #tpu.memory_space<vmem>>, vector<1x256xf32>
    %69 = vector.broadcast %68 : vector<1x256xf32> to vector<8x256xf32>
    %70 = arith.mulf %53, %69 : vector<8x256xf32>
    %71 = arith.addf %67, %70 : vector<8x256xf32>
    %cst_29 = arith.constant 0.000000e+00 : f32
    %72 = vector.broadcast %cst_29 : f32 to vector<8x64xf32>
    %73 = vector.extract_strided_slice %53 {offsets = [0, 64], sizes = [8, 192], strides = [1, 1]} : vector<8x256xf32> to vector<8x192xf32>
    %74 = tpu.concatenate %73, %72 in 1 : vector<8x192xf32>, vector<8x64xf32> -> vector<8x256xf32>
    %c8 = arith.constant 8 : index
    %c0_30 = arith.constant 0 : index
    %75 = vector.load %arg5[%c8, %c0_30] : memref<25x256xf32, #tpu.memory_space<vmem>>, vector<1x256xf32>
    %76 = vector.broadcast %75 : vector<1x256xf32> to vector<8x256xf32>
    %77 = arith.mulf %74, %76 : vector<8x256xf32>
    %78 = arith.addf %71, %77 : vector<8x256xf32>
    %cst_31 = arith.constant 0.000000e+00 : f32
    %79 = vector.broadcast %cst_31 : f32 to vector<8x128xf32>
    %80 = vector.extract_strided_slice %53 {offsets = [0, 128], sizes = [8, 128], strides = [1, 1]} : vector<8x256xf32> to vector<8x128xf32>
    %81 = tpu.concatenate %80, %79 in 1 : vector<8x128xf32>, vector<8x128xf32> -> vector<8x256xf32>
    %c9 = arith.constant 9 : index
    %c0_32 = arith.constant 0 : index
    %82 = vector.load %arg5[%c9, %c0_32] : memref<25x256xf32, #tpu.memory_space<vmem>>, vector<1x256xf32>
    %83 = vector.broadcast %82 : vector<1x256xf32> to vector<8x256xf32>
    %84 = arith.mulf %81, %83 : vector<8x256xf32>
    %85 = arith.addf %78, %84 : vector<8x256xf32>
    %c0_33 = arith.constant 0 : index
    %c2_34 = arith.constant 2 : index
    %86 = vector.load %arg4[%c0_33, %c2_34] : memref<8x5xf32, #tpu.memory_space<vmem>>, vector<8x1xf32>
    %87 = vector.broadcast %86 : vector<8x1xf32> to vector<8x256xf32>
    %88 = arith.mulf %8, %87 : vector<8x256xf32>
    %cst_35 = arith.constant 0.000000e+00 : f32
    %89 = vector.broadcast %cst_35 : f32 to vector<8x128xf32>
    %90 = vector.extract_strided_slice %88 {offsets = [0, 0], sizes = [8, 128], strides = [1, 1]} : vector<8x256xf32> to vector<8x128xf32>
    %91 = tpu.concatenate %89, %90 in 1 : vector<8x128xf32>, vector<8x128xf32> -> vector<8x256xf32>
    %c10 = arith.constant 10 : index
    %c0_36 = arith.constant 0 : index
    %92 = vector.load %arg5[%c10, %c0_36] : memref<25x256xf32, #tpu.memory_space<vmem>>, vector<1x256xf32>
    %93 = vector.broadcast %92 : vector<1x256xf32> to vector<8x256xf32>
    %94 = arith.mulf %91, %93 : vector<8x256xf32>
    %95 = arith.addf %85, %94 : vector<8x256xf32>
    %cst_37 = arith.constant 0.000000e+00 : f32
    %96 = vector.broadcast %cst_37 : f32 to vector<8x64xf32>
    %97 = vector.extract_strided_slice %88 {offsets = [0, 0], sizes = [8, 192], strides = [1, 1]} : vector<8x256xf32> to vector<8x192xf32>
    %98 = tpu.concatenate %96, %97 in 1 : vector<8x64xf32>, vector<8x192xf32> -> vector<8x256xf32>
    %c11 = arith.constant 11 : index
    %c0_38 = arith.constant 0 : index
    %99 = vector.load %arg5[%c11, %c0_38] : memref<25x256xf32, #tpu.memory_space<vmem>>, vector<1x256xf32>
    %100 = vector.broadcast %99 : vector<1x256xf32> to vector<8x256xf32>
    %101 = arith.mulf %98, %100 : vector<8x256xf32>
    %102 = arith.addf %95, %101 : vector<8x256xf32>
    %c12 = arith.constant 12 : index
    %c0_39 = arith.constant 0 : index
    %103 = vector.load %arg5[%c12, %c0_39] : memref<25x256xf32, #tpu.memory_space<vmem>>, vector<1x256xf32>
    %104 = vector.broadcast %103 : vector<1x256xf32> to vector<8x256xf32>
    %105 = arith.mulf %88, %104 : vector<8x256xf32>
    %106 = arith.addf %102, %105 : vector<8x256xf32>
    %cst_40 = arith.constant 0.000000e+00 : f32
    %107 = vector.broadcast %cst_40 : f32 to vector<8x64xf32>
    %108 = vector.extract_strided_slice %88 {offsets = [0, 64], sizes = [8, 192], strides = [1, 1]} : vector<8x256xf32> to vector<8x192xf32>
    %109 = tpu.concatenate %108, %107 in 1 : vector<8x192xf32>, vector<8x64xf32> -> vector<8x256xf32>
    %c13 = arith.constant 13 : index
    %c0_41 = arith.constant 0 : index
    %110 = vector.load %arg5[%c13, %c0_41] : memref<25x256xf32, #tpu.memory_space<vmem>>, vector<1x256xf32>
    %111 = vector.broadcast %110 : vector<1x256xf32> to vector<8x256xf32>
    %112 = arith.mulf %109, %111 : vector<8x256xf32>
    %113 = arith.addf %106, %112 : vector<8x256xf32>
    %cst_42 = arith.constant 0.000000e+00 : f32
    %114 = vector.broadcast %cst_42 : f32 to vector<8x128xf32>
    %115 = vector.extract_strided_slice %88 {offsets = [0, 128], sizes = [8, 128], strides = [1, 1]} : vector<8x256xf32> to vector<8x128xf32>
    %116 = tpu.concatenate %115, %114 in 1 : vector<8x128xf32>, vector<8x128xf32> -> vector<8x256xf32>
    %c14 = arith.constant 14 : index
    %c0_43 = arith.constant 0 : index
    %117 = vector.load %arg5[%c14, %c0_43] : memref<25x256xf32, #tpu.memory_space<vmem>>, vector<1x256xf32>
    %118 = vector.broadcast %117 : vector<1x256xf32> to vector<8x256xf32>
    %119 = arith.mulf %116, %118 : vector<8x256xf32>
    %120 = arith.addf %113, %119 : vector<8x256xf32>
    %cst_44 = arith.constant 0.000000e+00 : f32
    %121 = vector.broadcast %cst_44 : f32 to vector<1x256xf32>
    %122 = vector.extract_strided_slice %8 {offsets = [1, 0], sizes = [7, 256], strides = [1, 1]} : vector<8x256xf32> to vector<7x256xf32>
    %123 = tpu.concatenate %122, %121 in 0 : vector<7x256xf32>, vector<1x256xf32> -> vector<8x256xf32>
    %c0_45 = arith.constant 0 : index
    %c3_46 = arith.constant 3 : index
    %124 = vector.load %arg4[%c0_45, %c3_46] : memref<8x5xf32, #tpu.memory_space<vmem>>, vector<8x1xf32>
    %125 = vector.broadcast %124 : vector<8x1xf32> to vector<8x256xf32>
    %126 = arith.mulf %123, %125 : vector<8x256xf32>
    %cst_47 = arith.constant 0.000000e+00 : f32
    %127 = vector.broadcast %cst_47 : f32 to vector<8x128xf32>
    %128 = vector.extract_strided_slice %126 {offsets = [0, 0], sizes = [8, 128], strides = [1, 1]} : vector<8x256xf32> to vector<8x128xf32>
    %129 = tpu.concatenate %127, %128 in 1 : vector<8x128xf32>, vector<8x128xf32> -> vector<8x256xf32>
    %c15 = arith.constant 15 : index
    %c0_48 = arith.constant 0 : index
    %130 = vector.load %arg5[%c15, %c0_48] : memref<25x256xf32, #tpu.memory_space<vmem>>, vector<1x256xf32>
    %131 = vector.broadcast %130 : vector<1x256xf32> to vector<8x256xf32>
    %132 = arith.mulf %129, %131 : vector<8x256xf32>
    %133 = arith.addf %120, %132 : vector<8x256xf32>
    %cst_49 = arith.constant 0.000000e+00 : f32
    %134 = vector.broadcast %cst_49 : f32 to vector<8x64xf32>
    %135 = vector.extract_strided_slice %126 {offsets = [0, 0], sizes = [8, 192], strides = [1, 1]} : vector<8x256xf32> to vector<8x192xf32>
    %136 = tpu.concatenate %134, %135 in 1 : vector<8x64xf32>, vector<8x192xf32> -> vector<8x256xf32>
    %c16 = arith.constant 16 : index
    %c0_50 = arith.constant 0 : index
    %137 = vector.load %arg5[%c16, %c0_50] : memref<25x256xf32, #tpu.memory_space<vmem>>, vector<1x256xf32>
    %138 = vector.broadcast %137 : vector<1x256xf32> to vector<8x256xf32>
    %139 = arith.mulf %136, %138 : vector<8x256xf32>
    %140 = arith.addf %133, %139 : vector<8x256xf32>
    %c17 = arith.constant 17 : index
    %c0_51 = arith.constant 0 : index
    %141 = vector.load %arg5[%c17, %c0_51] : memref<25x256xf32, #tpu.memory_space<vmem>>, vector<1x256xf32>
    %142 = vector.broadcast %141 : vector<1x256xf32> to vector<8x256xf32>
    %143 = arith.mulf %126, %142 : vector<8x256xf32>
    %144 = arith.addf %140, %143 : vector<8x256xf32>
    %cst_52 = arith.constant 0.000000e+00 : f32
    %145 = vector.broadcast %cst_52 : f32 to vector<8x64xf32>
    %146 = vector.extract_strided_slice %126 {offsets = [0, 64], sizes = [8, 192], strides = [1, 1]} : vector<8x256xf32> to vector<8x192xf32>
    %147 = tpu.concatenate %146, %145 in 1 : vector<8x192xf32>, vector<8x64xf32> -> vector<8x256xf32>
    %c18 = arith.constant 18 : index
    %c0_53 = arith.constant 0 : index
    %148 = vector.load %arg5[%c18, %c0_53] : memref<25x256xf32, #tpu.memory_space<vmem>>, vector<1x256xf32>
    %149 = vector.broadcast %148 : vector<1x256xf32> to vector<8x256xf32>
    %150 = arith.mulf %147, %149 : vector<8x256xf32>
    %151 = arith.addf %144, %150 : vector<8x256xf32>
    %cst_54 = arith.constant 0.000000e+00 : f32
    %152 = vector.broadcast %cst_54 : f32 to vector<8x128xf32>
    %153 = vector.extract_strided_slice %126 {offsets = [0, 128], sizes = [8, 128], strides = [1, 1]} : vector<8x256xf32> to vector<8x128xf32>
    %154 = tpu.concatenate %153, %152 in 1 : vector<8x128xf32>, vector<8x128xf32> -> vector<8x256xf32>
    %c19 = arith.constant 19 : index
    %c0_55 = arith.constant 0 : index
    %155 = vector.load %arg5[%c19, %c0_55] : memref<25x256xf32, #tpu.memory_space<vmem>>, vector<1x256xf32>
    %156 = vector.broadcast %155 : vector<1x256xf32> to vector<8x256xf32>
    %157 = arith.mulf %154, %156 : vector<8x256xf32>
    %158 = arith.addf %151, %157 : vector<8x256xf32>
    %cst_56 = arith.constant 0.000000e+00 : f32
    %159 = vector.broadcast %cst_56 : f32 to vector<2x256xf32>
    %160 = vector.extract_strided_slice %8 {offsets = [2, 0], sizes = [6, 256], strides = [1, 1]} : vector<8x256xf32> to vector<6x256xf32>
    %161 = tpu.concatenate %160, %159 in 0 : vector<6x256xf32>, vector<2x256xf32> -> vector<8x256xf32>
    %c0_57 = arith.constant 0 : index
    %c4_58 = arith.constant 4 : index
    %162 = vector.load %arg4[%c0_57, %c4_58] : memref<8x5xf32, #tpu.memory_space<vmem>>, vector<8x1xf32>
    %163 = vector.broadcast %162 : vector<8x1xf32> to vector<8x256xf32>
    %164 = arith.mulf %161, %163 : vector<8x256xf32>
    %cst_59 = arith.constant 0.000000e+00 : f32
    %165 = vector.broadcast %cst_59 : f32 to vector<8x128xf32>
    %166 = vector.extract_strided_slice %164 {offsets = [0, 0], sizes = [8, 128], strides = [1, 1]} : vector<8x256xf32> to vector<8x128xf32>
    %167 = tpu.concatenate %165, %166 in 1 : vector<8x128xf32>, vector<8x128xf32> -> vector<8x256xf32>
    %c20 = arith.constant 20 : index
    %c0_60 = arith.constant 0 : index
    %168 = vector.load %arg5[%c20, %c0_60] : memref<25x256xf32, #tpu.memory_space<vmem>>, vector<1x256xf32>
    %169 = vector.broadcast %168 : vector<1x256xf32> to vector<8x256xf32>
    %170 = arith.mulf %167, %169 : vector<8x256xf32>
    %171 = arith.addf %158, %170 : vector<8x256xf32>
    %cst_61 = arith.constant 0.000000e+00 : f32
    %172 = vector.broadcast %cst_61 : f32 to vector<8x64xf32>
    %173 = vector.extract_strided_slice %164 {offsets = [0, 0], sizes = [8, 192], strides = [1, 1]} : vector<8x256xf32> to vector<8x192xf32>
    %174 = tpu.concatenate %172, %173 in 1 : vector<8x64xf32>, vector<8x192xf32> -> vector<8x256xf32>
    %c21 = arith.constant 21 : index
    %c0_62 = arith.constant 0 : index
    %175 = vector.load %arg5[%c21, %c0_62] : memref<25x256xf32, #tpu.memory_space<vmem>>, vector<1x256xf32>
    %176 = vector.broadcast %175 : vector<1x256xf32> to vector<8x256xf32>
    %177 = arith.mulf %174, %176 : vector<8x256xf32>
    %178 = arith.addf %171, %177 : vector<8x256xf32>
    %c22 = arith.constant 22 : index
    %c0_63 = arith.constant 0 : index
    %179 = vector.load %arg5[%c22, %c0_63] : memref<25x256xf32, #tpu.memory_space<vmem>>, vector<1x256xf32>
    %180 = vector.broadcast %179 : vector<1x256xf32> to vector<8x256xf32>
    %181 = arith.mulf %164, %180 : vector<8x256xf32>
    %182 = arith.addf %178, %181 : vector<8x256xf32>
    %cst_64 = arith.constant 0.000000e+00 : f32
    %183 = vector.broadcast %cst_64 : f32 to vector<8x64xf32>
    %184 = vector.extract_strided_slice %164 {offsets = [0, 64], sizes = [8, 192], strides = [1, 1]} : vector<8x256xf32> to vector<8x192xf32>
    %185 = tpu.concatenate %184, %183 in 1 : vector<8x192xf32>, vector<8x64xf32> -> vector<8x256xf32>
    %c23 = arith.constant 23 : index
    %c0_65 = arith.constant 0 : index
    %186 = vector.load %arg5[%c23, %c0_65] : memref<25x256xf32, #tpu.memory_space<vmem>>, vector<1x256xf32>
    %187 = vector.broadcast %186 : vector<1x256xf32> to vector<8x256xf32>
    %188 = arith.mulf %185, %187 : vector<8x256xf32>
    %189 = arith.addf %182, %188 : vector<8x256xf32>
    %cst_66 = arith.constant 0.000000e+00 : f32
    %190 = vector.broadcast %cst_66 : f32 to vector<8x128xf32>
    %191 = vector.extract_strided_slice %164 {offsets = [0, 128], sizes = [8, 128], strides = [1, 1]} : vector<8x256xf32> to vector<8x128xf32>
    %192 = tpu.concatenate %191, %190 in 1 : vector<8x128xf32>, vector<8x128xf32> -> vector<8x256xf32>
    %c24 = arith.constant 24 : index
    %c0_67 = arith.constant 0 : index
    %193 = vector.load %arg5[%c24, %c0_67] : memref<25x256xf32, #tpu.memory_space<vmem>>, vector<1x256xf32>
    %194 = vector.broadcast %193 : vector<1x256xf32> to vector<8x256xf32>
    %195 = arith.mulf %192, %194 : vector<8x256xf32>
    %196 = arith.addf %189, %195 : vector<8x256xf32>
    %c0_68 = arith.constant 0 : index
    %c0_69 = arith.constant 0 : index
    %197 = vector.load %arg6[%c0_68, %c0_69] : memref<1x256xf32, #tpu.memory_space<vmem>>, vector<1x256xf32>
    %198 = vector.broadcast %197 : vector<1x256xf32> to vector<8x256xf32>
    %199 = arith.addf %196, %198 : vector<8x256xf32>
    %cst_70 = arith.constant 0.000000e+00 : f32
    %200 = vector.broadcast %cst_70 : f32 to vector<8x256xf32>
    %201 = arith.maximumf %199, %200 : vector<8x256xf32>
    %202 = arith.truncf %201 : vector<8x256xf32> to vector<8x256xbf16>
    %c0_71 = arith.constant 0 : index
    %c0_72 = arith.constant 0 : index
    %203 = vector.load %arg7[%c0_71, %c0_72] : memref<256x256xbf16, #tpu.memory_space<vmem>>, vector<256x256xbf16>
    %cst_73 = arith.constant dense<0.000000e+00> : vector<8x256xf32>
    %204 = tpu.matmul %202, %203, %cst_73 {dimension_numbers = #tpu.dot_dimension_numbers<[1], [0], [0], [1], [0, 0, 1, 1], [], []>} : vector<8x256xbf16>, vector<256x256xbf16>, vector<8x256xf32> -> vector<8x256xf32>
    %c0_74 = arith.constant 0 : index
    %c0_75 = arith.constant 0 : index
    %205 = vector.load %arg8[%c0_74, %c0_75] : memref<1x256xf32, #tpu.memory_space<vmem>>, vector<1x256xf32>
    %206 = vector.broadcast %205 : vector<1x256xf32> to vector<8x256xf32>
    %207 = arith.mulf %204, %206 : vector<8x256xf32>
    %c0_76 = arith.constant 0 : index
    %c0_77 = arith.constant 0 : index
    %208 = vector.load %arg9[%c0_76, %c0_77] : memref<1x256xf32, #tpu.memory_space<vmem>>, vector<1x256xf32>
    %209 = vector.broadcast %208 : vector<1x256xf32> to vector<8x256xf32>
    %210 = arith.addf %207, %209 : vector<8x256xf32>
    %cst_78 = arith.constant 0.000000e+00 : f32
    %211 = vector.broadcast %cst_78 : f32 to vector<8x256xf32>
    %212 = arith.maximumf %210, %211 : vector<8x256xf32>
    %c0_79 = arith.constant 0 : index
    %c0_80 = arith.constant 0 : index
    %213 = vector.load %arg10[%c0_79, %c0_80] : memref<1x256xf32, #tpu.memory_space<vmem>>, vector<1x256xf32>
    %214 = vector.broadcast %213 : vector<1x256xf32> to vector<8x256xf32>
    %215 = arith.mulf %212, %214 : vector<8x256xf32>
    %c0_81 = arith.constant 0 : index
    %c0_82 = arith.constant 0 : index
    %216 = vector.load %arg11[%c0_81, %c0_82] : memref<1x256xf32, #tpu.memory_space<vmem>>, vector<1x256xf32>
    %217 = vector.broadcast %216 : vector<1x256xf32> to vector<8x256xf32>
    %218 = arith.addf %215, %217 : vector<8x256xf32>
    %219 = arith.truncf %218 : vector<8x256xf32> to vector<8x256xbf16>
    %c0_83 = arith.constant 0 : index
    %c0_84 = arith.constant 0 : index
    %220 = vector.load %arg12[%c0_83, %c0_84] : memref<8x256xbf16, #tpu.memory_space<vmem>>, vector<8x256xbf16>
    tpu.vector_store %arg12[%c0_83, %c0_84], %219 {strides = array<i32>} : memref<8x256xbf16, #tpu.memory_space<vmem>>, vector<8x256xbf16>,
    return
  }
}

module attributes {stable_mosaic.version = 11 : i64} {
  func.func @_stage_kernel(%arg0: memref<4x1152xbf16, #tpu.memory_space<vmem>>, %arg1: memref<1152x256xbf16, #tpu.memory_space<vmem>>, %arg2: memref<1x256xf32, #tpu.memory_space<vmem>>, %arg3: memref<1x256xf32, #tpu.memory_space<vmem>>, %arg4: memref<4x5xf32, #tpu.memory_space<vmem>>, %arg5: memref<25x256xf32, #tpu.memory_space<vmem>>, %arg6: memref<1x256xf32, #tpu.memory_space<vmem>>, %arg7: memref<256x256xbf16, #tpu.memory_space<vmem>>, %arg8: memref<1x256xf32, #tpu.memory_space<vmem>>, %arg9: memref<1x256xf32, #tpu.memory_space<vmem>>, %arg10: memref<1x256xf32, #tpu.memory_space<vmem>>, %arg11: memref<1x256xf32, #tpu.memory_space<vmem>>, %arg12: memref<128x128xbf16, #tpu.memory_space<vmem>>, %arg13: memref<1x128xf32, #tpu.memory_space<vmem>>, %arg14: memref<2x128xf32, #tpu.memory_space<vmem>>) attributes {dimension_semantics = [], scalar_prefetch = 0 : i64, scratch_operands = 0 : i64, tpu.core_type = #tpu.core_type<tc>} {
    %c0 = arith.constant 0 : index
    %c0_0 = arith.constant 0 : index
    %0 = vector.load %arg0[%c0, %c0_0] : memref<4x1152xbf16, #tpu.memory_space<vmem>>, vector<4x1152xbf16>
    %c0_1 = arith.constant 0 : index
    %c0_2 = arith.constant 0 : index
    %1 = vector.load %arg1[%c0_1, %c0_2] : memref<1152x256xbf16, #tpu.memory_space<vmem>>, vector<1152x256xbf16>
    %cst = arith.constant dense<0.000000e+00> : vector<4x256xf32>
    %2 = tpu.matmul %0, %1, %cst {dimension_numbers = #tpu.dot_dimension_numbers<[1], [0], [0], [1], [0, 0, 1, 1], [], []>} : vector<4x1152xbf16>, vector<1152x256xbf16>, vector<4x256xf32> -> vector<4x256xf32>
    %c0_3 = arith.constant 0 : index
    %c0_4 = arith.constant 0 : index
    %3 = vector.load %arg2[%c0_3, %c0_4] : memref<1x256xf32, #tpu.memory_space<vmem>>, vector<1x256xf32>
    %4 = vector.broadcast %3 : vector<1x256xf32> to vector<4x256xf32>
    %5 = arith.mulf %2, %4 : vector<4x256xf32>
    %c0_5 = arith.constant 0 : index
    %c0_6 = arith.constant 0 : index
    %6 = vector.load %arg3[%c0_5, %c0_6] : memref<1x256xf32, #tpu.memory_space<vmem>>, vector<1x256xf32>
    %7 = vector.broadcast %6 : vector<1x256xf32> to vector<4x256xf32>
    %8 = arith.addf %5, %7 : vector<4x256xf32>
    %cst_7 = arith.constant 0.000000e+00 : f32
    %9 = vector.broadcast %cst_7 : f32 to vector<4x256xf32>
    %cst_8 = arith.constant 0.000000e+00 : f32
    %10 = vector.broadcast %cst_8 : f32 to vector<1x256xf32>
    %11 = vector.extract_strided_slice %8 {offsets = [0, 0], sizes = [3, 256], strides = [1, 1]} : vector<4x256xf32> to vector<3x256xf32>
    %12 = tpu.concatenate %10, %11 in 0 : vector<1x256xf32>, vector<3x256xf32> -> vector<4x256xf32>
    %c0_9 = arith.constant 0 : index
    %c1 = arith.constant 1 : index
    %13 = vector.load %arg4[%c0_9, %c1] : memref<4x5xf32, #tpu.memory_space<vmem>>, vector<4x1xf32>
    %14 = vector.broadcast %13 : vector<4x1xf32> to vector<4x256xf32>
    %15 = arith.mulf %12, %14 : vector<4x256xf32>
    %cst_10 = arith.constant 0.000000e+00 : f32
    %16 = vector.broadcast %cst_10 : f32 to vector<4x128xf32>
    %17 = vector.extract_strided_slice %15 {offsets = [0, 0], sizes = [4, 128], strides = [1, 1]} : vector<4x256xf32> to vector<4x128xf32>
    %18 = tpu.concatenate %16, %17 in 1 : vector<4x128xf32>, vector<4x128xf32> -> vector<4x256xf32>
    %c6 = arith.constant 6 : index
    %c0_11 = arith.constant 0 : index
    %19 = vector.load %arg5[%c6, %c0_11] : memref<25x256xf32, #tpu.memory_space<vmem>>, vector<1x256xf32>
    %20 = vector.broadcast %19 : vector<1x256xf32> to vector<4x256xf32>
    %21 = arith.mulf %18, %20 : vector<4x256xf32>
    %22 = arith.addf %9, %21 : vector<4x256xf32>
    %c7 = arith.constant 7 : index
    %c0_12 = arith.constant 0 : index
    %23 = vector.load %arg5[%c7, %c0_12] : memref<25x256xf32, #tpu.memory_space<vmem>>, vector<1x256xf32>
    %24 = vector.broadcast %23 : vector<1x256xf32> to vector<4x256xf32>
    %25 = arith.mulf %15, %24 : vector<4x256xf32>
    %26 = arith.addf %22, %25 : vector<4x256xf32>
    %cst_13 = arith.constant 0.000000e+00 : f32
    %27 = vector.broadcast %cst_13 : f32 to vector<4x128xf32>
    %28 = vector.extract_strided_slice %15 {offsets = [0, 128], sizes = [4, 128], strides = [1, 1]} : vector<4x256xf32> to vector<4x128xf32>
    %29 = tpu.concatenate %28, %27 in 1 : vector<4x128xf32>, vector<4x128xf32> -> vector<4x256xf32>
    %c8 = arith.constant 8 : index
    %c0_14 = arith.constant 0 : index
    %30 = vector.load %arg5[%c8, %c0_14] : memref<25x256xf32, #tpu.memory_space<vmem>>, vector<1x256xf32>
    %31 = vector.broadcast %30 : vector<1x256xf32> to vector<4x256xf32>
    %32 = arith.mulf %29, %31 : vector<4x256xf32>
    %33 = arith.addf %26, %32 : vector<4x256xf32>
    %c0_15 = arith.constant 0 : index
    %c2 = arith.constant 2 : index
    %34 = vector.load %arg4[%c0_15, %c2] : memref<4x5xf32, #tpu.memory_space<vmem>>, vector<4x1xf32>
    %35 = vector.broadcast %34 : vector<4x1xf32> to vector<4x256xf32>
    %36 = arith.mulf %8, %35 : vector<4x256xf32>
    %cst_16 = arith.constant 0.000000e+00 : f32
    %37 = vector.broadcast %cst_16 : f32 to vector<4x128xf32>
    %38 = vector.extract_strided_slice %36 {offsets = [0, 0], sizes = [4, 128], strides = [1, 1]} : vector<4x256xf32> to vector<4x128xf32>
    %39 = tpu.concatenate %37, %38 in 1 : vector<4x128xf32>, vector<4x128xf32> -> vector<4x256xf32>
    %c11 = arith.constant 11 : index
    %c0_17 = arith.constant 0 : index
    %40 = vector.load %arg5[%c11, %c0_17] : memref<25x256xf32, #tpu.memory_space<vmem>>, vector<1x256xf32>
    %41 = vector.broadcast %40 : vector<1x256xf32> to vector<4x256xf32>
    %42 = arith.mulf %39, %41 : vector<4x256xf32>
    %43 = arith.addf %33, %42 : vector<4x256xf32>
    %c12 = arith.constant 12 : index
    %c0_18 = arith.constant 0 : index
    %44 = vector.load %arg5[%c12, %c0_18] : memref<25x256xf32, #tpu.memory_space<vmem>>, vector<1x256xf32>
    %45 = vector.broadcast %44 : vector<1x256xf32> to vector<4x256xf32>
    %46 = arith.mulf %36, %45 : vector<4x256xf32>
    %47 = arith.addf %43, %46 : vector<4x256xf32>
    %cst_19 = arith.constant 0.000000e+00 : f32
    %48 = vector.broadcast %cst_19 : f32 to vector<4x128xf32>
    %49 = vector.extract_strided_slice %36 {offsets = [0, 128], sizes = [4, 128], strides = [1, 1]} : vector<4x256xf32> to vector<4x128xf32>
    %50 = tpu.concatenate %49, %48 in 1 : vector<4x128xf32>, vector<4x128xf32> -> vector<4x256xf32>
    %c13 = arith.constant 13 : index
    %c0_20 = arith.constant 0 : index
    %51 = vector.load %arg5[%c13, %c0_20] : memref<25x256xf32, #tpu.memory_space<vmem>>, vector<1x256xf32>
    %52 = vector.broadcast %51 : vector<1x256xf32> to vector<4x256xf32>
    %53 = arith.mulf %50, %52 : vector<4x256xf32>
    %54 = arith.addf %47, %53 : vector<4x256xf32>
    %cst_21 = arith.constant 0.000000e+00 : f32
    %55 = vector.broadcast %cst_21 : f32 to vector<1x256xf32>
    %56 = vector.extract_strided_slice %8 {offsets = [1, 0], sizes = [3, 256], strides = [1, 1]} : vector<4x256xf32> to vector<3x256xf32>
    %57 = tpu.concatenate %56, %55 in 0 : vector<3x256xf32>, vector<1x256xf32> -> vector<4x256xf32>
    %c0_22 = arith.constant 0 : index
    %c3 = arith.constant 3 : index
    %58 = vector.load %arg4[%c0_22, %c3] : memref<4x5xf32, #tpu.memory_space<vmem>>, vector<4x1xf32>
    %59 = vector.broadcast %58 : vector<4x1xf32> to vector<4x256xf32>
    %60 = arith.mulf %57, %59 : vector<4x256xf32>
    %cst_23 = arith.constant 0.000000e+00 : f32
    %61 = vector.broadcast %cst_23 : f32 to vector<4x128xf32>
    %62 = vector.extract_strided_slice %60 {offsets = [0, 0], sizes = [4, 128], strides = [1, 1]} : vector<4x256xf32> to vector<4x128xf32>
    %63 = tpu.concatenate %61, %62 in 1 : vector<4x128xf32>, vector<4x128xf32> -> vector<4x256xf32>
    %c16 = arith.constant 16 : index
    %c0_24 = arith.constant 0 : index
    %64 = vector.load %arg5[%c16, %c0_24] : memref<25x256xf32, #tpu.memory_space<vmem>>, vector<1x256xf32>
    %65 = vector.broadcast %64 : vector<1x256xf32> to vector<4x256xf32>
    %66 = arith.mulf %63, %65 : vector<4x256xf32>
    %67 = arith.addf %54, %66 : vector<4x256xf32>
    %c17 = arith.constant 17 : index
    %c0_25 = arith.constant 0 : index
    %68 = vector.load %arg5[%c17, %c0_25] : memref<25x256xf32, #tpu.memory_space<vmem>>, vector<1x256xf32>
    %69 = vector.broadcast %68 : vector<1x256xf32> to vector<4x256xf32>
    %70 = arith.mulf %60, %69 : vector<4x256xf32>
    %71 = arith.addf %67, %70 : vector<4x256xf32>
    %cst_26 = arith.constant 0.000000e+00 : f32
    %72 = vector.broadcast %cst_26 : f32 to vector<4x128xf32>
    %73 = vector.extract_strided_slice %60 {offsets = [0, 128], sizes = [4, 128], strides = [1, 1]} : vector<4x256xf32> to vector<4x128xf32>
    %74 = tpu.concatenate %73, %72 in 1 : vector<4x128xf32>, vector<4x128xf32> -> vector<4x256xf32>
    %c18 = arith.constant 18 : index
    %c0_27 = arith.constant 0 : index
    %75 = vector.load %arg5[%c18, %c0_27] : memref<25x256xf32, #tpu.memory_space<vmem>>, vector<1x256xf32>
    %76 = vector.broadcast %75 : vector<1x256xf32> to vector<4x256xf32>
    %77 = arith.mulf %74, %76 : vector<4x256xf32>
    %78 = arith.addf %71, %77 : vector<4x256xf32>
    %c0_28 = arith.constant 0 : index
    %c0_29 = arith.constant 0 : index
    %79 = vector.load %arg6[%c0_28, %c0_29] : memref<1x256xf32, #tpu.memory_space<vmem>>, vector<1x256xf32>
    %80 = vector.broadcast %79 : vector<1x256xf32> to vector<4x256xf32>
    %81 = arith.addf %78, %80 : vector<4x256xf32>
    %cst_30 = arith.constant 0.000000e+00 : f32
    %82 = vector.broadcast %cst_30 : f32 to vector<4x256xf32>
    %83 = arith.maximumf %81, %82 : vector<4x256xf32>
    %84 = arith.truncf %83 : vector<4x256xf32> to vector<4x256xbf16>
    %c0_31 = arith.constant 0 : index
    %c0_32 = arith.constant 0 : index
    %85 = vector.load %arg7[%c0_31, %c0_32] : memref<256x256xbf16, #tpu.memory_space<vmem>>, vector<256x256xbf16>
    %cst_33 = arith.constant dense<0.000000e+00> : vector<4x256xf32>
    %86 = tpu.matmul %84, %85, %cst_33 {dimension_numbers = #tpu.dot_dimension_numbers<[1], [0], [0], [1], [0, 0, 1, 1], [], []>} : vector<4x256xbf16>, vector<256x256xbf16>, vector<4x256xf32> -> vector<4x256xf32>
    %c0_34 = arith.constant 0 : index
    %c0_35 = arith.constant 0 : index
    %87 = vector.load %arg8[%c0_34, %c0_35] : memref<1x256xf32, #tpu.memory_space<vmem>>, vector<1x256xf32>
    %88 = vector.broadcast %87 : vector<1x256xf32> to vector<4x256xf32>
    %89 = arith.mulf %86, %88 : vector<4x256xf32>
    %c0_36 = arith.constant 0 : index
    %c0_37 = arith.constant 0 : index
    %90 = vector.load %arg9[%c0_36, %c0_37] : memref<1x256xf32, #tpu.memory_space<vmem>>, vector<1x256xf32>
    %91 = vector.broadcast %90 : vector<1x256xf32> to vector<4x256xf32>
    %92 = arith.addf %89, %91 : vector<4x256xf32>
    %cst_38 = arith.constant 0.000000e+00 : f32
    %93 = vector.broadcast %cst_38 : f32 to vector<4x256xf32>
    %94 = arith.maximumf %92, %93 : vector<4x256xf32>
    %c0_39 = arith.constant 0 : index
    %c0_40 = arith.constant 0 : index
    %95 = vector.load %arg10[%c0_39, %c0_40] : memref<1x256xf32, #tpu.memory_space<vmem>>, vector<1x256xf32>
    %96 = vector.broadcast %95 : vector<1x256xf32> to vector<4x256xf32>
    %97 = arith.mulf %94, %96 : vector<4x256xf32>
    %c0_41 = arith.constant 0 : index
    %c0_42 = arith.constant 0 : index
    %98 = vector.load %arg11[%c0_41, %c0_42] : memref<1x256xf32, #tpu.memory_space<vmem>>, vector<1x256xf32>
    %99 = vector.broadcast %98 : vector<1x256xf32> to vector<4x256xf32>
    %100 = arith.addf %97, %99 : vector<4x256xf32>
    %101 = vector.extract_strided_slice %100 {offsets = [0, 0], sizes = [2, 256], strides = [1, 1]} : vector<4x256xf32> to vector<2x256xf32>
    %102 = vector.extract_strided_slice %101 {offsets = [0, 0], sizes = [2, 128], strides = [1, 1]} : vector<2x256xf32> to vector<2x128xf32>
    %103 = vector.extract_strided_slice %101 {offsets = [0, 128], sizes = [2, 128], strides = [1, 1]} : vector<2x256xf32> to vector<2x128xf32>
    %104 = arith.addf %102, %103 : vector<2x128xf32>
    %cst_43 = arith.constant dense<0.000000e+00> : vector<128xf32>
    %105 = vector.multi_reduction <add>, %104, %cst_43 [0] : vector<2x128xf32> to vector<128xf32>
    %106 = vector.shape_cast %105 : vector<128xf32> to vector<1x128xf32>
    %107 = vector.extract_strided_slice %100 {offsets = [2, 0], sizes = [2, 256], strides = [1, 1]} : vector<4x256xf32> to vector<2x256xf32>
    %108 = vector.extract_strided_slice %107 {offsets = [0, 0], sizes = [2, 128], strides = [1, 1]} : vector<2x256xf32> to vector<2x128xf32>
    %109 = vector.extract_strided_slice %107 {offsets = [0, 128], sizes = [2, 128], strides = [1, 1]} : vector<2x256xf32> to vector<2x128xf32>
    %110 = arith.addf %108, %109 : vector<2x128xf32>
    %cst_44 = arith.constant dense<0.000000e+00> : vector<128xf32>
    %111 = vector.multi_reduction <add>, %110, %cst_44 [0] : vector<2x128xf32> to vector<128xf32>
    %112 = vector.shape_cast %111 : vector<128xf32> to vector<1x128xf32>
    %113 = tpu.concatenate %106, %112 in 0 : vector<1x128xf32>, vector<1x128xf32> -> vector<2x128xf32>
    %cst_45 = arith.constant 2.500000e-01 : f32
    %114 = vector.broadcast %cst_45 : f32 to vector<2x128xf32>
    %115 = arith.mulf %113, %114 : vector<2x128xf32>
    %116 = arith.truncf %115 : vector<2x128xf32> to vector<2x128xbf16>
    %c0_46 = arith.constant 0 : index
    %c0_47 = arith.constant 0 : index
    %117 = vector.load %arg12[%c0_46, %c0_47] : memref<128x128xbf16, #tpu.memory_space<vmem>>, vector<128x128xbf16>
    %cst_48 = arith.constant dense<0.000000e+00> : vector<2x128xf32>
    %118 = tpu.matmul %116, %117, %cst_48 {dimension_numbers = #tpu.dot_dimension_numbers<[1], [0], [0], [1], [0, 0, 1, 1], [], []>} : vector<2x128xbf16>, vector<128x128xbf16>, vector<2x128xf32> -> vector<2x128xf32>
    %c0_49 = arith.constant 0 : index
    %c0_50 = arith.constant 0 : index
    %119 = vector.load %arg13[%c0_49, %c0_50] : memref<1x128xf32, #tpu.memory_space<vmem>>, vector<1x128xf32>
    %120 = vector.broadcast %119 : vector<1x128xf32> to vector<2x128xf32>
    %121 = arith.addf %118, %120 : vector<2x128xf32>
    %c0_51 = arith.constant 0 : index
    %c0_52 = arith.constant 0 : index
    %122 = vector.load %arg14[%c0_51, %c0_52] : memref<2x128xf32, #tpu.memory_space<vmem>>, vector<2x128xf32>
    tpu.vector_store %arg14[%c0_51, %c0_52], %121 {strides = array<i32>} : memref<2x128xf32, #tpu.memory_space<vmem>>, vector<2x128xf32>,
    return
  }
}

</mosaic_0001>

<bundles_post_ra>
// kernel: mul.4
= control target key start
LH: loop header
LB: loop body
LE: loop exit
PB: predicated region body
PF: predicated region fallthrough
CT: control target
= control target key end

     0   :  { %vm39_vm0 = vcmask 261120   ;;  %s170_s0 = inlined_call_operand.vmem [shape: f32[3,3,3,32], index: 0, kind: input, shape index: {}]   ;;  %s171_s1 = inlined_call_operand.vmem [shape: f32[27,32], index: 1, kind: output, shape index: {}]  }
   0x1   :  { %v81_v0 = vld [vmem:[%s170_s0 + $0x20] sm:$0xf]  ;;  %v82_v1 = vld [vmem:[%s170_s0 + $0x1c] sm:$0xf]  ;;  %v83_v2 = vld [vmem:[%s170_s0 + $0x18] sm:$0xf] }
   0x2   :  { %7 = vst [vmem:[#allocation0 + $0x10] sm:$0xf] %v81_v0  ;;  %v84_v3 = vld [vmem:[%s170_s0 + $0x14] sm:$0xf]  ;;  %v85_v4 = vld [vmem:[%s170_s0 + $0x10] sm:$0xf] }
   0x3   :  { %11 = vst [vmem:[#allocation0 + $0x40] sm:$0xf] %v82_v1  ;;  %v86_v5 = vld [vmem:[%s170_s0 + $0xc] sm:$0xf]  ;;  %v87_v6 = vld [vmem:[%s170_s0 + $0x8] sm:$0xf] }
   0x4   :  { %15 = vst [vmem:[#allocation0 + $0x28] sm:$0xf] %v83_v2  ;;  %v88_v7 = vld [vmem:[%s170_s0 + $0x4] sm:$0xf]  ;;  %v36_v8 = vld [vmem:[%s170_s0] sm:$0xf] }
   0x5   :  { %19 = vst [vmem:[#allocation0 + $0x30] sm:$0xf] %v84_v3 }
   0x6   :  { %23 = vst [vmem:[#allocation0 + $0x20] sm:$0xf] %v85_v4 }
   0x7   :  { %27 = vst [vmem:[#allocation0 + $0x18] sm:$0xf] %v86_v5 }
   0x8   :  { %31 = vst [vmem:[#allocation0] sm:$0xf] %v87_v6 }
   0x9   :  { %35 = vst [vmem:[#allocation0 + $0x8] sm:$0xf] %v88_v7  ;;  %v77_v16 = vld [vmem:[#allocation0 + $0x10] sm:$0x7]  }
   0xa   :  { %37 = vst [vmem:[#allocation0 + $0x38] sm:$0xf] %v36_v8  ;;  %v72_v9 = vld [vmem:[#allocation0 + $0x40] sm:$0x7]  }
   0xb   :  { %v67_v10 = vld [vmem:[#allocation0 + $0x28] sm:$0x7]   ;;  %95 = vst.msk [vmem:[%s171_s1 + $0x15] sm:$0x7] %vm39_vm0, %v72_v9  }
   0xc   :  { %v62_v11 = vld [vmem:[#allocation0 + $0x30] sm:$0x7]   ;;  %94 = vst.msk [vmem:[%s171_s1 + $0x12] sm:$0x7] %vm39_vm0, %v67_v10  }
   0xd   :  { %v57_v12 = vld [vmem:[#allocation0 + $0x20] sm:$0x7]   ;;  %93 = vst.msk [vmem:[%s171_s1 + $0xf] sm:$0x7] %vm39_vm0, %v62_v11  }
   0xe   :  { %v52_v13 = vld [vmem:[#allocation0 + $0x18] sm:$0x7]   ;;  %92 = vst.msk [vmem:[%s171_s1 + $0xc] sm:$0x7] %vm39_vm0, %v57_v12  }
   0xf   :  { %v47_v14 = vld [vmem:[#allocation0] sm:$0x7]   ;;  %91 = vst.msk [vmem:[%s171_s1 + $0x9] sm:$0x7] %vm39_vm0, %v52_v13  }
  0x10   :  { %v42_v15 = vld [vmem:[#allocation0 + $0x8] sm:$0x7]   ;;  %90 = vst.msk [vmem:[%s171_s1 + $0x6] sm:$0x7] %vm39_vm0, %v47_v14  }
  0x11   :  { %v38_v17 = vld [vmem:[#allocation0 + $0x38] sm:$0x7]   ;;  %89 = vst.msk [vmem:[%s171_s1 + $0x3] sm:$0x7] %vm39_vm0, %v42_v15  }
  0x12   :  { %40 = vst.msk [vmem:[%s171_s1] sm:$0x7] %vm39_vm0, %v38_v17  }
  0x13   :  { %96 = vst.msk [vmem:[%s171_s1 + $0x18] sm:$0x7] %vm39_vm0, %v77_v16  }

// kernel: tile.373
= control target key start
LH: loop header
LB: loop body
LE: loop exit
PB: predicated region body
PF: predicated region fallthrough
CT: control target
= control target key end

     0   :  { %s22_s0 = inlined_call_operand.vmem [shape: f32[32], index: 0, kind: input, shape index: {}]   ;;  %s23_s1 = inlined_call_operand.vmem [shape: f32[8,32], index: 1, kind: output, shape index: {}]  }
   0x1   :  { %v4_v0 = vld [vmem:[%s22_s0] ss:$0 sm:$0xff] }
   0x2   :  { %5 = vst [vmem:[%s23_s1] sm:$0xff] %v4_v0 }

// kernel: tile.386
= control target key start
LH: loop header
LB: loop body
LE: loop exit
PB: predicated region body
PF: predicated region fallthrough
CT: control target
= control target key end

     0   :  { %s7_s6 = smov 3  ;;  %s46_s9 = smov 96   ;;  %vm4_vm0 = vcmask 261120   ;;  %vm11_vm1 = vcmask 1048320   ;;  %vm18_vm2 = vcmask 785920   ;;  %vm25_vm3 = vcmask 523520   ;;  %s77_s0 = inlined_call_operand.vmem [shape: f32[8,32], index: 0, kind: input, shape index: {}]   ;;  %s78_s1 = inlined_call_operand.vmem [shape: f32[1,256], index: 1, kind: output, shape index: {}]  }
   0x1   :  { %v39_v0 = vld [vmem:[%s77_s0 + $0x3] ss:$4 sm:%s7_s6]   ;;  %s21_s10 = smov 3  ;;  %s14_s13 = smov 3 }
   0x2   :  { %9 = vrot.lane.b32.xlu0 %v39_v0, %s46_s9  ;;  %v41_v1 = vld [vmem:[%s77_s0 + $0x1] ss:$4 sm:%s21_s10]   ;;  %s47_s14 = smov 32   ;;  %s48_s17 = smov 64  }
   0x3   :  { %23 = vrot.lane.b32.xlu1 %v41_v1, %s47_s14  ;;  %v40_v2 = vld [vmem:[%s77_s0 + $0x2] ss:$4 sm:%s14_s13]   ;;  %s2_s18 = smov 3 }
   0x4   :  { %v3_v3 = vld [vmem:[%s77_s0] ss:$4 sm:%s2_s18]  }
   0x5   :  { %5 = vst.msk [vmem:[#allocation0] ss:$8 sm:$0x3] %vm4_vm0, %v3_v3  }
   0xa   :  { %16 = vrot.lane.b32.xlu0 %v40_v2, %s48_s17 }
  0x74   :  { %v10_v4 = vpop.permute.xlu0 %9  }
  0x75   :  { %12 = vst.msk [vmem:[#allocation0] ss:$8 sm:$0x3] %vm11_vm1, %v10_v4   ;;  %v24_v5 = vpop.permute.xlu1 %23  }
  0x7c   :  { %v17_v6 = vpop.permute.xlu0 %16  }
  0x7d   :  { %19 = vst.msk [vmem:[#allocation0] ss:$8 sm:$0x3] %vm18_vm2, %v17_v6  }
  0x7e   :  { %26 = vst.msk [vmem:[#allocation0] ss:$8 sm:$0x3] %vm25_vm3, %v24_v5  }
  0x85   :  { %v29_v7 = vld [vmem:[#allocation0] sm:$0x1]  ;;  %v34_v8 = vld [vmem:[#allocation0 + $0x8] sm:$0x1] }
  0x86   :  { %32 = vst [vmem:[%s78_s1] sm:$0x1] %v29_v7 }
  0x87   :  { %42 = vst [vmem:[%s78_s1 + $0x1] sm:$0x1] %v34_v8 }

// kernel: forward.3
= control target key start
LH: loop header
LB: loop body
LE: loop exit
PB: predicated region body
PF: predicated region fallthrough
CT: control target
= control target key end

     0   :  { %vm329_vm0 = vcmask 1040384   ;;  %vm533_vm1 = vcmask 1046528   ;;  %vm370_vm2 = vcmask 261120   ;;  %vm416_vm3 = vcmask 785408   ;;  %s2089_s1 = inlined_call_operand.vmem [shape: bf16[256,256], index: 1, kind: input, shape index: {}]   ;;  %s2090_s4 = inlined_call_operand.vmem [shape: f32[16,3], index: 4, kind: input, shape index: {}]   ;;  %s2091_s0 = inlined_call_operand.vmem [shape: bf16[16,256], index: 0, kind: input, shape index: {}]   ;;  %s2092_s2 = inlined_call_operand.vmem [shape: f32[1,256], index: 2, kind: input, shape index: {}]   ;;  %s2093_s3 = inlined_call_operand.vmem [shape: f32[1,256], index: 3, kind: input, shape index: {}]   ;;  %s2094_s5 = inlined_call_operand.vmem [shape: f32[9,256], index: 5, kind: input, shape index: {}]   ;;  %s2095_s7 = inlined_call_operand.vmem [shape: bf16[256,256], index: 7, kind: input, shape index: {}]   ;;  %s2096_s6 = inlined_call_operand.vmem [shape: f32[1,256], index: 6, kind: input, shape index: {}]   ;;  %s2097_s8 = inlined_call_operand.vmem [shape: f32[1,256], index: 8, kind: input, shape index: {}]   ;;  %s2098_s9 = inlined_call_operand.vmem [shape: f32[1,256], index: 9, kind: input, shape index: {}]   ;;  %s2099_s10 = inlined_call_operand.vmem [shape: f32[1,256], index: 10, kind: input, shape index: {}]   ;;  %s2100_s11 = inlined_call_operand.vmem [shape: f32[1,256], index: 11, kind: input, shape index: {}]   ;;  %s2101_s12 = inlined_call_operand.vmem [shape: bf16[16,256], index: 12, kind: output, shape index: {}]  }
   0x1   :  { %v1021_v0 = vld [vmem:[%s2089_s1 + $0x70] sm:$0xf]  ;;  %v1244_v1 = vld [vmem:[%s2089_s1 + $0x74] sm:$0xf0]  ;;  %v1243_v5 = vld [vmem:[%s2089_s1 + $0x74] sm:$0xf] }
   0x2   :  { %v1085_v2 = vld [vmem:[%s2089_s1 + $0xf0] sm:$0xf]  ;;  %v1022_v3 = vor.u32 %v1244_v1, %v1021_v0  ;;  %v1260_v4 = vld [vmem:[%s2089_s1 + $0xf4] sm:$0xf0]  ;;  %v1023_v6 = vld [vmem:[%s2089_s1 + $0x78] sm:$0xf0] }
   0x3   :  { %v1086_v7 = vor.u32 %v1260_v4, %v1085_v2  ;;  %v1026_v8 = vor.u32 %v1243_v5, %v1023_v6  ;;  %v1259_v9 = vld [vmem:[%s2089_s1 + $0xf4] sm:$0xf]  ;;  %v1087_v10 = vld [vmem:[%s2089_s1 + $0xf8] sm:$0xf0]  ;;  %v1013_v11 = vld [vmem:[%s2089_s1 + $0x60] sm:$0xf] }
   0x4   :  { %245 = vmatpush.bf16.msra.mxu0 %v1022_v3  ;;  %v1090_v12 = vor.u32 %v1259_v9, %v1087_v10  ;;  %v1242_v13 = vld [vmem:[%s2089_s1 + $0x64] sm:$0xf0]  ;;  %v1077_v14 = vld [vmem:[%s2089_s1 + $0xe0] sm:$0xf]  ;;  %v1241_v18 = vld [vmem:[%s2089_s1 + $0x64] sm:$0xf] }
   0x5   :  { %v1258_v15 = vld [vmem:[%s2089_s1 + $0xe4] sm:$0xf0]  ;;  %259 = vmatpush.bf16.msra.mxu1 %v1086_v7  ;;  %273 = vmatpush.bf16.msra.mxu2 %v1026_v8  ;;  %v1014_v16 = vor.u32 %v1242_v13, %v1013_v11  ;;  %v1015_v19 = vld [vmem:[%s2089_s1 + $0x68] sm:$0xf0]  ;;  %v1257_v20 = vld [vmem:[%s2089_s1 + $0xe4] sm:$0xf] }
   0x6   :  { %v1078_v17 = vor.u32 %v1258_v15, %v1077_v14  ;;  %287 = vmatpush.bf16.msra.mxu3 %v1090_v12  ;;  %v1018_v21 = vor.u32 %v1241_v18, %v1015_v19  ;;  %v1079_v22 = vld [vmem:[%s2089_s1 + $0xe8] sm:$0xf0]  ;;  %v1005_v23 = vld [vmem:[%s2089_s1 + $0x50] sm:$0xf]  ;;  %v1240_v24 = vld [vmem:[%s2089_s1 + $0x54] sm:$0xf0] }
   0x7   :  { %v1082_v25 = vor.u32 %v1257_v20, %v1079_v22  ;;  %v1069_v26 = vld [vmem:[%s2089_s1 + $0xd0] sm:$0xf]  ;;  %v1256_v27 = vld [vmem:[%s2089_s1 + $0xd4] sm:$0xf0]  ;;  %v1239_v28 = vld [vmem:[%s2089_s1 + $0x54] sm:$0xf]  ;;  %v1006_v29 = vor.u32 %v1240_v24, %v1005_v23 }
   0x8   :  { %246 = vmatpush.bf16.msra.mxu0 %v1014_v16  ;;  %v1007_v30 = vld [vmem:[%s2089_s1 + $0x58] sm:$0xf0]  ;;  %v1255_v31 = vld [vmem:[%s2089_s1 + $0xd4] sm:$0xf]  ;;  %v1070_v33 = vor.u32 %v1256_v27, %v1069_v26  ;;  %v997_v35 = vld [vmem:[%s2089_s1 + $0x40] sm:$0xf] }
   0x9   :  { %v1071_v32 = vld [vmem:[%s2089_s1 + $0xd8] sm:$0xf0]  ;;  %260 = vmatpush.bf16.msra.mxu1 %v1078_v17  ;;  %274 = vmatpush.bf16.msra.mxu2 %v1018_v21  ;;  %v1010_v34 = vor.u32 %v1239_v28, %v1007_v30  ;;  %v1238_v36 = vld [vmem:[%s2089_s1 + $0x44] sm:$0xf0]  ;;  %v1061_v37 = vld [vmem:[%s2089_s1 + $0xc0] sm:$0xf] }
   0xa   :  { %288 = vmatpush.bf16.msra.mxu3 %v1082_v25  ;;  %v1074_v38 = vor.u32 %v1255_v31, %v1071_v32  ;;  %v1254_v39 = vld [vmem:[%s2089_s1 + $0xc4] sm:$0xf0]  ;;  %v1237_v40 = vld [vmem:[%s2089_s1 + $0x44] sm:$0xf]  ;;  %v999_v41 = vld [vmem:[%s2089_s1 + $0x48] sm:$0xf0]  ;;  %v998_v44 = vor.u32 %v1238_v36, %v997_v35 }
   0xb   :  { %v1253_v42 = vld [vmem:[%s2089_s1 + $0xc4] sm:$0xf]  ;;  %v1063_v43 = vld [vmem:[%s2089_s1 + $0xc8] sm:$0xf0]  ;;  %v1062_v45 = vor.u32 %v1254_v39, %v1061_v37  ;;  %v1002_v46 = vor.u32 %v1237_v40, %v999_v41  ;;  %v989_v47 = vld [vmem:[%s2089_s1 + $0x30] sm:$0xf] }
   0xc   :  { %247 = vmatpush.bf16.msra.mxu0 %v1006_v29  ;;  %v1236_v48 = vld [vmem:[%s2089_s1 + $0x34] sm:$0xf0]  ;;  %v1053_v49 = vld [vmem:[%s2089_s1 + $0xb0] sm:$0xf]  ;;  %v1066_v50 = vor.u32 %v1253_v42, %v1063_v43  ;;  %v1235_v52 = vld [vmem:[%s2089_s1 + $0x34] sm:$0xf] }
   0xd   :  { %261 = vmatpush.bf16.msra.mxu1 %v1070_v33  ;;  %275 = vmatpush.bf16.msra.mxu2 %v1010_v34  ;;  %v1252_v51 = vld [vmem:[%s2089_s1 + $0xb4] sm:$0xf0]  ;;  %v991_v53 = vld [vmem:[%s2089_s1 + $0x38] sm:$0xf0]  ;;  %v1251_v54 = vld [vmem:[%s2089_s1 + $0xb4] sm:$0xf]  ;;  %v990_v56 = vor.u32 %v1236_v48, %v989_v47 }
   0xe   :  { %289 = vmatpush.bf16.msra.mxu3 %v1074_v38  ;;  %v1055_v55 = vld [vmem:[%s2089_s1 + $0xb8] sm:$0xf0]  ;;  %v1054_v57 = vor.u32 %v1252_v51, %v1053_v49  ;;  %v994_v58 = vor.u32 %v1235_v52, %v991_v53  ;;  %v981_v59 = vld [vmem:[%s2089_s1 + $0x20] sm:$0xf]  ;;  %v1234_v60 = vld [vmem:[%s2089_s1 + $0x24] sm:$0xf0] }
   0xf   :  { %v1045_v61 = vld [vmem:[%s2089_s1 + $0xa0] sm:$0xf]  ;;  %v1058_v62 = vor.u32 %v1251_v54, %v1055_v55  ;;  %v1250_v63 = vld [vmem:[%s2089_s1 + $0xa4] sm:$0xf0]  ;;  %v1233_v0 = vld [vmem:[%s2089_s1 + $0x24] sm:$0xf]  ;;  %v982_v4 = vor.u32 %v1234_v60, %v981_v59 }
  0x10   :  { %248 = vmatpush.bf16.msra.mxu0 %v998_v44  ;;  %v983_v1 = vld [vmem:[%s2089_s1 + $0x28] sm:$0xf0]  ;;  %v1249_v2 = vld [vmem:[%s2089_s1 + $0xa4] sm:$0xf]  ;;  %v1046_v5 = vor.u32 %v1250_v63, %v1045_v61  ;;  %v973_v7 = vld [vmem:[%s2089_s1 + $0x10] sm:$0xf] }
  0x11   :  { %262 = vmatpush.bf16.msra.mxu1 %v1062_v45  ;;  %276 = vmatpush.bf16.msra.mxu2 %v1002_v46  ;;  %v1047_v3 = vld [vmem:[%s2089_s1 + $0xa8] sm:$0xf0]  ;;  %v986_v6 = vor.u32 %v1233_v0, %v983_v1  ;;  %v1232_v8 = vld [vmem:[%s2089_s1 + $0x14] sm:$0xf0]  ;;  %v1037_v9 = vld [vmem:[%s2089_s1 + $0x90] sm:$0xf] }
  0x12   :  { %290 = vmatpush.bf16.msra.mxu3 %v1066_v50  ;;  %v1050_v10 = vor.u32 %v1249_v2, %v1047_v3  ;;  %v1248_v11 = vld [vmem:[%s2089_s1 + $0x94] sm:$0xf0]  ;;  %v1231_v12 = vld [vmem:[%s2089_s1 + $0x14] sm:$0xf]  ;;  %v975_v13 = vld [vmem:[%s2089_s1 + $0x18] sm:$0xf0]  ;;  %v974_v16 = vor.u32 %v1232_v8, %v973_v7 }
  0x13   :  { %v1247_v14 = vld [vmem:[%s2089_s1 + $0x94] sm:$0xf]  ;;  %v1039_v15 = vld [vmem:[%s2089_s1 + $0x98] sm:$0xf0]  ;;  %v965_v17 = vld [vmem:[%s2089_s1] sm:$0xf]  ;;  %v1038_v20 = vor.u32 %v1248_v11, %v1037_v9  ;;  %v978_v21 = vor.u32 %v1231_v12, %v975_v13 }
  0x14   :  { %249 = vmatpush.bf16.msra.mxu0 %v990_v56  ;;  %v1302_v18 = vmov 1   ;;  %v342_v19 = vld [vmem:[%s2090_s4] sm:$0xff]  ;;  %v1230_v22 = vld [vmem:[%s2089_s1 + $0x4] sm:$0xf0]  ;;  %v1042_v24 = vor.u32 %v1247_v14, %v1039_v15  ;;  %v967_v27 = vld [vmem:[%s2089_s1 + $0x8] sm:$0xf0] }
  0x15   :  { %263 = vmatpush.bf16.msra.mxu1 %v1054_v57  ;;  %277 = vmatpush.bf16.msra.mxu2 %v994_v58  ;;  %v1029_v23 = vld [vmem:[%s2089_s1 + $0x80] sm:$0xf]  ;;  %v1246_v25 = vld [vmem:[%s2089_s1 + $0x84] sm:$0xf0]  ;;  %v1229_v26 = vld [vmem:[%s2089_s1 + $0x4] sm:$0xf]  ;;  %v966_v31 = vor.u32 %v1230_v22, %v965_v17 }
  0x16   :  { %291 = vmatpush.bf16.msra.mxu3 %v1058_v62  ;;  %1299 = vset.pattern.permute.xlu1 %v1302_v18  ;;  %v1303_v28 = vmov 0   ;;  %v1245_v29 = vld [vmem:[%s2089_s1 + $0x84] sm:$0xf]  ;;  %v1031_v30 = vld [vmem:[%s2089_s1 + $0x88] sm:$0xf0]  ;;  %v1304_v34 = vmov 2   ;;  %v1030_v35 = vor.u32 %v1246_v25, %v1029_v23  ;;  %v970_v36 = vor.u32 %v1229_v26, %v967_v27 }
  0x17   :  { %1298 = vset.pattern.permute.xlu0 %v1303_v28  ;;  %441 = vperm.xlu1 %1299, %v342_v19   ;;  %v957_v32 = vld [vmem:[%s2091_s0] sm:$0xf]  ;;  %v1228_v33 = vld [vmem:[%s2091_s0 + $0x4] sm:$0xf0]  ;;  %v1227_v37 = vld [vmem:[%s2091_s0 + $0x4] sm:$0xf]  ;;  %v1034_v39 = vor.u32 %v1245_v29, %v1031_v30 }
  0x18   :  { %250 = vmatpush.bf16.msra.mxu0 %v982_v4  ;;  %346 = vperm.xlu0 %1298, %v342_v19   ;;  %v959_v38 = vld [vmem:[%s2091_s0 + $0x8] sm:$0xf0]  ;;  %v958_v40 = vor.u32 %v1228_v33, %v957_v32  ;;  %v301_v43 = vld [vmem:[%s2092_s2] sm:$0x3]  ;;  %s1305_s2 = smov 96  }
  0x19   :  { %264 = vmatpush.bf16.msra.mxu1 %v1046_v5  ;;  %278 = vmatpush.bf16.msra.mxu2 %v986_v6  ;;  %v962_v41 = vor.u32 %v1227_v37, %v959_v38  ;;  %v343_v42 = vld [vmem:[%s2090_s4 + $0x8] sm:$0xff]  ;;  %v311_v44 = vld [vmem:[%s2093_s3] sm:$0x3]  ;;  %v303_v46 = vperm.slane %v301_v43, 0  ;;  %v304_v54 = vperm.slane %v301_v43, 1  ;;  %s1306_s3 = smov 32  }
  0x1a   :  { %292 = vmatpush.bf16.msra.mxu3 %v1050_v10  ;;  %1300 = vset.pattern.permute.xlu2 %v1304_v34  ;;  %v313_v49 = vperm.slane %v311_v44, 0  ;;  %v314_v59 = vperm.slane %v311_v44, 1 }
  0x1b   :  { %547 = vperm.xlu2 %1300, %v342_v19  }
  0x1c   :  { %251 = vmatpush.bf16.msra.mxu0 %v974_v16 }
  0x1d   :  { %265 = vmatpush.bf16.msra.mxu1 %v1038_v20  ;;  %279 = vmatpush.bf16.msra.mxu2 %v978_v21 }
  0x1e   :  { %293 = vmatpush.bf16.msra.mxu3 %v1042_v24 }
  0x1f   :  { %445 = vperm.xlu1 %1299, %v343_v42  }
  0x20   :  { %252 = vmatpush.bf16.msra.mxu0 %v966_v31  ;;  %351 = vperm.xlu0 %1298, %v343_v42  }
  0x21   :  { %266 = vmatpush.bf16.msra.mxu1 %v1030_v35  ;;  %280 = vmatpush.bf16.msra.mxu2 %v970_v36 }
  0x22   :  { %294 = vmatpush.bf16.msra.mxu3 %v1034_v39 }
  0x23   :  { %253 = vmatmul.bf16.vlgmr.msra.gmra.mxu0 %v958_v40  ;;  %551 = vperm.xlu2 %1300, %v343_v42  }
  0x24   :  { %267 = vmatmul.bf16.vlgmr.msra.gmra.mxu1 %v962_v41  ;;  %281 = vmatmul.bf16.vlgmr.msra.gmra.mxu2 %v958_v40 }
  0x25   :  { %295 = vmatmul.bf16.vlgmr.msra.gmra.mxu3 %v962_v41 }
  0x28   :  { %1301 = vset.pattern.permute.xlu0 %v1304_v34 }
  0x75   :  { %v548_v30 = vpop.permute.xlu2 %547 }
  0x7d   :  { %v552_v36 = vpop.permute.xlu2 %551 }
  0x89   :  { %v442_v52 = vpop.permute.xlu1 %441 }
  0x8a   :  { %v347_v1 = vpop.permute.xlu0 %346 }
  0x91   :  { %v446_v9 = vpop.permute.xlu1 %445 }
  0x92   :  { %v352_v21 = vpop.permute.xlu0 %351 }
  0xa0   :  { %v254_v45 = vpop.f32.mrf.mxu0 }
  0xa1   :  { %v268_v47 = vpop.f32.mrf.mxu1 }
  0xa2   :  { %v269_v48 = vadd.f32 %v268_v47, %v254_v45 }
  0xa4   :  { %v307_v50 = vmul.f32 %v303_v46, %v269_v48 }
  0xa6   :  { %v317_v51 = vadd.f32 %v313_v49, %v307_v50  ;;  %v1685_v50 = vld [vmem:[%s2094_s5 + $0x3] ss:$8 sm:$0x3] }
  0xa7   :  { %v282_v53 = vpop.f32.mrf.mxu2 }
  0xa8   :  { %v321_v55 = vmax.f32 %v317_v51, 0.0  ;;  %v296_v56 = vpop.f32.mrf.mxu3  ;;  %v256_v57 = vpop.f32.mrf.mxu0  ;;  %v1690_v51 = vld [vmem:[%s2094_s5] ss:$8 sm:$0x3] }
  0xa9   :  { %v297_v58 = vadd.f32 %v296_v56, %v282_v53  ;;  %v270_v60 = vpop.f32.mrf.mxu1  ;;  %v1221_v53 = vld [vmem:[%s2095_s7 + $0xf0] sm:$0xf]  ;;  %v1706_v56 = vld [vmem:[%s2094_s5 + $0x2] ss:$8 sm:$0x3] }
  0xaa   :  { %v1588_v61 = vmul.f32 %v442_v52, %v321_v55  ;;  %v330_v62 = vrot.slane %v321_v55, 7  ;;  %v271_v63 = vadd.f32 %v270_v60, %v256_v57  ;;  %v534_v26 = vrot.slane %v321_v55, 1  ;;  %v1291_v55 = vld [vmem:[%s2095_s7 + $0xf4] sm:$0xf] }
  0xab   :  { %v308_v0 = vmul.f32 %v304_v54, %v297_v58  ;;  %v1223_v58 = vld [vmem:[%s2095_s7 + $0xf8] sm:$0xf0]  ;;  %v381_v60 = vperm.slane %v1690_v51, 0 }
  0xac   :  { %v340_v2 = vsel %vm329_vm0, 0.0, %v330_v62  ;;  %v309_v3 = vmul.f32 %v303_v46, %v271_v63  ;;  %502 = vrot.lane.b32.xlu0 %v1588_v61, %s1305_s2  ;;  %456 = vrot.lane.b32.xlu2 %v1588_v61, %s1306_s3  ;;  %v1677_v46 = vld [vmem:[%s2094_s5 + $0x1] ss:$8 sm:$0x3]  ;;  %v1226_v63 = vor.u32 %v1291_v55, %v1223_v58 }
  0xad   :  { %v1595_v4 = vmul.f32 %v347_v1, %v340_v2  ;;  %v318_v5 = vadd.f32 %v314_v59, %v308_v0  ;;  %v396_v48 = vperm.slane %v1677_v46, 0  ;;  %v1276_v2 = vld [vmem:[%s2095_s7 + $0x74] sm:$0xf0] }
  0xae   :  { %v319_v6 = vadd.f32 %v313_v49, %v309_v3  ;;  %v1275_v3 = vld [vmem:[%s2095_s7 + $0x74] sm:$0xf]  ;;  %889 = vmatpush.bf16.msrb.mxu3 %v1226_v63 }
  0xaf   :  { %v322_v7 = vmax.f32 %v318_v5, 0.0  ;;  %408 = vrot.lane.b32.xlu1 %v1595_v4, %s1305_s2  ;;  %v284_v13 = vpop.f32.mrf.mxu2  ;;  %v475_v5 = vperm.slane %v1685_v50, 0 }
  0xb0   :  { %v323_v8 = vmax.f32 %v319_v6, 0.0  ;;  %v298_v14 = vpop.f32.mrf.mxu3 }
  0xb1   :  { %v331_v11 = vrot.slane %v322_v7, 7  ;;  %v1605_v12 = vmul.f32 %v442_v52, %v322_v7  ;;  %v299_v16 = vadd.f32 %v298_v14, %v284_v13  ;;  %v537_v35 = vrot.slane %v322_v7, 1 }
  0xb2   :  { %v1599_v10 = vmul.f32 %v446_v9, %v323_v8  ;;  %v332_v18 = vrot.slane %v323_v8, 7  ;;  %v535_v24 = vrot.slane %v323_v8, 1  ;;  %v400_v13 = vmul.f32 %v396_v48, %v1595_v4 }
  0xb3   :  { %v341_v15 = vsel %vm329_vm0, 0.0, %v331_v11  ;;  %v310_v19 = vmul.f32 %v304_v54, %v299_v16  ;;  %v1292_v54 = vld [vmem:[%s2095_s7 + $0xf4] sm:$0xf0]  ;;  %v1290_v16 = vld [vmem:[%s2095_s7 + $0xe4] sm:$0xf0] }
  0xb4   :  { %506 = vrot.lane.b32.xlu2 %v1599_v10, %s1305_s2  ;;  %362 = vrot.lane.b32.xlu0 %v1595_v4, %s1306_s3  ;;  %v1610_v17 = vmul.f32 %v347_v1, %v341_v15  ;;  %v333_v20 = vsel %vm329_vm0, %v330_v62, %v332_v18  ;;  %v536_v27 = vsel %vm533_vm1, %v534_v26, %v535_v24  ;;  %v544_v37 = vsel %vm533_vm1, %v535_v24, 0.0  ;;  %v1157_v1 = vld [vmem:[%s2095_s7 + $0x70] sm:$0xf]  ;;  %v1289_v18 = vld [vmem:[%s2095_s7 + $0xe4] sm:$0xf] }
  0xb5   :  { %v1619_v22 = vmul.f32 %v352_v21, %v333_v20  ;;  %v320_v23 = vadd.f32 %v314_v59, %v310_v19  ;;  %v1634_v31 = vmul.f32 %v548_v30, %v536_v27  ;;  %v1650_v40 = vmul.f32 %v552_v36, %v544_v37  ;;  %v1714_v59 = vld [vmem:[%s2094_s5 + $0x4] ss:$8 sm:$0x3]  ;;  %v1149_v27 = vld [vmem:[%s2095_s7 + $0x60] sm:$0xf] }
  0xb6   :  { %v1222_v57 = vor.u32 %v1292_v54, %v1221_v53  ;;  %v428_v62 = vperm.slane %v1706_v56, 0  ;;  %v1158_v8 = vor.u32 %v1276_v2, %v1157_v1  ;;  %v1215_v19 = vld [vmem:[%s2095_s7 + $0xe8] sm:$0xf0]  ;;  %v490_v24 = vperm.slane %v1714_v59, 0  ;;  %v1207_v53 = vld [vmem:[%s2095_s7 + $0xd8] sm:$0xf0] }
  0xb7   :  { %504 = vrot.lane.b32.xlu1 %v1605_v12, %s1305_s2  ;;  %v324_v25 = vmax.f32 %v320_v23, 0.0  ;;  %v1218_v23 = vor.u32 %v1289_v18, %v1215_v19  ;;  %v1141_v2 = vld [vmem:[%s2095_s7 + $0x50] sm:$0xf] }
  0xb8   :  { %861 = vmatpush.bf16.msrb.mxu1 %v1222_v57  ;;  %847 = vmatpush.bf16.msrb.mxu0 %v1158_v8  ;;  %v494_v58 = vmul.f32 %v490_v24, %v1588_v61  ;;  %v1143_v61 = vld [vmem:[%s2095_s7 + $0x58] sm:$0xf0]  ;;  %v1197_v8 = vld [vmem:[%s2095_s7 + $0xc0] sm:$0xf] }
  0xb9   :  { %v1628_v28 = vmul.f32 %v446_v9, %v324_v25  ;;  %v334_v29 = vrot.slane %v324_v25, 7  ;;  %v538_v34 = vrot.slane %v324_v25, 1  ;;  %v1159_v9 = vld [vmem:[%s2095_s7 + $0x78] sm:$0xf0]  ;;  %890 = vmatpush.bf16.msrb.mxu3 %v1218_v23  ;;  %v1270_v23 = vld [vmem:[%s2095_s7 + $0x44] sm:$0xf0] }
  0xba   :  { %v1162_v15 = vor.u32 %v1275_v3, %v1159_v9  ;;  %v1272_v3 = vld [vmem:[%s2095_s7 + $0x54] sm:$0xf0]  ;;  %v1286_v9 = vld [vmem:[%s2095_s7 + $0xc4] sm:$0xf0] }
  0xbb   :  { %v335_v32 = vsel %vm329_vm0, %v331_v11, %v334_v29  ;;  %v539_v38 = vsel %vm533_vm1, %v537_v35, %v538_v34  ;;  %v545_v39 = vsel %vm533_vm1, %v538_v34, 0.0  ;;  %v1213_v11 = vld [vmem:[%s2095_s7 + $0xe0] sm:$0xf]  ;;  %v1274_v29 = vld [vmem:[%s2095_s7 + $0x64] sm:$0xf0] }
  0xbc   :  { %410 = vrot.lane.b32.xlu2 %v1610_v17, %s1305_s2  ;;  %458 = vrot.lane.b32.xlu0 %v1605_v12, %s1306_s3  ;;  %v1639_v33 = vmul.f32 %v352_v21, %v335_v32  ;;  %v1652_v41 = vmul.f32 %v548_v30, %v539_v38  ;;  %v1658_v42 = vmul.f32 %v552_v36, %v545_v39  ;;  %v1273_v32 = vld [vmem:[%s2095_s7 + $0x64] sm:$0xf]  ;;  %v1151_v34 = vld [vmem:[%s2095_s7 + $0x68] sm:$0xf0] }
  0xbd   :  { %v1214_v21 = vor.u32 %v1290_v16, %v1213_v11  ;;  %875 = vmatpush.bf16.msrb.mxu2 %v1162_v15  ;;  %v1150_v30 = vor.u32 %v1274_v29, %v1149_v27  ;;  %v1205_v35 = vld [vmem:[%s2095_s7 + $0xd0] sm:$0xf]  ;;  %v1154_v38 = vor.u32 %v1273_v32, %v1151_v34  ;;  %v1288_v39 = vld [vmem:[%s2095_s7 + $0xd4] sm:$0xf0]  ;;  %v1285_v15 = vld [vmem:[%s2095_s7 + $0xc4] sm:$0xf] }
  0xbe   :  { %v1206_v55 = vor.u32 %v1288_v39, %v1205_v35  ;;  %v1199_v16 = vld [vmem:[%s2095_s7 + $0xc8] sm:$0xf0]  ;;  %v1189_v29 = vld [vmem:[%s2095_s7 + $0xb0] sm:$0xf]  ;;  %v1284_v32 = vld [vmem:[%s2095_s7 + $0xb4] sm:$0xf0] }
  0xbf   :  { %460 = vrot.lane.b32.xlu1 %v1599_v10, %s1306_s3  ;;  %862 = vmatpush.bf16.msrb.mxu1 %v1214_v21  ;;  %v1202_v19 = vor.u32 %v1285_v15, %v1199_v16  ;;  %v1133_v21 = vld [vmem:[%s2095_s7 + $0x40] sm:$0xf]  ;;  %v1135_v27 = vld [vmem:[%s2095_s7 + $0x48] sm:$0xf0]  ;;  %v1283_v34 = vld [vmem:[%s2095_s7 + $0xb4] sm:$0xf] }
  0xc0   :  { %848 = vmatpush.bf16.msrb.mxu0 %v1150_v30  ;;  %v1191_v35 = vld [vmem:[%s2095_s7 + $0xb8] sm:$0xf0]  ;;  %v476_v16 = vperm.slane %v1685_v50, 1  ;;  %v1098_v50 = vld [vmem:[%s2094_s5 + $0x10] ss:$8 sm:$0x3] }
  0xc1   :  { %876 = vmatpush.bf16.msrb.mxu2 %v1154_v38  ;;  %v1190_v38 = vor.u32 %v1284_v32, %v1189_v29  ;;  %v1194_v39 = vor.u32 %v1283_v34, %v1191_v35  ;;  %v1117_v29 = vld [vmem:[%s2095_s7 + $0x20] sm:$0xf]  ;;  %v1265_v32 = vld [vmem:[%s2095_s7 + $0x24] sm:$0xf] }
  0xc3   :  { %863 = vmatpush.bf16.msrb.mxu1 %v1206_v55  ;;  %v1268_v55 = vld [vmem:[%s2095_s7 + $0x34] sm:$0xf0] }
  0xc4   :  { %412 = vrot.lane.b32.xlu0 %v1619_v22, %s1305_s2  ;;  %366 = vrot.lane.b32.xlu2 %v1619_v22, %s1306_s3 }
  0xc7   :  { %364 = vrot.lane.b32.xlu1 %v1610_v17, %s1306_s3 }
  0xcc   :  { %508 = vrot.lane.b32.xlu0 %v1628_v28, %s1305_s2  ;;  %462 = vrot.lane.b32.xlu2 %v1628_v28, %s1306_s3 }
  0xcf   :  { %562 = vrot.lane.b32.xlu1 %v1634_v31, %s1306_s3 }
  0xd4   :  { %368 = vrot.lane.b32.xlu0 %v1639_v33, %s1306_s3  ;;  %608 = vrot.lane.b32.xlu2 %v1634_v31, %s1305_s2 }
  0xd7   :  { %414 = vrot.lane.b32.xlu1 %v1639_v33, %s1305_s2 }
  0xdc   :  { %566 = vrot.lane.b32.xlu0 %v1650_v40, %s1306_s3  ;;  %564 = vrot.lane.b32.xlu2 %v1652_v41, %s1306_s3 }
  0xdf   :  { %568 = vrot.lane.b32.xlu1 %v1658_v42, %s1306_s3 }
  0xe4   :  { %610 = vrot.lane.b32.xlu0 %v1652_v41, %s1305_s2  ;;  %614 = vrot.lane.b32.xlu2 %v1658_v42, %s1305_s2 }
  0xe7   :  { %612 = vrot.lane.b32.xlu1 %v1650_v40, %s1305_s2 }
 0x106   :  { %v1668_v43 = vpop.permute.xlu2 %456 }
 0x107   :  { %v470_v20 = vsel %vm370_vm2, 0.0, %v1668_v43 }
 0x108   :  { %v479_v36 = vmul.f32 %v475_v5, %v470_v20  ;;  %v1825_v20 = vld [vmem:[%s2094_s5 + $0x7] ss:$8 sm:$0x3] }
 0x10e   :  { %v1670_v44 = vpop.permute.xlu2 %506 }
 0x116   :  { %v1672_v45 = vpop.permute.xlu2 %410 }
 0x117   :  { %v423_v15 = vsel %vm416_vm3, %v1672_v45, 0.0 }
 0x11e   :  { %v1679_v47 = vpop.permute.xlu0 %502  ;;  %v1692_v52 = vpop.permute.xlu2 %366 }
 0x121   :  { %v409_v49 = vpop.permute.xlu1 %408 }
 0x122   :  { %v417_v6 = vsel %vm416_vm3, %v409_v49, %v1672_v45  ;;  %v1287_v49 = vld [vmem:[%s2095_s7 + $0xd4] sm:$0xf]  ;;  %v1898_v45 = vld [vmem:[%s2094_s5 + $0x6] ss:$8 sm:$0x3] }
 0x123   :  { %v432_v25 = vmul.f32 %v428_v62, %v417_v6  ;;  %v1210_v57 = vor.u32 %v1287_v49, %v1207_v53  ;;  %v1271_v6 = vld [vmem:[%s2095_s7 + $0x54] sm:$0xf]  ;;  %v1125_v53 = vld [vmem:[%s2095_s7 + $0x30] sm:$0xf] }
 0x125   :  { %891 = vmatpush.bf16.msrb.mxu3 %v1210_v57  ;;  %v1267_v57 = vld [vmem:[%s2095_s7 + $0x34] sm:$0xf] }
 0x126   :  { %v1718_v0 = vpop.permute.xlu0 %362  ;;  %v1787_v54 = vpop.permute.xlu2 %462 }
 0x127   :  { %v377_v7 = vsel %vm370_vm2, 0.0, %v1718_v0 }
 0x128   :  { %v385_v14 = vmul.f32 %v381_v60, %v377_v7  ;;  %v1142_v7 = vor.u32 %v1272_v3, %v1141_v2  ;;  %v382_v2 = vperm.slane %v1690_v51, 1  ;;  %v397_v3 = vperm.slane %v1677_v46, 1 }
 0x129   :  { %v1756_v4 = vpop.permute.xlu1 %504  ;;  %892 = vmatpush.bf16.msrb.mxu3 %v1202_v19 }
 0x12a   :  { %v404_v26 = vadd.f32 %v400_v13, %v385_v14  ;;  %v1146_v13 = vor.u32 %v1271_v6, %v1143_v61  ;;  %v1198_v14 = vor.u32 %v1286_v9, %v1197_v8  ;;  %849 = vmatpush.bf16.msrb.mxu0 %v1142_v7  ;;  %v1126_v6 = vor.u32 %v1268_v55, %v1125_v53  ;;  %v1127_v7 = vld [vmem:[%s2095_s7 + $0x38] sm:$0xf0]  ;;  %v1280_v53 = vld [vmem:[%s2095_s7 + $0x94] sm:$0xf0] }
 0x12b   :  { %v429_v61 = vperm.slane %v1706_v56, 1  ;;  %v1130_v9 = vor.u32 %v1267_v57, %v1127_v7  ;;  %v1279_v7 = vld [vmem:[%s2095_s7 + $0x94] sm:$0xf]  ;;  %v496_v56 = vmul.f32 %v490_v24, %v1599_v10 }
 0x12c   :  { %v436_v37 = vadd.f32 %v432_v25, %v404_v26  ;;  %877 = vmatpush.bf16.msrb.mxu2 %v1146_v13  ;;  %864 = vmatpush.bf16.msrb.mxu1 %v1198_v14  ;;  %v1134_v25 = vor.u32 %v1270_v23, %v1133_v21  ;;  %v1269_v26 = vld [vmem:[%s2095_s7 + $0x44] sm:$0xf]  ;;  %v1181_v13 = vld [vmem:[%s2095_s7 + $0xa0] sm:$0xf]  ;;  %v1282_v14 = vld [vmem:[%s2095_s7 + $0xa4] sm:$0xf0] }
 0x12d   :  { %v1138_v30 = vor.u32 %v1269_v26, %v1135_v27  ;;  %893 = vmatpush.bf16.msrb.mxu3 %v1194_v39  ;;  %v1182_v21 = vor.u32 %v1282_v14, %v1181_v13  ;;  %v1281_v23 = vld [vmem:[%s2095_s7 + $0xa4] sm:$0xf]  ;;  %v1173_v39 = vld [vmem:[%s2095_s7 + $0x90] sm:$0xf]  ;;  %v433_v13 = vmul.f32 %v429_v61, %v423_v15  ;;  %v510_v14 = vsel %vm416_vm3, %v1679_v47, %v1756_v4  ;;  %v1111_v47 = vld [vmem:[%s2095_s7 + $0x18] sm:$0xf0] }
 0x12e   :  { %v483_v63 = vadd.f32 %v479_v36, %v436_v37  ;;  %v1792_v1 = vpop.permute.xlu0 %458  ;;  %v491_v36 = vperm.slane %v1714_v59, 1  ;;  %v1855_v37 = vld [vmem:[%s2094_s5 + $0x5] ss:$8 sm:$0x3]  ;;  %850 = vmatpush.bf16.msrb.mxu0 %v1134_v25  ;;  %v628_v59 = vperm.slane %v1098_v50, 1 }
 0x12f   :  { %v521_v8 = vperm.slane %v1855_v37, 0  ;;  %v1183_v25 = vld [vmem:[%s2095_s7 + $0xa8] sm:$0xf0]  ;;  %v522_v55 = vperm.slane %v1855_v37, 1  ;;  %v639_v37 = vld [vmem:[%s2096_s6] sm:$0x3] }
 0x130   :  { %v1812_v11 = vadd.f32 %v494_v58, %v483_v63  ;;  %878 = vmatpush.bf16.msrb.mxu2 %v1138_v30  ;;  %v596_v58 = vperm.slane %v1825_v20, 0  ;;  %v1869_v63 = vpop.permute.xlu2 %608  ;;  %865 = vmatpush.bf16.msrb.mxu1 %v1190_v38  ;;  %v1186_v27 = vor.u32 %v1281_v23, %v1183_v25  ;;  %v1266_v30 = vld [vmem:[%s2095_s7 + $0x24] sm:$0xf0]  ;;  %v1119_v38 = vld [vmem:[%s2095_s7 + $0x28] sm:$0xf0] }
 0x131   :  { %v1820_v18 = vpop.permute.xlu1 %460  ;;  %v1118_v35 = vor.u32 %v1266_v30, %v1117_v29  ;;  %v1122_v57 = vor.u32 %v1265_v32, %v1119_v38  ;;  %v1263_v23 = vld [vmem:[%s2095_s7 + $0x14] sm:$0xf]  ;;  %v516_v29 = vsel %vm416_vm3, %v1756_v4, 0.0  ;;  %v495_v38 = vmul.f32 %v491_v36, %v1605_v12 }
 0x132   :  { %851 = vmatpush.bf16.msrb.mxu0 %v1126_v6  ;;  %894 = vmatpush.bf16.msrb.mxu3 %v1186_v27  ;;  %v1174_v6 = vor.u32 %v1280_v53, %v1173_v39  ;;  %v1278_v27 = vld [vmem:[%s2095_s7 + $0x84] sm:$0xf0]  ;;  %v525_v4 = vmul.f32 %v521_v8, %v510_v14  ;;  %v582_v39 = vperm.slane %v1898_v45, 1  ;;  %v1114_v53 = vor.u32 %v1263_v23, %v1111_v47  ;;  %v1261_v23 = vld [vmem:[%s2095_s7 + $0x4] sm:$0xf] }
 0x133   :  { %v597_v14 = vperm.slane %v1825_v20, 1 }
 0x134   :  { %879 = vmatpush.bf16.msrb.mxu2 %v1130_v9  ;;  %866 = vmatpush.bf16.msrb.mxu1 %v1182_v21  ;;  %v1175_v9 = vld [vmem:[%s2095_s7 + $0x98] sm:$0xf0]  ;;  %v1264_v21 = vld [vmem:[%s2095_s7 + $0x14] sm:$0xf0]  ;;  %v529_v47 = vadd.f32 %v525_v4, %v1812_v11 }
 0x136   :  { %v1857_v49 = vpop.permute.xlu0 %412  ;;  %852 = vmatpush.bf16.msrb.mxu0 %v1118_v35  ;;  %v1167_v35 = vld [vmem:[%s2095_s7 + $0x88] sm:$0xf0] }
 0x138   :  { %880 = vmatpush.bf16.msrb.mxu2 %v1122_v57  ;;  %867 = vmatpush.bf16.msrb.mxu1 %v1174_v6  ;;  %v1262_v57 = vld [vmem:[%s2095_s7 + $0x4] sm:$0xf0]  ;;  %v565_v6 = vpop.permute.xlu2 %564 }
 0x139   :  { %v365_v19 = vpop.permute.xlu1 %364 }
 0x13a   :  { %v371_v26 = vsel %vm370_vm2, %v1718_v0, %v365_v19  ;;  %v401_v0 = vmul.f32 %v397_v3, %v1610_v17  ;;  %v464_v17 = vsel %vm370_vm2, %v1668_v43, %v1792_v1  ;;  %v1178_v43 = vor.u32 %v1279_v7, %v1175_v9  ;;  %v1109_v1 = vld [vmem:[%s2095_s7 + $0x10] sm:$0xf] }
 0x13b   :  { %v386_v34 = vmul.f32 %v382_v2, %v371_v26  ;;  %v1110_v25 = vor.u32 %v1264_v21, %v1109_v1  ;;  %v1165_v26 = vld [vmem:[%s2095_s7 + $0x80] sm:$0xf]  ;;  %v480_v30 = vmul.f32 %v476_v16, %v464_v17 }
 0x13c   :  { %895 = vmatpush.bf16.msrb.mxu3 %v1178_v43  ;;  %v1101_v17 = vld [vmem:[%s2095_s7] sm:$0xf]  ;;  %v1166_v12 = vor.u32 %v1278_v27, %v1165_v26  ;;  %v526_v43 = vmul.f32 %v522_v55, %v516_v29  ;;  %881 = vmatpush.bf16.msrb.mxu2 %v1114_v53 }
 0x13d   :  { %v405_v19 = vadd.f32 %v401_v0, %v386_v34  ;;  %v581_v0 = vperm.slane %v1898_v45, 0  ;;  %v1277_v34 = vld [vmem:[%s2095_s7 + $0x84] sm:$0xf]  ;;  %853 = vmatpush.bf16.msrb.mxu0 %v1110_v25  ;;  %v1103_v25 = vld [vmem:[%s2095_s7 + $0x8] sm:$0xf0] }
 0x13e   :  { %v1947_v15 = vpop.permute.xlu0 %508  ;;  %868 = vmatpush.bf16.msrb.mxu1 %v1166_v12  ;;  %v1106_v29 = vor.u32 %v1261_v23, %v1103_v25 }
 0x13f   :  { %v437_v32 = vadd.f32 %v433_v13, %v405_v19  ;;  %v1170_v13 = vor.u32 %v1277_v34, %v1167_v35  ;;  %v1102_v19 = vor.u32 %v1262_v57, %v1101_v17 }
 0x140   :  { %882 = vmatpush.bf16.msrb.mxu2 %v1106_v29 }
 0x141   :  { %v484_v7 = vadd.f32 %v480_v30, %v437_v32  ;;  %v563_v9 = vpop.permute.xlu1 %562  ;;  %v378_v30 = vsel %vm370_vm2, 0.0, %v1692_v52  ;;  %896 = vmatpush.bf16.msrb.mxu3 %v1170_v13  ;;  %v600_v32 = vmul.f32 %v596_v58, %v1634_v31  ;;  %854 = vmatpush.bf16.msrb.mxu0 %v1102_v19  ;;  %v517_v19 = vsel %vm416_vm3, %v1947_v15, 0.0 }
 0x142   :  { %v570_v1 = vsel %vm370_vm2, %v563_v9, %v565_v6  ;;  %v576_v21 = vsel %vm370_vm2, 0.0, %v563_v9  ;;  %v387_v4 = vmul.f32 %v381_v60, %v378_v30  ;;  %v403_v6 = vmul.f32 %v397_v3, %v1639_v33 }
 0x143   :  { %v499_v26 = vadd.f32 %v495_v38, %v484_v7  ;;  %v585_v27 = vmul.f32 %v581_v0, %v576_v21  ;;  %v586_v35 = vmul.f32 %v582_v39, %v570_v1  ;;  %v601_v38 = vmul.f32 %v597_v14, %v1652_v41 }
 0x144   :  { %v402_v41 = vmul.f32 %v396_v48, %v1619_v22  ;;  %v465_v60 = vsel %vm370_vm2, %v1820_v18, %v1787_v54  ;;  %v528_v1 = vmul.f32 %v522_v55, %v517_v19  ;;  %v602_v55 = vmul.f32 %v596_v58, %v1650_v40 }
 0x145   :  { %v530_v34 = vadd.f32 %v526_v43, %v499_v26  ;;  %v589_v53 = vadd.f32 %v585_v27, %v529_v47  ;;  %v482_v54 = vmul.f32 %v476_v16, %v465_v60  ;;  %v603_v27 = vmul.f32 %v597_v14, %v1658_v42 }
 0x146   :  { %v369_v11 = vpop.permute.xlu0 %368  ;;  %v641_v58 = vperm.slane %v639_v37, 0 }
 0x147   :  { %v590_v17 = vadd.f32 %v586_v35, %v530_v34  ;;  %v372_v57 = vsel %vm370_vm2, %v1692_v52, %v369_v11  ;;  %v604_v31 = vadd.f32 %v600_v32, %v589_v53  ;;  %v471_v52 = vsel %vm370_vm2, 0.0, %v1820_v18 }
 0x148   :  { %v388_v7 = vmul.f32 %v382_v2, %v372_v57  ;;  %v406_v2 = vadd.f32 %v402_v41, %v387_v4  ;;  %v481_v48 = vmul.f32 %v475_v5, %v471_v52  ;;  %v615_v5 = vpop.permute.xlu2 %614  ;;  %v642_v32 = vperm.slane %v639_v37, 1 }
 0x149   :  { %v415_v9 = vpop.permute.xlu1 %414  ;;  %v605_v12 = vadd.f32 %v601_v38, %v590_v17 }
 0x14a   :  { %v407_v13 = vadd.f32 %v403_v6, %v388_v7  ;;  %v418_v33 = vsel %vm416_vm3, %v1857_v49, %v415_v9  ;;  %v424_v51 = vsel %vm416_vm3, %v415_v9, 0.0  ;;  %v511_v49 = vsel %vm416_vm3, %v1670_v44, %v1947_v15 }
 0x14b   :  { %v434_v46 = vmul.f32 %v428_v62, %v418_v33  ;;  %v435_v22 = vmul.f32 %v429_v61, %v424_v51  ;;  %v497_v62 = vmul.f32 %v491_v36, %v1628_v28  ;;  %v527_v15 = vmul.f32 %v521_v8, %v511_v49 }
 0x14c   :  { %v623_v28 = vsel %vm416_vm3, %v615_v5, 0.0  ;;  %v627_v8 = vperm.slane %v1098_v50, 0 }
 0x14d   :  { %v438_v18 = vadd.f32 %v434_v46, %v406_v2  ;;  %v439_v3 = vadd.f32 %v435_v22, %v407_v13  ;;  %v913_v2 = vld [vmem:[%s2098_s9] sm:$0x3] }
 0x14e   :  { %v567_v43 = vpop.permute.xlu0 %566  ;;  %v916_v50 = vperm.slane %v913_v2, 1 }
 0x14f   :  { %v485_v61 = vadd.f32 %v481_v48, %v438_v18  ;;  %v486_v16 = vadd.f32 %v482_v54, %v439_v3  ;;  %v577_v44 = vsel %vm370_vm2, 0.0, %v567_v43  ;;  %v915_v54 = vperm.slane %v913_v2, 0 }
 0x150   :  { %v587_v25 = vmul.f32 %v581_v0, %v577_v44  ;;  %v634_v0 = vmul.f32 %v628_v59, %v623_v28 }
 0x151   :  { %v500_v10 = vadd.f32 %v496_v56, %v485_v61  ;;  %v569_v24 = vpop.permute.xlu1 %568  ;;  %v501_v21 = vadd.f32 %v497_v62, %v486_v16 }
 0x152   :  { %v571_v36 = vsel %vm370_vm2, %v567_v43, %v569_v24  ;;  %v927_v43 = vld [vmem:[%s2099_s10] sm:$0x3] }
 0x153   :  { %v531_v23 = vadd.f32 %v527_v15, %v500_v10  ;;  %v532_v47 = vadd.f32 %v528_v1, %v501_v21  ;;  %v588_v26 = vmul.f32 %v582_v39, %v571_v36  ;;  %v929_v44 = vperm.slane %v927_v43, 0  ;;  %v937_v15 = vld [vmem:[%s2100_s11] sm:$0x3] }
 0x154   :  { %v930_v21 = vperm.slane %v927_v43, 1  ;;  %v939_v28 = vperm.slane %v937_v15, 0 }
 0x155   :  { %v591_v29 = vadd.f32 %v587_v25, %v531_v23  ;;  %v592_v30 = vadd.f32 %v588_v26, %v532_v47  ;;  %v940_v25 = vperm.slane %v937_v15, 1 }
 0x156   :  { %v611_v34 = vpop.permute.xlu0 %610 }
 0x157   :  { %v607_v45 = vadd.f32 %v603_v27, %v592_v30  ;;  %v616_v39 = vsel %vm416_vm3, %v1869_v63, %v611_v34  ;;  %v622_v35 = vsel %vm416_vm3, %v611_v34, 0.0  ;;  %v606_v53 = vadd.f32 %v602_v55, %v591_v29 }
 0x158   :  { %v631_v11 = vmul.f32 %v627_v8, %v616_v39  ;;  %v632_v38 = vmul.f32 %v628_v59, %v622_v35 }
 0x159   :  { %v613_v4 = vpop.permute.xlu1 %612  ;;  %v638_v40 = vadd.f32 %v634_v0, %v607_v45 }
 0x15a   :  { %v635_v17 = vadd.f32 %v631_v11, %v604_v31  ;;  %v636_v20 = vadd.f32 %v632_v38, %v605_v12  ;;  %v617_v42 = vsel %vm416_vm3, %v613_v4, %v615_v5  ;;  %v903_v31 = vld [vmem:[%s2097_s8] sm:$0x3] }
 0x15b   :  { %v633_v14 = vmul.f32 %v627_v8, %v617_v42  ;;  %v648_v57 = vadd.f32 %v642_v32, %v638_v40  ;;  %v905_v46 = vperm.slane %v903_v31, 0  ;;  %v906_v19 = vperm.slane %v903_v31, 1 }
 0x15c   :  { %v646_v6 = vadd.f32 %v642_v32, %v636_v20  ;;  %v645_v60 = vadd.f32 %v641_v58, %v635_v17 }
 0x15d   :  { %v637_v7 = vadd.f32 %v633_v14, %v606_v53  ;;  %v652_v41 = vmax.f32 %v648_v57, 0.0 }
 0x15e   :  { %v650_v9 = vmax.f32 %v646_v6, 0.0  ;;  %v649_v13 = vmax.f32 %v645_v60, 0.0 }
 0x15f   :  { %v647_v63 = vadd.f32 %v641_v58, %v637_v7 }
 0x160   :  { %v654_v52 = vpack.c.bf16 %v652_v41, %v650_v9 }
 0x161   :  { %v651_v33 = vmax.f32 %v647_v63, 0.0 }
 0x162   :  { %869 = vmatmul.bf16.vlgmr.msrb.gmra.mxu1 %v654_v52  ;;  %897 = vmatmul.bf16.vlgmr.msrb.gmra.mxu3 %v654_v52 }
 0x163   :  { %v653_v51 = vpack.c.bf16 %v651_v33, %v649_v13 }
 0x165   :  { %855 = vmatmul.bf16.vlgmr.msrb.gmra.mxu0 %v653_v51  ;;  %883 = vmatmul.bf16.vlgmr.msrb.gmra.mxu2 %v653_v51 }
 0x1df   :  { %v870_v12 = vpop.f32.mrf.mxu1 }
 0x1e2   :  { %v856_v22 = vpop.f32.mrf.mxu0 }
 0x1e3   :  { %v871_v48 = vadd.f32 %v870_v12, %v856_v22 }
 0x1e5   :  { %v909_v18 = vmul.f32 %v905_v46, %v871_v48  ;;  %v898_v3 = vpop.f32.mrf.mxu3 }
 0x1e7   :  { %v919_v49 = vadd.f32 %v915_v54, %v909_v18  ;;  %v872_v5 = vpop.f32.mrf.mxu1 }
 0x1e8   :  { %v884_v56 = vpop.f32.mrf.mxu2 }
 0x1e9   :  { %v899_v62 = vadd.f32 %v898_v3, %v884_v56  ;;  %v923_v16 = vmax.f32 %v919_v49, 0.0 }
 0x1ea   :  { %v858_v61 = vpop.f32.mrf.mxu0 }
 0x1eb   :  { %v910_v1 = vmul.f32 %v906_v19, %v899_v62  ;;  %v873_v10 = vadd.f32 %v872_v5, %v858_v61  ;;  %v933_v36 = vmul.f32 %v929_v44, %v923_v16 }
 0x1ed   :  { %v920_v24 = vadd.f32 %v916_v50, %v910_v1  ;;  %v911_v59 = vmul.f32 %v905_v46, %v873_v10  ;;  %v900_v26 = vpop.f32.mrf.mxu3  ;;  %v943_v27 = vadd.f32 %v939_v28, %v933_v36 }
 0x1ef   :  { %v924_v23 = vmax.f32 %v920_v24, 0.0  ;;  %v921_v47 = vadd.f32 %v915_v54, %v911_v59 }
 0x1f0   :  { %v886_v37 = vpop.f32.mrf.mxu2 }
 0x1f1   :  { %v934_v8 = vmul.f32 %v930_v21, %v924_v23  ;;  %v901_v55 = vadd.f32 %v900_v26, %v886_v37  ;;  %v925_v30 = vmax.f32 %v921_v47, 0.0 }
 0x1f3   :  { %v944_v29 = vadd.f32 %v940_v25, %v934_v8  ;;  %v912_v0 = vmul.f32 %v906_v19, %v901_v55  ;;  %v935_v45 = vmul.f32 %v929_v44, %v925_v30 }
 0x1f5   :  { %v947_v32 = vpack.c.bf16 %v944_v29, %v943_v27  ;;  %v922_v34 = vadd.f32 %v916_v50, %v912_v0  ;;  %v945_v53 = vadd.f32 %v939_v28, %v935_v45 }
 0x1f7   :  { %949 = vst [vmem:[%s2101_s12] sm:$0xff] %v947_v32  ;;  %v926_v39 = vmax.f32 %v922_v34, 0.0 }
 0x1f9   :  { %v936_v35 = vmul.f32 %v930_v21, %v926_v39 }
 0x1fb   :  { %v946_v11 = vadd.f32 %v940_v25, %v936_v35 }
 0x1fd   :  { %v948_v38 = vpack.c.bf16 %v946_v11, %v945_v53 }
 0x1ff   :  { %950 = vst [vmem:[%s2101_s12 + $0x8] sm:$0xff] %v948_v38 }

// kernel: tile.586
= control target key start
LH: loop header
LB: loop body
LE: loop exit
PB: predicated region body
PF: predicated region fallthrough
CT: control target
= control target key end

     0   :  { %s22_s0 = inlined_call_operand.vmem [shape: f32[64], index: 0, kind: input, shape index: {}]   ;;  %s23_s1 = inlined_call_operand.vmem [shape: f32[4,64], index: 1, kind: output, shape index: {}]  }
   0x1   :  { %v4_v0 = vld [vmem:[%s22_s0] ss:$0 sm:$0xff] }
   0x2   :  { %5 = vst [vmem:[%s23_s1] sm:$0xf] %v4_v0 }

// kernel: forward.4
= control target key start
LH: loop header
LB: loop body
LE: loop exit
PB: predicated region body
PF: predicated region fallthrough
CT: control target
= control target key end

     0   :  { %vm1198_vm0 = vcmask 1041408   ;;  %vm1280_vm1 = vcmask 1040384   ;;  %vm1513_vm2 = vcmask 1045504   ;;  %vm1433_vm3 = vcmask 1046528   ;;  %s4296_s1 = inlined_call_operand.vmem [shape: bf16[1152,256], index: 1, kind: input, shape index: {}]   ;;  %s4297_s0 = inlined_call_operand.vmem [shape: bf16[8,1152], index: 0, kind: input, shape index: {}]   ;;  %s4298_s4 = inlined_call_operand.vmem [shape: f32[8,5], index: 4, kind: input, shape index: {}]   ;;  %s4299_s2 = inlined_call_operand.vmem [shape: f32[1,256], index: 2, kind: input, shape index: {}]   ;;  %s4300_s3 = inlined_call_operand.vmem [shape: f32[1,256], index: 3, kind: input, shape index: {}]   ;;  %s4301_s5 = inlined_call_operand.vmem [shape: f32[25,256], index: 5, kind: input, shape index: {}]   ;;  %s4302_s7 = inlined_call_operand.vmem [shape: bf16[256,256], index: 7, kind: input, shape index: {}]   ;;  %s4303_s6 = inlined_call_operand.vmem [shape: f32[1,256], index: 6, kind: input, shape index: {}]   ;;  %s4304_s8 = inlined_call_operand.vmem [shape: f32[1,256], index: 8, kind: input, shape index: {}]   ;;  %s4305_s9 = inlined_call_operand.vmem [shape: f32[1,256], index: 9, kind: input, shape index: {}]   ;;  %s4306_s10 = inlined_call_operand.vmem [shape: f32[1,256], index: 10, kind: input, shape index: {}]   ;;  %s4307_s11 = inlined_call_operand.vmem [shape: f32[1,256], index: 11, kind: input, shape index: {}]   ;;  %s4308_s12 = inlined_call_operand.vmem [shape: bf16[8,256], index: 12, kind: output, shape index: {}]  }
   0x1   :  { %v1943_v0 = vld [vmem:[%s4296_s1 + $0x70] sm:$0xf]  ;;  %v2628_v1 = vld [vmem:[%s4296_s1 + $0x74] sm:$0xf0]  ;;  %v1935_v11 = vld [vmem:[%s4296_s1 + $0x60] sm:$0xf] }
   0x2   :  { %v2007_v2 = vld [vmem:[%s4296_s1 + $0xf0] sm:$0xf]  ;;  %v1944_v3 = vor.u32 %v2628_v1, %v1943_v0  ;;  %v2644_v4 = vld [vmem:[%s4296_s1 + $0xf4] sm:$0xf0]  ;;  %v2626_v13 = vld [vmem:[%s4296_s1 + $0x64] sm:$0xf0] }
   0x3   :  { %v2071_v5 = vld [vmem:[%s4296_s1 + $0x170] sm:$0xf]  ;;  %v2660_v6 = vld [vmem:[%s4296_s1 + $0x174] sm:$0xf0]  ;;  %v2008_v7 = vor.u32 %v2644_v4, %v2007_v2  ;;  %v1999_v14 = vld [vmem:[%s4296_s1 + $0xe0] sm:$0xf]  ;;  %v1936_v16 = vor.u32 %v2626_v13, %v1935_v11 }
   0x4   :  { %v2072_v8 = vor.u32 %v2660_v6, %v2071_v5  ;;  %v2135_v9 = vld [vmem:[%s4296_s1 + $0x1f0] sm:$0xf]  ;;  %v2676_v10 = vld [vmem:[%s4296_s1 + $0x1f4] sm:$0xf0]  ;;  %942 = vmatpush.bf16.msra.mxu0 %v1944_v3  ;;  %v2642_v15 = vld [vmem:[%s4296_s1 + $0xe4] sm:$0xf0] }
   0x5   :  { %v2136_v12 = vor.u32 %v2676_v10, %v2135_v9  ;;  %955 = vmatpush.bf16.msra.mxu1 %v2008_v7  ;;  %v2000_v17 = vor.u32 %v2642_v15, %v1999_v14  ;;  %v2063_v18 = vld [vmem:[%s4296_s1 + $0x160] sm:$0xf]  ;;  %v2658_v19 = vld [vmem:[%s4296_s1 + $0x164] sm:$0xf0]  ;;  %v1927_v23 = vld [vmem:[%s4296_s1 + $0x50] sm:$0xf] }
   0x6   :  { %968 = vmatpush.bf16.msra.mxu2 %v2072_v8  ;;  %v2127_v20 = vld [vmem:[%s4296_s1 + $0x1e0] sm:$0xf]  ;;  %v2064_v21 = vor.u32 %v2658_v19, %v2063_v18  ;;  %v2674_v22 = vld [vmem:[%s4296_s1 + $0x1e4] sm:$0xf0]  ;;  %v2624_v24 = vld [vmem:[%s4296_s1 + $0x54] sm:$0xf0] }
   0x7   :  { %981 = vmatpush.bf16.msra.mxu3 %v2136_v12  ;;  %v2128_v25 = vor.u32 %v2674_v22, %v2127_v20  ;;  %v1991_v26 = vld [vmem:[%s4296_s1 + $0xd0] sm:$0xf]  ;;  %v2640_v27 = vld [vmem:[%s4296_s1 + $0xd4] sm:$0xf0]  ;;  %v1928_v29 = vor.u32 %v2624_v24, %v1927_v23  ;;  %v1919_v35 = vld [vmem:[%s4296_s1 + $0x40] sm:$0xf] }
   0x8   :  { %v2055_v28 = vld [vmem:[%s4296_s1 + $0x150] sm:$0xf]  ;;  %943 = vmatpush.bf16.msra.mxu0 %v1936_v16  ;;  %v2656_v30 = vld [vmem:[%s4296_s1 + $0x154] sm:$0xf0]  ;;  %v1992_v33 = vor.u32 %v2640_v27, %v1991_v26  ;;  %v2622_v36 = vld [vmem:[%s4296_s1 + $0x44] sm:$0xf0] }
   0x9   :  { %v2119_v31 = vld [vmem:[%s4296_s1 + $0x1d0] sm:$0xf]  ;;  %v2672_v32 = vld [vmem:[%s4296_s1 + $0x1d4] sm:$0xf0]  ;;  %956 = vmatpush.bf16.msra.mxu1 %v2000_v17  ;;  %v2056_v34 = vor.u32 %v2656_v30, %v2055_v28  ;;  %v1983_v37 = vld [vmem:[%s4296_s1 + $0xc0] sm:$0xf]  ;;  %v1920_v44 = vor.u32 %v2622_v36, %v1919_v35 }
   0xa   :  { %969 = vmatpush.bf16.msra.mxu2 %v2064_v21  ;;  %v2120_v38 = vor.u32 %v2672_v32, %v2119_v31  ;;  %v2638_v39 = vld [vmem:[%s4296_s1 + $0xc4] sm:$0xf0]  ;;  %v2047_v40 = vld [vmem:[%s4296_s1 + $0x140] sm:$0xf]  ;;  %v1911_v47 = vld [vmem:[%s4296_s1 + $0x30] sm:$0xf] }
   0xb   :  { %982 = vmatpush.bf16.msra.mxu3 %v2128_v25  ;;  %v2654_v41 = vld [vmem:[%s4296_s1 + $0x144] sm:$0xf0]  ;;  %v2111_v42 = vld [vmem:[%s4296_s1 + $0x1c0] sm:$0xf]  ;;  %v1984_v45 = vor.u32 %v2638_v39, %v1983_v37  ;;  %v2620_v48 = vld [vmem:[%s4296_s1 + $0x34] sm:$0xf0] }
   0xc   :  { %v2670_v43 = vld [vmem:[%s4296_s1 + $0x1c4] sm:$0xf0]  ;;  %944 = vmatpush.bf16.msra.mxu0 %v1928_v29  ;;  %v2048_v46 = vor.u32 %v2654_v41, %v2047_v40  ;;  %v1975_v49 = vld [vmem:[%s4296_s1 + $0xb0] sm:$0xf]  ;;  %v2636_v51 = vld [vmem:[%s4296_s1 + $0xb4] sm:$0xf0]  ;;  %v1912_v56 = vor.u32 %v2620_v48, %v1911_v47 }
   0xd   :  { %957 = vmatpush.bf16.msra.mxu1 %v1992_v33  ;;  %v2112_v50 = vor.u32 %v2670_v43, %v2111_v42  ;;  %v2039_v52 = vld [vmem:[%s4296_s1 + $0x130] sm:$0xf]  ;;  %v2652_v53 = vld [vmem:[%s4296_s1 + $0x134] sm:$0xf0]  ;;  %v1976_v57 = vor.u32 %v2636_v51, %v1975_v49  ;;  %v1903_v59 = vld [vmem:[%s4296_s1 + $0x20] sm:$0xf] }
   0xe   :  { %970 = vmatpush.bf16.msra.mxu2 %v2056_v34  ;;  %v2103_v54 = vld [vmem:[%s4296_s1 + $0x1b0] sm:$0xf]  ;;  %v2668_v55 = vld [vmem:[%s4296_s1 + $0x1b4] sm:$0xf0]  ;;  %v2040_v58 = vor.u32 %v2652_v53, %v2039_v52  ;;  %v2618_v60 = vld [vmem:[%s4296_s1 + $0x24] sm:$0xf0] }
   0xf   :  { %983 = vmatpush.bf16.msra.mxu3 %v2120_v38  ;;  %v1967_v61 = vld [vmem:[%s4296_s1 + $0xa0] sm:$0xf]  ;;  %v2104_v62 = vor.u32 %v2668_v55, %v2103_v54  ;;  %v2634_v63 = vld [vmem:[%s4296_s1 + $0xa4] sm:$0xf0]  ;;  %v1904_v4 = vor.u32 %v2618_v60, %v1903_v59  ;;  %v1895_v7 = vld [vmem:[%s4296_s1 + $0x10] sm:$0xf] }
  0x10   :  { %945 = vmatpush.bf16.msra.mxu0 %v1920_v44  ;;  %v2031_v0 = vld [vmem:[%s4296_s1 + $0x120] sm:$0xf]  ;;  %v2650_v1 = vld [vmem:[%s4296_s1 + $0x124] sm:$0xf0]  ;;  %v1968_v5 = vor.u32 %v2634_v63, %v1967_v61  ;;  %v2616_v8 = vld [vmem:[%s4296_s1 + $0x14] sm:$0xf0] }
  0x11   :  { %958 = vmatpush.bf16.msra.mxu1 %v1984_v45  ;;  %v2095_v2 = vld [vmem:[%s4296_s1 + $0x1a0] sm:$0xf]  ;;  %v2666_v3 = vld [vmem:[%s4296_s1 + $0x1a4] sm:$0xf0]  ;;  %v2032_v6 = vor.u32 %v2650_v1, %v2031_v0  ;;  %v1959_v9 = vld [vmem:[%s4296_s1 + $0x90] sm:$0xf]  ;;  %v1896_v16 = vor.u32 %v2616_v8, %v1895_v7 }
  0x12   :  { %971 = vmatpush.bf16.msra.mxu2 %v2048_v46  ;;  %v2096_v10 = vor.u32 %v2666_v3, %v2095_v2  ;;  %v2632_v11 = vld [vmem:[%s4296_s1 + $0x94] sm:$0xf0]  ;;  %v2023_v12 = vld [vmem:[%s4296_s1 + $0x110] sm:$0xf]  ;;  %v1887_v17 = vld [vmem:[%s4296_s1] sm:$0xf] }
  0x13   :  { %984 = vmatpush.bf16.msra.mxu3 %v2112_v50  ;;  %v2648_v13 = vld [vmem:[%s4296_s1 + $0x114] sm:$0xf0]  ;;  %v2087_v14 = vld [vmem:[%s4296_s1 + $0x190] sm:$0xf]  ;;  %v2614_v18 = vld [vmem:[%s4296_s1 + $0x4] sm:$0xf0]  ;;  %v1960_v19 = vor.u32 %v2632_v11, %v1959_v9 }
  0x14   :  { %946 = vmatpush.bf16.msra.mxu0 %v1912_v56  ;;  %v2664_v15 = vld [vmem:[%s4296_s1 + $0x194] sm:$0xf0]  ;;  %v2024_v20 = vor.u32 %v2648_v13, %v2023_v12  ;;  %v1951_v21 = vld [vmem:[%s4296_s1 + $0x80] sm:$0xf]  ;;  %v2630_v22 = vld [vmem:[%s4296_s1 + $0x84] sm:$0xf0]  ;;  %v1888_v31 = vor.u32 %v2614_v18, %v1887_v17 }
  0x15   :  { %959 = vmatpush.bf16.msra.mxu1 %v1976_v57  ;;  %v2015_v23 = vld [vmem:[%s4296_s1 + $0x100] sm:$0xf]  ;;  %v2088_v24 = vor.u32 %v2664_v15, %v2087_v14  ;;  %v2646_v25 = vld [vmem:[%s4296_s1 + $0x104] sm:$0xf0]  ;;  %v2199_v26 = vld [vmem:[%s4296_s1 + $0x270] sm:$0xf]  ;;  %v1952_v35 = vor.u32 %v2630_v22, %v1951_v21 }
  0x16   :  { %972 = vmatpush.bf16.msra.mxu2 %v2040_v58  ;;  %v2692_v27 = vld [vmem:[%s4296_s1 + $0x274] sm:$0xf0]  ;;  %v2263_v28 = vld [vmem:[%s4296_s1 + $0x2f0] sm:$0xf]  ;;  %v2079_v33 = vld [vmem:[%s4296_s1 + $0x180] sm:$0xf]  ;;  %v2016_v36 = vor.u32 %v2646_v25, %v2015_v23 }
  0x17   :  { %985 = vmatpush.bf16.msra.mxu3 %v2104_v62  ;;  %v2708_v29 = vld [vmem:[%s4296_s1 + $0x2f4] sm:$0xf0]  ;;  %v2327_v30 = vld [vmem:[%s4296_s1 + $0x370] sm:$0xf]  ;;  %v2662_v34 = vld [vmem:[%s4296_s1 + $0x184] sm:$0xf0]  ;;  %v2200_v39 = vor.u32 %v2692_v27, %v2199_v26 }
  0x18   :  { %947 = vmatpush.bf16.msra.mxu0 %v1904_v4  ;;  %v2724_v32 = vld [vmem:[%s4296_s1 + $0x374] sm:$0xf0]  ;;  %v2391_v37 = vld [vmem:[%s4296_s1 + $0x3f0] sm:$0xf]  ;;  %v2264_v40 = vor.u32 %v2708_v29, %v2263_v28  ;;  %v2191_v41 = vld [vmem:[%s4296_s1 + $0x260] sm:$0xf]  ;;  %v2080_v43 = vor.u32 %v2662_v34, %v2079_v33 }
  0x19   :  { %960 = vmatpush.bf16.msra.mxu1 %v1968_v5  ;;  %v2740_v38 = vld [vmem:[%s4296_s1 + $0x3f4] sm:$0xf0]  ;;  %v2328_v42 = vor.u32 %v2724_v32, %v2327_v30  ;;  %v2690_v44 = vld [vmem:[%s4296_s1 + $0x264] sm:$0xf0]  ;;  %v2255_v45 = vld [vmem:[%s4296_s1 + $0x2e0] sm:$0xf] }
  0x1a   :  { %973 = vmatpush.bf16.msra.mxu2 %v2032_v6  ;;  %v2706_v46 = vld [vmem:[%s4296_s1 + $0x2e4] sm:$0xf0]  ;;  %v2392_v47 = vor.u32 %v2740_v38, %v2391_v37  ;;  %v2319_v48 = vld [vmem:[%s4296_s1 + $0x360] sm:$0xf]  ;;  %v2192_v52 = vor.u32 %v2690_v44, %v2191_v41  ;;  %v2183_v54 = vld [vmem:[%s4296_s1 + $0x250] sm:$0xf] }
  0x1b   :  { %986 = vmatpush.bf16.msra.mxu3 %v2096_v10  ;;  %v2722_v49 = vld [vmem:[%s4296_s1 + $0x364] sm:$0xf0]  ;;  %v2383_v50 = vld [vmem:[%s4296_s1 + $0x3e0] sm:$0xf]  ;;  %v2256_v53 = vor.u32 %v2706_v46, %v2255_v45  ;;  %v2688_v55 = vld [vmem:[%s4296_s1 + $0x254] sm:$0xf0] }
  0x1c   :  { %948 = vmatpush.bf16.msra.mxu0 %v1896_v16  ;;  %v2738_v51 = vld [vmem:[%s4296_s1 + $0x3e4] sm:$0xf0]  ;;  %v2320_v57 = vor.u32 %v2722_v49, %v2319_v48  ;;  %v2247_v58 = vld [vmem:[%s4296_s1 + $0x2d0] sm:$0xf]  ;;  %v2704_v59 = vld [vmem:[%s4296_s1 + $0x2d4] sm:$0xf0]  ;;  %v2184_v4 = vor.u32 %v2688_v55, %v2183_v54 }
  0x1d   :  { %961 = vmatpush.bf16.msra.mxu1 %v1960_v19  ;;  %v42_v56 = vld [vmem:[%s4297_s0 + $0x8] sm:$0xff]  ;;  %v41_v61 = vld [vmem:[%s4297_s0] sm:$0xff]  ;;  %v2384_v63 = vor.u32 %v2738_v51, %v2383_v50  ;;  %v2311_v0 = vld [vmem:[%s4296_s1 + $0x350] sm:$0xf]  ;;  %v2248_v9 = vor.u32 %v2704_v59, %v2247_v58  ;;  %vm1225_vm4 = vcmask 523264  }
  0x1e   :  { %974 = vmatpush.bf16.msra.mxu2 %v2024_v20  ;;  %v197_v60 = vunpack.c.l.b16 %v42_v56  ;;  %v198_v62 = vunpack.c.h.b16 %v42_v56  ;;  %v2720_v1 = vld [vmem:[%s4296_s1 + $0x354] sm:$0xf0]  ;;  %v195_v2 = vunpack.c.l.b16 %v41_v61  ;;  %v196_v3 = vunpack.c.h.b16 %v41_v61  ;;  %v2375_v5 = vld [vmem:[%s4296_s1 + $0x3d0] sm:$0xf]  ;;  %v2175_v10 = vld [vmem:[%s4296_s1 + $0x240] sm:$0xf] }
  0x1f   :  { %987 = vmatpush.bf16.msra.mxu3 %v2088_v24  ;;  %v2736_v6 = vld [vmem:[%s4296_s1 + $0x3d4] sm:$0xf0]  ;;  %v2312_v13 = vor.u32 %v2720_v1, %v2311_v0  ;;  %v2686_v14 = vld [vmem:[%s4296_s1 + $0x244] sm:$0xf0]  ;;  %v2239_v15 = vld [vmem:[%s4296_s1 + $0x2c0] sm:$0xf] }
  0x20   :  { %949 = vmatpush.bf16.msra.mxu0 %v1888_v31  ;;  %v3142_v7 = vpack.c.b16 %v197_v60, %v197_v60  ;;  %v3144_v8 = vpack.c.b16 %v198_v62, %v198_v62  ;;  %v3149_v11 = vpack.c.b16 %v195_v2, %v195_v2  ;;  %v3151_v12 = vpack.c.b16 %v196_v3, %v196_v3  ;;  %v2702_v16 = vld [vmem:[%s4296_s1 + $0x2c4] sm:$0xf0]  ;;  %v2303_v18 = vld [vmem:[%s4296_s1 + $0x340] sm:$0xf]  ;;  %v2167_v24 = vld [vmem:[%s4296_s1 + $0x230] sm:$0xf] }
  0x21   :  { %962 = vmatpush.bf16.msra.mxu1 %v1952_v35  ;;  %v2376_v17 = vor.u32 %v2736_v6, %v2375_v5  ;;  %v2718_v19 = vld [vmem:[%s4296_s1 + $0x344] sm:$0xf0]  ;;  %v2367_v20 = vld [vmem:[%s4296_s1 + $0x3c0] sm:$0xf]  ;;  %v2176_v22 = vor.u32 %v2686_v14, %v2175_v10  ;;  %v2240_v23 = vor.u32 %v2702_v16, %v2239_v15  ;;  %v2684_v26 = vld [vmem:[%s4296_s1 + $0x234] sm:$0xf0] }
  0x22   :  { %975 = vmatpush.bf16.msra.mxu2 %v2016_v36  ;;  %v2734_v21 = vld [vmem:[%s4296_s1 + $0x3c4] sm:$0xf0]  ;;  %v2304_v25 = vor.u32 %v2718_v19, %v2303_v18  ;;  %v2231_v27 = vld [vmem:[%s4296_s1 + $0x2b0] sm:$0xf]  ;;  %v2700_v28 = vld [vmem:[%s4296_s1 + $0x2b4] sm:$0xf0]  ;;  %v2168_v34 = vor.u32 %v2684_v26, %v2167_v24 }
  0x23   :  { %988 = vmatpush.bf16.msra.mxu3 %v2080_v43  ;;  %950 = vmatmul.bf16.vlgmr.msra.gmra.mxu0 %v3149_v11  ;;  %v2368_v29 = vor.u32 %v2734_v21, %v2367_v20  ;;  %v2295_v30 = vld [vmem:[%s4296_s1 + $0x330] sm:$0xf]  ;;  %v2716_v31 = vld [vmem:[%s4296_s1 + $0x334] sm:$0xf0]  ;;  %v2232_v35 = vor.u32 %v2700_v28, %v2231_v27  ;;  %v2159_v36 = vld [vmem:[%s4296_s1 + $0x220] sm:$0xf] }
  0x24   :  { %994 = vmatpush.bf16.msrb.mxu0 %v2200_v39  ;;  %963 = vmatmul.bf16.vlgmr.msra.gmra.mxu1 %v3151_v12  ;;  %v2359_v32 = vld [vmem:[%s4296_s1 + $0x3b0] sm:$0xf]  ;;  %v2732_v33 = vld [vmem:[%s4296_s1 + $0x3b4] sm:$0xf0]  ;;  %v2296_v37 = vor.u32 %v2716_v31, %v2295_v30  ;;  %v2682_v38 = vld [vmem:[%s4296_s1 + $0x224] sm:$0xf0] }
  0x25   :  { %1007 = vmatpush.bf16.msrb.mxu1 %v2264_v40  ;;  %976 = vmatmul.bf16.vlgmr.msra.gmra.mxu2 %v3142_v7  ;;  %v2223_v39 = vld [vmem:[%s4296_s1 + $0x2a0] sm:$0xf]  ;;  %v2698_v40 = vld [vmem:[%s4296_s1 + $0x2a4] sm:$0xf0]  ;;  %v2360_v41 = vor.u32 %v2732_v33, %v2359_v32  ;;  %v2160_v46 = vor.u32 %v2682_v38, %v2159_v36  ;;  %v2151_v48 = vld [vmem:[%s4296_s1 + $0x210] sm:$0xf] }
  0x26   :  { %1020 = vmatpush.bf16.msrb.mxu2 %v2328_v42  ;;  %989 = vmatmul.bf16.vlgmr.msra.gmra.mxu3 %v3144_v8  ;;  %v2287_v42 = vld [vmem:[%s4296_s1 + $0x320] sm:$0xf]  ;;  %v2714_v43 = vld [vmem:[%s4296_s1 + $0x324] sm:$0xf0]  ;;  %v2680_v50 = vld [vmem:[%s4296_s1 + $0x214] sm:$0xf0] }
  0x27   :  { %1033 = vmatpush.bf16.msrb.mxu3 %v2392_v47  ;;  %v2351_v44 = vld [vmem:[%s4296_s1 + $0x3a0] sm:$0xf]  ;;  %v2730_v45 = vld [vmem:[%s4296_s1 + $0x3a4] sm:$0xf0]  ;;  %v2224_v47 = vor.u32 %v2698_v40, %v2223_v39  ;;  %v2288_v49 = vor.u32 %v2714_v43, %v2287_v42  ;;  %v2215_v51 = vld [vmem:[%s4296_s1 + $0x290] sm:$0xf]  ;;  %v2152_v60 = vor.u32 %v2680_v50, %v2151_v48 }
  0x28   :  { %995 = vmatpush.bf16.msrb.mxu0 %v2192_v52  ;;  %v2696_v52 = vld [vmem:[%s4296_s1 + $0x294] sm:$0xf0]  ;;  %v2279_v54 = vld [vmem:[%s4296_s1 + $0x310] sm:$0xf]  ;;  %v2143_v58 = vld [vmem:[%s4296_s1 + $0x200] sm:$0xf] }
  0x29   :  { %1008 = vmatpush.bf16.msrb.mxu1 %v2256_v53  ;;  %v2352_v53 = vor.u32 %v2730_v45, %v2351_v44  ;;  %v2712_v55 = vld [vmem:[%s4296_s1 + $0x314] sm:$0xf0]  ;;  %v2343_v56 = vld [vmem:[%s4296_s1 + $0x390] sm:$0xf]  ;;  %v2678_v59 = vld [vmem:[%s4296_s1 + $0x204] sm:$0xf0]  ;;  %v2216_v61 = vor.u32 %v2696_v52, %v2215_v51 }
  0x2a   :  { %1021 = vmatpush.bf16.msrb.mxu2 %v2320_v57  ;;  %v2728_v57 = vld [vmem:[%s4296_s1 + $0x394] sm:$0xf0]  ;;  %v2207_v62 = vld [vmem:[%s4296_s1 + $0x280] sm:$0xf]  ;;  %v43_v0 = vld [vmem:[%s4297_s0 + $0x10] sm:$0xff]  ;;  %v2280_v1 = vor.u32 %v2712_v55, %v2279_v54 }
  0x2b   :  { %1034 = vmatpush.bf16.msrb.mxu3 %v2384_v63  ;;  %v2694_v63 = vld [vmem:[%s4296_s1 + $0x284] sm:$0xf0]  ;;  %v2271_v2 = vld [vmem:[%s4296_s1 + $0x300] sm:$0xf]  ;;  %v2344_v5 = vor.u32 %v2728_v57, %v2343_v56  ;;  %v2455_v6 = vld [vmem:[%s4296_s1 + $0x470] sm:$0xf]  ;;  %v199_v16 = vunpack.c.l.b16 %v43_v0  ;;  %v200_v26 = vunpack.c.h.b16 %v43_v0 }
  0x2c   :  { %996 = vmatpush.bf16.msrb.mxu0 %v2184_v4  ;;  %v2710_v3 = vld [vmem:[%s4296_s1 + $0x304] sm:$0xf0]  ;;  %v44_v4 = vld [vmem:[%s4297_s0 + $0x18] sm:$0xff]  ;;  %v2627_v10 = vld [vmem:[%s4296_s1 + $0x74] sm:$0xf]  ;;  %v2208_v18 = vor.u32 %v2694_v63, %v2207_v62 }
  0x2d   :  { %1009 = vmatpush.bf16.msrb.mxu1 %v2248_v9  ;;  %v2756_v9 = vld [vmem:[%s4296_s1 + $0x474] sm:$0xf0]  ;;  %v2643_v14 = vld [vmem:[%s4296_s1 + $0xf4] sm:$0xf]  ;;  %v2009_v15 = vld [vmem:[%s4296_s1 + $0xf8] sm:$0xf0]  ;;  %v201_v21 = vunpack.c.l.b16 %v44_v4  ;;  %v3322_v36 = vpack.c.b16 %v199_v16, %v199_v16  ;;  %v3332_v43 = vpack.c.b16 %v200_v26, %v200_v26 }
  0x2e   :  { %1022 = vmatpush.bf16.msrb.mxu2 %v2312_v13  ;;  %v1945_v13 = vld [vmem:[%s4296_s1 + $0x78] sm:$0xf0]  ;;  %v2335_v19 = vld [vmem:[%s4296_s1 + $0x380] sm:$0xf]  ;;  %v2726_v20 = vld [vmem:[%s4296_s1 + $0x384] sm:$0xf0]  ;;  %v2012_v28 = vor.u32 %v2643_v14, %v2009_v15 }
  0x2f   :  { %1035 = vmatpush.bf16.msrb.mxu3 %v2376_v17  ;;  %v2144_v17 = vor.u32 %v2678_v59, %v2143_v58  ;;  %v2659_v24 = vld [vmem:[%s4296_s1 + $0x174] sm:$0xf]  ;;  %v1948_v27 = vor.u32 %v2627_v10, %v1945_v13  ;;  %v2754_v30 = vld [vmem:[%s4296_s1 + $0x464] sm:$0xf0]  ;;  %v2625_v31 = vld [vmem:[%s4296_s1 + $0x64] sm:$0xf]  ;;  %v2336_v32 = vor.u32 %v2726_v20, %v2335_v19  ;;  %v3324_v39 = vpack.c.b16 %v201_v21, %v201_v21 }
  0x30   :  { %997 = vmatpush.bf16.msrb.mxu0 %v2176_v22  ;;  %v2272_v22 = vor.u32 %v2710_v3, %v2271_v2  ;;  %v1937_v33 = vld [vmem:[%s4296_s1 + $0x68] sm:$0xf0]  ;;  %v2623_v48 = vld [vmem:[%s4296_s1 + $0x54] sm:$0xf]  ;;  %v1929_v50 = vld [vmem:[%s4296_s1 + $0x58] sm:$0xf0] }
  0x31   :  { %1010 = vmatpush.bf16.msrb.mxu1 %v2240_v23  ;;  %v2456_v23 = vor.u32 %v2756_v9, %v2455_v6  ;;  %v2065_v42 = vld [vmem:[%s4296_s1 + $0x168] sm:$0xf0]  ;;  %v1940_v44 = vor.u32 %v2625_v31, %v1937_v33  ;;  %v2639_v51 = vld [vmem:[%s4296_s1 + $0xd4] sm:$0xf]  ;;  %v1993_v52 = vld [vmem:[%s4296_s1 + $0xd8] sm:$0xf0]  ;;  %v1932_v57 = vor.u32 %v2623_v48, %v1929_v50 }
  0x32   :  { %1023 = vmatpush.bf16.msrb.mxu2 %v2304_v25  ;;  %v2073_v25 = vld [vmem:[%s4296_s1 + $0x178] sm:$0xf0]  ;;  %v2655_v55 = vld [vmem:[%s4296_s1 + $0x154] sm:$0xf]  ;;  %v1996_v58 = vor.u32 %v2639_v51, %v1993_v52  ;;  %v2431_v59 = vld [vmem:[%s4296_s1 + $0x440] sm:$0xf] }
  0x33   :  { %1036 = vmatpush.bf16.msrb.mxu3 %v2368_v29  ;;  %v2447_v29 = vld [vmem:[%s4296_s1 + $0x460] sm:$0xf]  ;;  %v2076_v38 = vor.u32 %v2659_v24, %v2073_v25  ;;  %v2057_v56 = vld [vmem:[%s4296_s1 + $0x158] sm:$0xf0]  ;;  %v1921_v62 = vld [vmem:[%s4296_s1 + $0x48] sm:$0xf0] }
  0x34   :  { %998 = vmatpush.bf16.msrb.mxu0 %v2168_v34  ;;  %v2641_v34 = vld [vmem:[%s4296_s1 + $0xe4] sm:$0xf]  ;;  %v2448_v40 = vor.u32 %v2754_v30, %v2447_v29  ;;  %v1985_v0 = vld [vmem:[%s4296_s1 + $0xc8] sm:$0xf0]  ;;  %v2423_v9 = vld [vmem:[%s4296_s1 + $0x430] sm:$0xf] }
  0x35   :  { %1011 = vmatpush.bf16.msrb.mxu1 %v2232_v35  ;;  %v2001_v35 = vld [vmem:[%s4296_s1 + $0xe8] sm:$0xf0]  ;;  %v2637_v63 = vld [vmem:[%s4296_s1 + $0xc4] sm:$0xf]  ;;  %v2748_v10 = vld [vmem:[%s4296_s1 + $0x434] sm:$0xf0] }
  0x36   :  { %1024 = vmatpush.bf16.msrb.mxu2 %v2296_v37  ;;  %v202_v37 = vunpack.c.h.b16 %v44_v4  ;;  %v2004_v45 = vor.u32 %v2641_v34, %v2001_v35  ;;  %v2653_v3 = vld [vmem:[%s4296_s1 + $0x144] sm:$0xf]  ;;  %v2049_v4 = vld [vmem:[%s4296_s1 + $0x148] sm:$0xf0]  ;;  %v1988_v6 = vor.u32 %v2637_v63, %v1985_v0  ;;  %v2619_v13 = vld [vmem:[%s4296_s1 + $0x34] sm:$0xf] }
  0x37   :  { %1037 = vmatpush.bf16.msrb.mxu3 %v2360_v41  ;;  %v2657_v41 = vld [vmem:[%s4296_s1 + $0x164] sm:$0xf]  ;;  %v1913_v14 = vld [vmem:[%s4296_s1 + $0x38] sm:$0xf0]  ;;  %v2635_v15 = vld [vmem:[%s4296_s1 + $0xb4] sm:$0xf] }
  0x38   :  { %999 = vmatpush.bf16.msrb.mxu0 %v2160_v46  ;;  %v2439_v46 = vld [vmem:[%s4296_s1 + $0x450] sm:$0xf]  ;;  %v1977_v16 = vld [vmem:[%s4296_s1 + $0xb8] sm:$0xf0]  ;;  %v2651_v19 = vld [vmem:[%s4296_s1 + $0x134] sm:$0xf] }
  0x39   :  { %1012 = vmatpush.bf16.msrb.mxu1 %v2224_v47  ;;  %v2752_v47 = vld [vmem:[%s4296_s1 + $0x454] sm:$0xf0]  ;;  %v2041_v20 = vld [vmem:[%s4296_s1 + $0x138] sm:$0xf0]  ;;  %v2415_v21 = vld [vmem:[%s4296_s1 + $0x420] sm:$0xf]  ;;  %v1980_v24 = vor.u32 %v2635_v15, %v1977_v16 }
  0x3a   :  { %1025 = vmatpush.bf16.msrb.mxu2 %v2288_v49  ;;  %v3344_v49 = vpack.c.b16 %v202_v37, %v202_v37  ;;  %v2440_v54 = vor.u32 %v2752_v47, %v2439_v46  ;;  %v2746_v25 = vld [vmem:[%s4296_s1 + $0x424] sm:$0xf0]  ;;  %v2617_v26 = vld [vmem:[%s4296_s1 + $0x24] sm:$0xf]  ;;  %v1969_v30 = vld [vmem:[%s4296_s1 + $0xa8] sm:$0xf0] }
  0x3b   :  { %1038 = vmatpush.bf16.msrb.mxu3 %v2352_v53  ;;  %v2068_v53 = vor.u32 %v2657_v41, %v2065_v42  ;;  %v2633_v29 = vld [vmem:[%s4296_s1 + $0xa4] sm:$0xf]  ;;  %v2802_v31 = vmov 0   ;;  %v2416_v33 = vor.u32 %v2746_v25, %v2415_v21  ;;  %v2033_v35 = vld [vmem:[%s4296_s1 + $0x128] sm:$0xf0] }
  0x3c   :  { %1000 = vmatpush.bf16.msrb.mxu0 %v2152_v60  ;;  %v2750_v60 = vld [vmem:[%s4296_s1 + $0x444] sm:$0xf0]  ;;  %2795 = vset.pattern.permute.xlu0 %v2802_v31  ;;  %v2649_v34 = vld [vmem:[%s4296_s1 + $0x124] sm:$0xf]  ;;  %v2744_v41 = vld [vmem:[%s4296_s1 + $0x414] sm:$0xf0] }
  0x3d   :  { %1013 = vmatpush.bf16.msrb.mxu1 %v2216_v61  ;;  %v2621_v61 = vld [vmem:[%s4296_s1 + $0x44] sm:$0xf]  ;;  %v2432_v2 = vor.u32 %v2750_v60, %v2431_v59  ;;  %v2615_v42 = vld [vmem:[%s4296_s1 + $0x14] sm:$0xf]  ;;  %v1961_v46 = vld [vmem:[%s4296_s1 + $0x98] sm:$0xf0]  ;;  %v2036_v47 = vor.u32 %v2649_v34, %v2033_v35 }
  0x3e   :  { %1026 = vmatpush.bf16.msrb.mxu2 %v2280_v1  ;;  %v2060_v1 = vor.u32 %v2655_v55, %v2057_v56  ;;  %v2647_v48 = vld [vmem:[%s4296_s1 + $0x114] sm:$0xf]  ;;  %v2025_v50 = vld [vmem:[%s4296_s1 + $0x118] sm:$0xf0]  ;;  %v2399_v52 = vld [vmem:[%s4296_s1 + $0x400] sm:$0xf] }
  0x3f   :  { %1039 = vmatpush.bf16.msrb.mxu3 %v2344_v5  ;;  %v1924_v5 = vor.u32 %v2621_v61, %v1921_v62  ;;  %v2742_v56 = vld [vmem:[%s4296_s1 + $0x404] sm:$0xf0]  ;;  %v2629_v59 = vld [vmem:[%s4296_s1 + $0x84] sm:$0xf]  ;;  %v1953_v60 = vld [vmem:[%s4296_s1 + $0x88] sm:$0xf0]  ;;  %v2028_v63 = vor.u32 %v2647_v48, %v2025_v50 }
  0x40   :  { %1001 = vmatpush.bf16.msrb.mxu0 %v2144_v17  ;;  %v2052_v17 = vor.u32 %v2653_v3, %v2049_v4  ;;  %v2675_v61 = vld [vmem:[%s4296_s1 + $0x1f4] sm:$0xf]  ;;  %v2803_v62 = vmov 3   ;;  %v2137_v0 = vld [vmem:[%s4296_s1 + $0x1f8] sm:$0xf0]  ;;  %v2804_v4 = vmov 1  }
  0x41   :  { %1014 = vmatpush.bf16.msrb.mxu1 %v2208_v18  ;;  %v2424_v18 = vor.u32 %v2748_v10, %v2423_v9  ;;  %v2265_v9 = vld [vmem:[%s4296_s1 + $0x2f8] sm:$0xf0]  ;;  %v2017_v15 = vld [vmem:[%s4296_s1 + $0x108] sm:$0xf0]  ;;  %v2140_v16 = vor.u32 %v2675_v61, %v2137_v0  ;;  %v2671_v35 = vld [vmem:[%s4296_s1 + $0x1d4] sm:$0xf] }
  0x42   :  { %1027 = vmatpush.bf16.msrb.mxu2 %v2272_v22  ;;  %v2801_v22 = vmov 2   ;;  %v2193_v25 = vld [vmem:[%s4296_s1 + $0x268] sm:$0xf0]  ;;  %v2719_v48 = vld [vmem:[%s4296_s1 + $0x354] sm:$0xf] }
  0x43   :  { %1040 = vmatpush.bf16.msrb.mxu3 %v2336_v32  ;;  %1002 = vmatmul.bf16.vlgmr.msrb.gmra.mxu0 %v3322_v36  ;;  %v2044_v32 = vor.u32 %v2651_v19, %v2041_v20  ;;  %v2329_v19 = vld [vmem:[%s4296_s1 + $0x378] sm:$0xf0]  ;;  %v2673_v20 = vld [vmem:[%s4296_s1 + $0x1e4] sm:$0xf]  ;;  %v2321_v34 = vld [vmem:[%s4296_s1 + $0x368] sm:$0xf0] }
  0x44   :  { %1046 = vmatpush.bf16.msra.mxu0 %v2456_v23  ;;  %1015 = vmatmul.bf16.vlgmr.msrb.gmra.mxu1 %v3332_v43  ;;  %v1916_v23 = vor.u32 %v2619_v13, %v1913_v14  ;;  %v1956_v13 = vor.u32 %v2629_v59, %v1953_v60  ;;  %v2645_v14 = vld [vmem:[%s4296_s1 + $0x104] sm:$0xf]  ;;  %v2313_v50 = vld [vmem:[%s4296_s1 + $0x358] sm:$0xf0]  ;;  %v2667_v60 = vld [vmem:[%s4296_s1 + $0x1b4] sm:$0xf] }
  0x45   :  { %1059 = vmatpush.bf16.msra.mxu1 %v1948_v27  ;;  %1028 = vmatmul.bf16.vlgmr.msrb.gmra.mxu2 %v3324_v39  ;;  %v3424_v27 = vld [vmem:[%s4298_s4] sm:$0xff]  ;;  %v2169_v0 = vld [vmem:[%s4296_s1 + $0x238] sm:$0xf0] }
  0x46   :  { %1072 = vmatpush.bf16.msra.mxu2 %v2012_v28  ;;  %1041 = vmatmul.bf16.vlgmr.msrb.gmra.mxu3 %v3344_v49  ;;  %v1905_v28 = vld [vmem:[%s4296_s1 + $0x28] sm:$0xf0]  ;;  %v2717_v59 = vld [vmem:[%s4296_s1 + $0x344] sm:$0xf] }
  0x47   :  { %1085 = vmatpush.bf16.msra.mxu3 %v2076_v38  ;;  %2797 = vset.pattern.permute.xlu1 %v2801_v22  ;;  %v1908_v37 = vor.u32 %v2617_v26, %v1905_v28  ;;  %v1972_v38 = vor.u32 %v2633_v29, %v1969_v30  ;;  %v2020_v26 = vor.u32 %v2645_v14, %v2017_v15  ;;  %v2705_v28 = vld [vmem:[%s4296_s1 + $0x2e4] sm:$0xf]  ;;  %v2257_v29 = vld [vmem:[%s4296_s1 + $0x2e8] sm:$0xf0] }
  0x48   :  { %1047 = vmatpush.bf16.msra.mxu0 %v2448_v40  ;;  %1357 = vperm.xlu1 %2797, %v3424_v27   ;;  %v2407_v40 = vld [vmem:[%s4296_s1 + $0x410] sm:$0xf]  ;;  %v2097_v15 = vld [vmem:[%s4296_s1 + $0x1a8] sm:$0xf0] }
  0x49   :  { %1060 = vmatpush.bf16.msra.mxu1 %v1940_v44  ;;  %1204 = vperm.xlu0 %2795, %v3424_v27   ;;  %v1897_v44 = vld [vmem:[%s4296_s1 + $0x18] sm:$0xf0]  ;;  %v2408_v51 = vor.u32 %v2744_v41, %v2407_v40  ;;  %v2687_v40 = vld [vmem:[%s4296_s1 + $0x254] sm:$0xf] }
  0x4a   :  { %1073 = vmatpush.bf16.msra.mxu2 %v2004_v45  ;;  %v2631_v45 = vld [vmem:[%s4296_s1 + $0x94] sm:$0xf]  ;;  %v2185_v41 = vld [vmem:[%s4296_s1 + $0x258] sm:$0xf0] }
  0x4b   :  { %1086 = vmatpush.bf16.msra.mxu3 %v2068_v53  ;;  %v45_v53 = vld [vmem:[%s4297_s0 + $0x20] sm:$0xf]  ;;  %v1964_v55 = vor.u32 %v2631_v45, %v1961_v46 }
  0x4c   :  { %1048 = vmatpush.bf16.msra.mxu0 %v2440_v54  ;;  %v1900_v54 = vor.u32 %v2615_v42, %v1897_v44  ;;  %v203_v3 = vunpack.c.l.b16 %v45_v53  ;;  %v2703_v42 = vld [vmem:[%s4296_s1 + $0x2d4] sm:$0xf]  ;;  %v2249_v44 = vld [vmem:[%s4296_s1 + $0x2d8] sm:$0xf0]  ;;  %v2177_v53 = vld [vmem:[%s4296_s1 + $0x248] sm:$0xf0] }
  0x4d   :  { %1061 = vmatpush.bf16.msra.mxu1 %v1932_v57  ;;  %v2613_v57 = vld [vmem:[%s4296_s1 + $0x4] sm:$0xf] }
  0x4e   :  { %1074 = vmatpush.bf16.msra.mxu2 %v1996_v58  ;;  %v1889_v58 = vld [vmem:[%s4296_s1 + $0x8] sm:$0xf0]  ;;  %v3523_v22 = vpack.c.b16 %v203_v3, %v203_v3 }
  0x4f   :  { %1087 = vmatpush.bf16.msra.mxu3 %v2060_v1  ;;  %v2691_v1 = vld [vmem:[%s4296_s1 + $0x274] sm:$0xf]  ;;  %v1892_v10 = vor.u32 %v2613_v57, %v1889_v58 }
  0x50   :  { %1049 = vmatpush.bf16.msra.mxu0 %v2432_v2  ;;  %2798 = vset.pattern.permute.xlu1 %v2803_v62  ;;  %v2201_v2 = vld [vmem:[%s4296_s1 + $0x278] sm:$0xf0] }
  0x51   :  { %1062 = vmatpush.bf16.msra.mxu1 %v1924_v5  ;;  %2796 = vset.pattern.permute.xlu0 %v2804_v4  ;;  %v2400_v5 = vor.u32 %v2742_v56, %v2399_v52  ;;  %v2685_v52 = vld [vmem:[%s4296_s1 + $0x244] sm:$0xf]  ;;  %v2316_v56 = vor.u32 %v2719_v48, %v2313_v50  ;;  %v2105_v62 = vld [vmem:[%s4296_s1 + $0x1b8] sm:$0xf0]  ;;  %v2805_v4 = vmov 4  }
  0x52   :  { %1075 = vmatpush.bf16.msra.mxu2 %v1988_v6  ;;  %v2707_v6 = vld [vmem:[%s4296_s1 + $0x2f4] sm:$0xf]  ;;  %1437 = vperm.xlu1 %2798, %v3424_v27   ;;  %v2180_v58 = vor.u32 %v2685_v52, %v2177_v53  ;;  %v2393_v50 = vld [vmem:[%s4296_s1 + $0x3f8] sm:$0xf0] }
  0x53   :  { %1088 = vmatpush.bf16.msra.mxu3 %v2052_v17  ;;  %v2204_v17 = vor.u32 %v2691_v1, %v2201_v2  ;;  %1284 = vperm.xlu0 %2796, %v3424_v27   ;;  %v2268_v21 = vor.u32 %v2707_v6, %v2265_v9  ;;  %v2699_v1 = vld [vmem:[%s4296_s1 + $0x2b4] sm:$0xf]  ;;  %v2233_v2 = vld [vmem:[%s4296_s1 + $0x2b8] sm:$0xf0] }
  0x54   :  { %1050 = vmatpush.bf16.msra.mxu0 %v2424_v18  ;;  %v2723_v18 = vld [vmem:[%s4296_s1 + $0x374] sm:$0xf]  ;;  %2799 = vset.pattern.permute.xlu2 %v2805_v4  ;;  %v2236_v14 = vor.u32 %v2699_v1, %v2233_v2  ;;  %v2377_v2 = vld [vmem:[%s4296_s1 + $0x3d8] sm:$0xf0] }
  0x55   :  { %1063 = vmatpush.bf16.msra.mxu1 %v1916_v23  ;;  %v2129_v23 = vld [vmem:[%s4296_s1 + $0x1e8] sm:$0xf0]  ;;  %v2332_v30 = vor.u32 %v2723_v18, %v2329_v19  ;;  %v2715_v9 = vld [vmem:[%s4296_s1 + $0x334] sm:$0xf]  ;;  %1517 = vperm.xlu2 %2799, %v3424_v27   ;;  %v2697_v18 = vld [vmem:[%s4296_s1 + $0x2a4] sm:$0xf] }
  0x56   :  { %1076 = vmatpush.bf16.msra.mxu2 %v1980_v24  ;;  %v2689_v24 = vld [vmem:[%s4296_s1 + $0x264] sm:$0xf]  ;;  %v2132_v31 = vor.u32 %v2673_v20, %v2129_v23  ;;  %v2225_v19 = vld [vmem:[%s4296_s1 + $0x2a8] sm:$0xf0]  ;;  %v2739_v48 = vld [vmem:[%s4296_s1 + $0x3f4] sm:$0xf] }
  0x57   :  { %1089 = vmatpush.bf16.msra.mxu3 %v2044_v32  ;;  %v2196_v32 = vor.u32 %v2689_v24, %v2193_v25  ;;  %v2713_v24 = vld [vmem:[%s4296_s1 + $0x324] sm:$0xf]  ;;  %v2289_v27 = vld [vmem:[%s4296_s1 + $0x328] sm:$0xf0]  ;;  %v2663_v25 = vld [vmem:[%s4296_s1 + $0x194] sm:$0xf] }
  0x58   :  { %1051 = vmatpush.bf16.msra.mxu0 %v2416_v33  ;;  %v2721_v33 = vld [vmem:[%s4296_s1 + $0x364] sm:$0xf]  ;;  %v2735_v1 = vld [vmem:[%s4296_s1 + $0x3d4] sm:$0xf] }
  0x59   :  { %1064 = vmatpush.bf16.msra.mxu1 %v1908_v37  ;;  %v2260_v37 = vor.u32 %v2705_v28, %v2257_v29  ;;  %v2324_v45 = vor.u32 %v2721_v33, %v2321_v34  ;;  %v2089_v28 = vld [vmem:[%s4296_s1 + $0x198] sm:$0xf0]  ;;  %v2679_v29 = vld [vmem:[%s4296_s1 + $0x214] sm:$0xf]  ;;  %v2292_v33 = vor.u32 %v2713_v24, %v2289_v27 }
  0x5a   :  { %1077 = vmatpush.bf16.msra.mxu2 %v1972_v38  ;;  %v2121_v38 = vld [vmem:[%s4296_s1 + $0x1d8] sm:$0xf0]  ;;  %v2711_v34 = vld [vmem:[%s4296_s1 + $0x314] sm:$0xf] }
  0x5b   :  { %1090 = vmatpush.bf16.msra.mxu3 %v2036_v47  ;;  %v2124_v46 = vor.u32 %v2671_v35, %v2121_v38  ;;  %v2188_v47 = vor.u32 %v2687_v40, %v2185_v41  ;;  %2800 = vset.pattern.permute.xlu0 %v2805_v4  ;;  %v2092_v35 = vor.u32 %v2663_v25, %v2089_v28  ;;  %v2281_v38 = vld [vmem:[%s4296_s1 + $0x318] sm:$0xf0]  ;;  %v2661_v40 = vld [vmem:[%s4296_s1 + $0x184] sm:$0xf]  ;;  %v2081_v41 = vld [vmem:[%s4296_s1 + $0x188] sm:$0xf0] }
  0x5c   :  { %1052 = vmatpush.bf16.msra.mxu0 %v2408_v51  ;;  %v2252_v51 = vor.u32 %v2703_v42, %v2249_v44  ;;  %v2677_v44 = vld [vmem:[%s4296_s1 + $0x204] sm:$0xf]  ;;  %v2084_v52 = vor.u32 %v2661_v40, %v2081_v41  ;;  %v2441_v4 = vld [vmem:[%s4296_s1 + $0x458] sm:$0xf0]  ;;  %v2727_v25 = vld [vmem:[%s4296_s1 + $0x394] sm:$0xf] }
  0x5d   :  { %1065 = vmatpush.bf16.msra.mxu1 %v1900_v54  ;;  %v2701_v54 = vld [vmem:[%s4296_s1 + $0x2c4] sm:$0xf]  ;;  %v2743_v28 = vld [vmem:[%s4296_s1 + $0x414] sm:$0xf] }
  0x5e   :  { %1078 = vmatpush.bf16.msra.mxu2 %v1964_v55  ;;  %v2241_v55 = vld [vmem:[%s4296_s1 + $0x2c8] sm:$0xf0] }
  0x5f   :  { %1091 = vmatpush.bf16.msra.mxu3 %v2028_v63  ;;  %v2244_v61 = vor.u32 %v2701_v54, %v2241_v55  ;;  %v2683_v63 = vld [vmem:[%s4296_s1 + $0x234] sm:$0xf]  ;;  %v2709_v54 = vld [vmem:[%s4296_s1 + $0x304] sm:$0xf]  ;;  %v2273_v55 = vld [vmem:[%s4296_s1 + $0x308] sm:$0xf0] }
  0x60   :  { %1053 = vmatpush.bf16.msra.mxu0 %v2400_v5  ;;  %v2108_v5 = vor.u32 %v2667_v60, %v2105_v62  ;;  %v2172_v6 = vor.u32 %v2683_v63, %v2169_v0  ;;  %v2276_v60 = vor.u32 %v2709_v54, %v2273_v55  ;;  %v2449_v62 = vld [vmem:[%s4296_s1 + $0x468] sm:$0xf0] }
  0x61   :  { %1066 = vmatpush.bf16.msra.mxu1 %v1892_v10  ;;  %v2297_v10 = vld [vmem:[%s4296_s1 + $0x338] sm:$0xf0] }
  0x62   :  { %1079 = vmatpush.bf16.msra.mxu2 %v1956_v13  ;;  %v2665_v13 = vld [vmem:[%s4296_s1 + $0x1a4] sm:$0xf]  ;;  %v2300_v20 = vor.u32 %v2715_v9, %v2297_v10  ;;  %v2369_v9 = vld [vmem:[%s4296_s1 + $0x3c8] sm:$0xf0] }
  0x63   :  { %1054 = vmatmul.bf16.vlgmr.msra.gmra.mxu0 %v3523_v22  ;;  %1092 = vmatpush.bf16.msra.mxu3 %v2020_v26  ;;  %v2228_v26 = vor.u32 %v2697_v18, %v2225_v19  ;;  %v2729_v19 = vld [vmem:[%s4296_s1 + $0x3a4] sm:$0xf] }
  0x64   :  { %1098 = vmatpush.bf16.msrb.mxu0 %v2140_v16  ;;  %1067 = vmatmul.bf16.vlgmr.msra.gmra.mxu1 %v3149_v11  ;;  %v2113_v11 = vld [vmem:[%s4296_s1 + $0x1c8] sm:$0xf0]  ;;  %v2681_v16 = vld [vmem:[%s4296_s1 + $0x224] sm:$0xf] }
  0x65   :  { %1111 = vmatpush.bf16.msrb.mxu1 %v2204_v17  ;;  %1080 = vmatmul.bf16.vlgmr.msra.gmra.mxu2 %v3151_v12  ;;  %v2669_v12 = vld [vmem:[%s4296_s1 + $0x1c4] sm:$0xf]  ;;  %v2161_v17 = vld [vmem:[%s4296_s1 + $0x228] sm:$0xf0] }
  0x66   :  { %1124 = vmatpush.bf16.msrb.mxu2 %v2268_v21  ;;  %1093 = vmatmul.bf16.vlgmr.msra.gmra.mxu3 %v3142_v7  ;;  %v2116_v57 = vor.u32 %v2669_v12, %v2113_v11  ;;  %v2305_v7 = vld [vmem:[%s4296_s1 + $0x348] sm:$0xf0]  ;;  %v2100_v21 = vor.u32 %v2665_v13, %v2097_v15  ;;  %v2164_v23 = vor.u32 %v2681_v16, %v2161_v17  ;;  %v2457_v11 = vld [vmem:[%s4296_s1 + $0x478] sm:$0xf0]  ;;  %v2731_v13 = vld [vmem:[%s4296_s1 + $0x3b4] sm:$0xf] }
  0x67   :  { %1137 = vmatpush.bf16.msrb.mxu3 %v2332_v30  ;;  %v2308_v3 = vor.u32 %v2717_v59, %v2305_v7  ;;  %v2153_v30 = vld [vmem:[%s4296_s1 + $0x218] sm:$0xf0]  ;;  %v2284_v12 = vor.u32 %v2711_v34, %v2281_v38  ;;  %v2737_v59 = vld [vmem:[%s4296_s1 + $0x3e4] sm:$0xf]  ;;  %v2385_v7 = vld [vmem:[%s4296_s1 + $0x3e8] sm:$0xf0] }
  0x68   :  { %1099 = vmatpush.bf16.msrb.mxu0 %v2132_v31  ;;  %v2695_v31 = vld [vmem:[%s4296_s1 + $0x294] sm:$0xf]  ;;  %v2388_v63 = vor.u32 %v2737_v59, %v2385_v7  ;;  %v2425_v16 = vld [vmem:[%s4296_s1 + $0x438] sm:$0xf0]  ;;  %v2741_v34 = vld [vmem:[%s4296_s1 + $0x404] sm:$0xf] }
  0x69   :  { %1112 = vmatpush.bf16.msrb.mxu1 %v2196_v32  ;;  %v2217_v32 = vld [vmem:[%s4296_s1 + $0x298] sm:$0xf0]  ;;  %v2747_v15 = vld [vmem:[%s4296_s1 + $0x434] sm:$0xf]  ;;  %v1176_v7 = vld [vmem:[%s4299_s2] sm:$0x3] }
  0x6a   :  { %1125 = vmatpush.bf16.msrb.mxu2 %v2260_v37  ;;  %v2156_v37 = vor.u32 %v2679_v29, %v2153_v30  ;;  %v2220_v42 = vor.u32 %v2695_v31, %v2217_v32  ;;  %v2428_v18 = vor.u32 %v2747_v15, %v2425_v16  ;;  %v2409_v29 = vld [vmem:[%s4296_s1 + $0x418] sm:$0xf0]  ;;  %v2725_v32 = vld [vmem:[%s4296_s1 + $0x384] sm:$0xf]  ;;  %s2806_s2 = smov 64  }
  0x6b   :  { %1138 = vmatpush.bf16.msrb.mxu3 %v2324_v45  ;;  %v2145_v45 = vld [vmem:[%s4296_s1 + $0x208] sm:$0xf0]  ;;  %v2412_v31 = vor.u32 %v2743_v28, %v2409_v29 }
  0x6c   :  { %1100 = vmatpush.bf16.msrb.mxu0 %v2124_v46  ;;  %v2693_v46 = vld [vmem:[%s4296_s1 + $0x284] sm:$0xf]  ;;  %v2148_v53 = vor.u32 %v2677_v44, %v2145_v45 }
  0x6d   :  { %1113 = vmatpush.bf16.msrb.mxu1 %v2188_v47  ;;  %v2209_v47 = vld [vmem:[%s4296_s1 + $0x288] sm:$0xf0] }
  0x6e   :  { %1126 = vmatpush.bf16.msrb.mxu2 %v2252_v51  ;;  %v2755_v51 = vld [vmem:[%s4296_s1 + $0x474] sm:$0xf] }
  0x6f   :  { %1139 = vmatpush.bf16.msrb.mxu3 %v2316_v56  ;;  %v2212_v56 = vor.u32 %v2693_v46, %v2209_v47 }
  0x70   :  { %1101 = vmatpush.bf16.msrb.mxu0 %v2116_v57  ;;  %v2396_v57 = vor.u32 %v2739_v48, %v2393_v50 }
  0x71   :  { %1114 = vmatpush.bf16.msrb.mxu1 %v2180_v58  ;;  %v2460_v58 = vor.u32 %v2755_v51, %v2457_v11 }
  0x72   :  { %1127 = vmatpush.bf16.msrb.mxu2 %v2244_v61  ;;  %v2753_v61 = vld [vmem:[%s4296_s1 + $0x464] sm:$0xf] }
  0x73   :  { %1140 = vmatpush.bf16.msrb.mxu3 %v2308_v3  ;;  %v2452_v0 = vor.u32 %v2753_v61, %v2449_v62  ;;  %v2751_v3 = vld [vmem:[%s4296_s1 + $0x454] sm:$0xf]  ;;  %v1178_v62 = vperm.slane %v1176_v7, 0 }
  0x74   :  { %1102 = vmatpush.bf16.msrb.mxu0 %v2108_v5  ;;  %v2380_v5 = vor.u32 %v2735_v1, %v2377_v2 }
  0x75   :  { %1115 = vmatpush.bf16.msrb.mxu1 %v2172_v6  ;;  %v2444_v6 = vor.u32 %v2751_v3, %v2441_v4 }
  0x76   :  { %1128 = vmatpush.bf16.msrb.mxu2 %v2236_v14  ;;  %v2361_v14 = vld [vmem:[%s4296_s1 + $0x3b8] sm:$0xf0] }
  0x77   :  { %1141 = vmatpush.bf16.msrb.mxu3 %v2300_v20  ;;  %v2364_v17 = vor.u32 %v2731_v13, %v2361_v14  ;;  %v2353_v20 = vld [vmem:[%s4296_s1 + $0x3a8] sm:$0xf0] }
  0x78   :  { %1103 = vmatpush.bf16.msrb.mxu0 %v2100_v21  ;;  %v2745_v21 = vld [vmem:[%s4296_s1 + $0x424] sm:$0xf]  ;;  %v2356_v24 = vor.u32 %v2729_v19, %v2353_v20 }
  0x79   :  { %1116 = vmatpush.bf16.msrb.mxu1 %v2164_v23  ;;  %v2417_v23 = vld [vmem:[%s4296_s1 + $0x428] sm:$0xf0] }
  0x7a   :  { %1129 = vmatpush.bf16.msrb.mxu2 %v2228_v26  ;;  %v2420_v27 = vor.u32 %v2745_v21, %v2417_v23  ;;  %v2345_v26 = vld [vmem:[%s4296_s1 + $0x398] sm:$0xf0] }
  0x7b   :  { %1142 = vmatpush.bf16.msrb.mxu3 %v2292_v33  ;;  %v2348_v30 = vor.u32 %v2727_v25, %v2345_v26  ;;  %v2337_v33 = vld [vmem:[%s4296_s1 + $0x388] sm:$0xf0] }
  0x7c   :  { %1104 = vmatpush.bf16.msrb.mxu0 %v2092_v35  ;;  %v2401_v35 = vld [vmem:[%s4296_s1 + $0x408] sm:$0xf0] }
  0x7d   :  { %1117 = vmatpush.bf16.msrb.mxu1 %v2156_v37  ;;  %v2340_v37 = vor.u32 %v2725_v32, %v2337_v33  ;;  %v2404_v38 = vor.u32 %v2741_v34, %v2401_v35 }
  0x7e   :  { %1130 = vmatpush.bf16.msrb.mxu2 %v2220_v42 }
  0x7f   :  { %1143 = vmatpush.bf16.msrb.mxu3 %v2284_v12 }
  0x80   :  { %1105 = vmatpush.bf16.msrb.mxu0 %v2084_v52 }
  0x81   :  { %1118 = vmatpush.bf16.msrb.mxu1 %v2148_v53 }
  0x82   :  { %1131 = vmatpush.bf16.msrb.mxu2 %v2212_v56 }
  0x83   :  { %1144 = vmatpush.bf16.msrb.mxu3 %v2276_v60  ;;  %1106 = vmatmul.bf16.vlgmr.msrb.gmra.mxu0 %v3144_v8  ;;  %v2733_v8 = vld [vmem:[%s4296_s1 + $0x3c4] sm:$0xf]  ;;  %v1184_v60 = vld [vmem:[%s4300_s3] sm:$0x3] }
  0x84   :  { %1150 = vmatpush.bf16.msra.mxu0 %v2396_v57  ;;  %1119 = vmatmul.bf16.vlgmr.msrb.gmra.mxu1 %v3322_v36  ;;  %v2433_v36 = vld [vmem:[%s4296_s1 + $0x448] sm:$0xf0]  ;;  %v2372_v10 = vor.u32 %v2733_v8, %v2369_v9  ;;  %v1186_v1 = vperm.slane %v1184_v60, 0 }
  0x85   :  { %1163 = vmatpush.bf16.msra.mxu1 %v2460_v58  ;;  %1132 = vmatmul.bf16.vlgmr.msrb.gmra.mxu2 %v3332_v43  ;;  %v2749_v43 = vld [vmem:[%s4296_s1 + $0x444] sm:$0xf] }
  0x86   :  { %1145 = vmatmul.bf16.vlgmr.msrb.gmra.mxu3 %v3324_v39  ;;  %v2436_v39 = vor.u32 %v2749_v43, %v2433_v36 }
  0x88   :  { %1151 = vmatpush.bf16.msra.mxu0 %v2388_v63 }
  0x89   :  { %1164 = vmatpush.bf16.msra.mxu1 %v2452_v0 }
  0x8c   :  { %1152 = vmatpush.bf16.msra.mxu0 %v2380_v5 }
  0x8d   :  { %1165 = vmatpush.bf16.msra.mxu1 %v2444_v6 }
  0x90   :  { %1153 = vmatpush.bf16.msra.mxu0 %v2372_v10 }
  0x91   :  { %1166 = vmatpush.bf16.msra.mxu1 %v2436_v39 }
  0x94   :  { %1154 = vmatpush.bf16.msra.mxu0 %v2364_v17 }
  0x95   :  { %1167 = vmatpush.bf16.msra.mxu1 %v2428_v18 }
  0x98   :  { %1155 = vmatpush.bf16.msra.mxu0 %v2356_v24 }
  0x99   :  { %1168 = vmatpush.bf16.msra.mxu1 %v2420_v27 }
  0x9c   :  { %1156 = vmatpush.bf16.msra.mxu0 %v2348_v30 }
  0x9d   :  { %1169 = vmatpush.bf16.msra.mxu1 %v2412_v31 }
  0xa0   :  { %1157 = vmatpush.bf16.msra.mxu0 %v2340_v37  ;;  %v951_v40 = vpop.f32.mrf.mxu0 }
  0xa1   :  { %1170 = vmatpush.bf16.msra.mxu1 %v2404_v38  ;;  %v964_v41 = vpop.f32.mrf.mxu1  ;;  %v1179_v38 = vperm.slane %v1176_v7, 1 }
  0xa2   :  { %v965_v51 = vadd.f32 %v964_v41, %v951_v40  ;;  %v1187_v41 = vperm.slane %v1184_v60, 1 }
  0xa3   :  { %1158 = vmatmul.bf16.vlgmr.msra.gmra.mxu0 %v3344_v49 }
  0xa4   :  { %1171 = vmatmul.bf16.vlgmr.msra.gmra.mxu1 %v3523_v22 }
  0xa8   :  { %v977_v44 = vpop.f32.mrf.mxu2  ;;  %v953_v45 = vpop.f32.mrf.mxu0 }
  0xa9   :  { %v990_v42 = vpop.f32.mrf.mxu3  ;;  %v966_v46 = vpop.f32.mrf.mxu1  ;;  %v978_v52 = vadd.f32 %v977_v44, %v965_v51 }
  0xab   :  { %v991_v56 = vadd.f32 %v990_v42, %v978_v52 }
  0xb0   :  { %v979_v48 = vpop.f32.mrf.mxu2 }
  0xb1   :  { %v992_v47 = vpop.f32.mrf.mxu3 }
  0xba   :  { %v1358_v44 = vpop.permute.xlu1 %1357 }
  0xbb   :  { %v1205_v5 = vpop.permute.xlu0 %1204 }
  0xc0   :  { %v1003_v50 = vpop.f32.mrf.mxu0 }
  0xc1   :  { %v1016_v12 = vpop.f32.mrf.mxu1  ;;  %v1004_v57 = vadd.f32 %v1003_v50, %v991_v56  ;;  %v1518_v56 = vpop.permute.xlu2 %1517 }
  0xc3   :  { %v1017_v58 = vadd.f32 %v1016_v12, %v1004_v57 }
  0xc5   :  { %v1285_v14 = vpop.permute.xlu0 %1284 }
  0xc8   :  { %v1029_v11 = vpop.f32.mrf.mxu2  ;;  %v1005_v53 = vpop.f32.mrf.mxu0 }
  0xc9   :  { %v1042_v54 = vpop.f32.mrf.mxu3  ;;  %v1018_v55 = vpop.f32.mrf.mxu1  ;;  %v1030_v59 = vadd.f32 %v1029_v11, %v1017_v58 }
  0xcb   :  { %v1043_v61 = vadd.f32 %v1042_v54, %v1030_v59 }
  0xd0   :  { %v1031_v49 = vpop.f32.mrf.mxu2 }
  0xd1   :  { %v1044_v22 = vpop.f32.mrf.mxu3 }
  0xd2   :  { %v1438_v22 = vpop.permute.xlu1 %1437 }
  0xe0   :  { %v1055_v63 = vpop.f32.mrf.mxu0 }
  0xe1   :  { %v1056_v0 = vadd.f32 %v1055_v63, %v1043_v61  ;;  %v1068_v2 = vpop.f32.mrf.mxu1 }
  0xe3   :  { %v1182_v3 = vmul.f32 %v1178_v62, %v1056_v0 }
  0xe5   :  { %v3803_v4 = vadd.f32 %v1186_v1, %v1182_v3 }
  0xe7   :  { %v1194_v6 = vrot.slane %v3803_v4, 6  ;;  %v1276_v13 = vrot.slane %v3803_v4, 7  ;;  %v1509_v51 = vrot.slane %v3803_v4, 2  ;;  %v1429_v55 = vrot.slane %v3803_v4, 1 }
  0xe8   :  { %v1081_v8 = vpop.f32.mrf.mxu2  ;;  %v1057_v9 = vpop.f32.mrf.mxu0  ;;  %v3839_v59 = vmul.f32 %v1358_v44, %v3803_v4  ;;  %v3866_v4 = vld [vmem:[%s4301_s5 + $0x14] ss:$8 sm:$0x3] }
  0xe9   :  { %v1199_v43 = vsel %vm1198_vm0, 0.0, %v1194_v6  ;;  %v1094_v10 = vpop.f32.mrf.mxu3  ;;  %v1070_v39 = vpop.f32.mrf.mxu1  ;;  %v1281_v15 = vsel %vm1280_vm1, 0.0, %v1276_v13  ;;  %v1082_v23 = vadd.f32 %v1081_v8, %v1068_v2  ;;  %v1514_v49 = vsel %vm1513_vm2, %v1509_v51, 0.0  ;;  %v3859_v2 = vld [vmem:[%s4301_s5 + $0x12] ss:$8 sm:$0x3] }
  0xea   :  { %v3807_v36 = vmul.f32 %v1205_v5, %v1199_v43  ;;  %v3813_v17 = vmul.f32 %v1285_v14, %v1281_v15  ;;  %v3834_v57 = vmul.f32 %v1518_v56, %v1514_v49  ;;  %v1434_v58 = vsel %vm1433_vm3, %v1429_v55, 0.0  ;;  %v3876_v6 = vld [vmem:[%s4301_s5 + $0x2] ss:$8 sm:$0x3]  ;;  %v2607_v55 = vld [vmem:[%s4302_s7 + $0xf0] sm:$0xf] }
  0xeb   :  { %v1095_v26 = vadd.f32 %v1094_v10, %v1082_v23  ;;  %v3841_v7 = vmul.f32 %v1438_v22, %v1434_v58  ;;  %v1366_v8 = vperm.slane %v3859_v2, 1  ;;  %v1397_v9 = vperm.slane %v3866_v4, 0  ;;  %v3885_v39 = vld [vmem:[%s4301_s5 + $0x17] ss:$8 sm:$0x3] }
  0xec   :  { %1221 = vrot.lane.b32.xlu2 %v3807_v36, %s2806_s2  ;;  %v1398_v43 = vperm.slane %v3866_v4, 1  ;;  %v1244_v13 = vperm.slane %v3876_v6, 0  ;;  %v1445_v15 = vperm.slane %v3885_v39, 0  ;;  %v3964_v51 = vld [vmem:[%s4301_s5 + $0x3] ss:$8 sm:$0x3] }
  0xed   :  { %v2478_v4 = vld [vmem:[%s4301_s5 + $0x22] ss:$8 sm:$0x3] }
  0xf0   :  { %v1083_v16 = vpop.f32.mrf.mxu2 }
  0xf1   :  { %v1096_v18 = vpop.f32.mrf.mxu3  ;;  %v3893_v16 = vld [vmem:[%s4301_s5 + $0x5] ss:$8 sm:$0x3] }
  0xf2   :  { %v3898_v18 = vld [vmem:[%s4301_s5 + $0x7] ss:$8 sm:$0x3]  ;;  %v1292_v23 = vperm.slane %v3893_v16, 0 }
  0xf4   :  { %1302 = vrot.lane.b32.xlu2 %v3813_v17, %s2806_s2 }
 0x100   :  { %v1107_v19 = vpop.f32.mrf.mxu0 }
 0x101   :  { %v1120_v20 = vpop.f32.mrf.mxu1  ;;  %v1108_v29 = vadd.f32 %v1107_v19, %v1095_v26  ;;  %v3903_v19 = vld [vmem:[%s4301_s5 + $0x16] ss:$8 sm:$0x3]  ;;  %v1324_v26 = vperm.slane %v3898_v18, 0 }
 0x103   :  { %v1121_v31 = vadd.f32 %v1120_v20, %v1108_v29  ;;  %v3908_v20 = vld [vmem:[%s4301_s5 + $0x11] ss:$8 sm:$0x3]  ;;  %v3928_v29 = vld [vmem:[%s4301_s5 + $0x6] ss:$8 sm:$0x3] }
 0x108   :  { %v1133_v21 = vpop.f32.mrf.mxu2  ;;  %v1109_v24 = vpop.f32.mrf.mxu0 }
 0x109   :  { %v1146_v27 = vpop.f32.mrf.mxu3  ;;  %v1122_v25 = vpop.f32.mrf.mxu1  ;;  %v1134_v32 = vadd.f32 %v1133_v21, %v1121_v31  ;;  %v3913_v21 = vld [vmem:[%s4301_s5 + $0x4] ss:$8 sm:$0x3]  ;;  %v1293_v24 = vperm.slane %v3893_v16, 1  ;;  %v2543_v31 = vld [vmem:[%s4302_s7 + $0x70] sm:$0xf] }
 0x10a   :  { %v3921_v25 = vld [vmem:[%s4301_s5 + $0x1] ss:$8 sm:$0x3] }
 0x10b   :  { %v1147_v33 = vadd.f32 %v1146_v27, %v1134_v32  ;;  %v2772_v32 = vld [vmem:[%s4302_s7 + $0x74] sm:$0xf0] }
 0x110   :  { %v1135_v28 = vpop.f32.mrf.mxu2 }
 0x111   :  { %v1148_v30 = vpop.f32.mrf.mxu3  ;;  %v1325_v28 = vperm.slane %v3898_v18, 1  ;;  %v4155_v18 = vld [vmem:[%s4301_s5 + $0x15] ss:$8 sm:$0x3] }
 0x120   :  { %v1159_v34 = vpop.f32.mrf.mxu0 }
 0x121   :  { %v1160_v35 = vadd.f32 %v1159_v34, %v1147_v33  ;;  %v1172_v37 = vpop.f32.mrf.mxu1  ;;  %v2771_v33 = vld [vmem:[%s4302_s7 + $0x74] sm:$0xf]  ;;  %v1421_v34 = vperm.slane %v3903_v19, 0 }
 0x123   :  { %v1173_v40 = vadd.f32 %v1172_v37, %v1160_v35  ;;  %v1348_v35 = vperm.slane %v3908_v20, 0  ;;  %v1233_v37 = vperm.slane %v3921_v25, 0 }
 0x125   :  { %v1183_v42 = vmul.f32 %v1179_v38, %v1173_v40  ;;  %v2544_v38 = vor.u32 %v2772_v32, %v2543_v31  ;;  %v2545_v40 = vld [vmem:[%s4302_s7 + $0x78] sm:$0xf0]  ;;  %v1234_v32 = vperm.slane %v3921_v25, 1  ;;  %v2768_v25 = vld [vmem:[%s4302_s7 + $0x54] sm:$0xf0] }
 0x126   :  { %v2609_v31 = vld [vmem:[%s4302_s7 + $0xf8] sm:$0xf0] }
 0x127   :  { %v1191_v45 = vadd.f32 %v1187_v41, %v1183_v42  ;;  %v1268_v41 = vperm.slane %v3913_v21, 0  ;;  %1793 = vmatpush.bf16.msra.mxu2 %v2544_v38  ;;  %v3998_v38 = vld [vmem:[%s4301_s5 + $0x13] ss:$8 sm:$0x3] }
 0x128   :  { %v1161_v46 = vpop.f32.mrf.mxu0 }
 0x129   :  { %v1174_v47 = vpop.f32.mrf.mxu1  ;;  %v3817_v48 = vmul.f32 %v1358_v44, %v1191_v45  ;;  %v1277_v50 = vrot.slane %v1191_v45, 7  ;;  %v1195_v12 = vrot.slane %v1191_v45, 6  ;;  %v1510_v60 = vrot.slane %v1191_v45, 2 }
 0x12a   :  { %v1430_v61 = vrot.slane %v1191_v45, 1  ;;  %v3953_v45 = vld [vmem:[%s4301_s5 + $0x10] ss:$8 sm:$0x3]  ;;  %v2548_v46 = vor.u32 %v2771_v33, %v2545_v40  ;;  %v1313_v47 = vperm.slane %v3928_v29, 0  ;;  %v1257_v33 = vperm.slane %v3964_v51, 0 }
 0x12b   :  { %1377 = vrot.lane.b32.xlu2 %v3817_v48, %s2806_s2  ;;  %v1282_v11 = vsel %vm1280_vm1, 0.0, %v1277_v50  ;;  %v1200_v52 = vsel %vm1198_vm0, 0.0, %v1195_v12  ;;  %v1515_v62 = vsel %vm1513_vm2, %v1510_v60, 0.0  ;;  %v1314_v12 = vperm.slane %v3928_v29, 1  ;;  %v2788_v60 = vld [vmem:[%s4302_s7 + $0xf4] sm:$0xf0] }
 0x12c   :  { %v3824_v53 = vmul.f32 %v1285_v14, %v1282_v11  ;;  %v3826_v54 = vmul.f32 %v1205_v5, %v1200_v52  ;;  %v1435_v63 = vsel %vm1433_vm3, %v1430_v61, 0.0  ;;  %v3848_v0 = vmul.f32 %v1518_v56, %v1515_v62  ;;  %v3871_v5 = vld [vmem:[%s4301_s5] ss:$8 sm:$0x3]  ;;  %1819 = vmatpush.bf16.msrb.mxu0 %v2548_v46  ;;  %v2769_v61 = vld [vmem:[%s4302_s7 + $0x64] sm:$0xf] }
 0x12d   :  { %v3850_v1 = vmul.f32 %v1438_v22, %v1435_v63  ;;  %v1212_v10 = vperm.slane %v3871_v5, 1  ;;  %v1245_v14 = vperm.slane %v3876_v6, 1  ;;  %v1211_v27 = vperm.slane %v3871_v5, 0  ;;  %v2535_v11 = vld [vmem:[%s4302_s7 + $0x60] sm:$0xf] }
 0x12e   :  { %1304 = vrot.lane.b32.xlu0 %v3824_v53, %s2806_s2  ;;  %1223 = vrot.lane.b32.xlu1 %v3826_v54, %s2806_s2  ;;  %v2770_v52 = vld [vmem:[%s4302_s7 + $0x64] sm:$0xf0]  ;;  %v1337_v49 = vperm.slane %v3953_v45, 0  ;;  %v1338_v22 = vperm.slane %v3953_v45, 1  ;;  %v2608_v62 = vor.u32 %v2788_v60, %v2607_v55  ;;  %v2537_v63 = vld [vmem:[%s4302_s7 + $0x68] sm:$0xf0] }
 0x12f   :  { %v1215_v42 = vmul.f32 0.0, %v1211_v27  ;;  %v2536_v58 = vor.u32 %v2770_v52, %v2535_v11  ;;  %v2787_v27 = vld [vmem:[%s4302_s7 + $0xf4] sm:$0xf]  ;;  %v2540_v40 = vor.u32 %v2769_v61, %v2537_v63  ;;  %v2527_v46 = vld [vmem:[%s4302_s7 + $0x50] sm:$0xf]  ;;  %v1258_v52 = vperm.slane %v3964_v51, 1 }
 0x130   :  { %1806 = vmatpush.bf16.msra.mxu3 %v2608_v62  ;;  %v4010_v55 = vmul.f32 0.0, %v1292_v23  ;;  %v2786_v60 = vld [vmem:[%s4302_s7 + $0xe4] sm:$0xf0]  ;;  %v2767_v61 = vld [vmem:[%s4302_s7 + $0x54] sm:$0xf]  ;;  %v1248_v62 = vmul.f32 %v1244_v13, %v3807_v36 }
 0x131   :  { %1794 = vmatpush.bf16.msra.mxu2 %v2536_v58  ;;  %1820 = vmatpush.bf16.msrb.mxu0 %v2540_v40  ;;  %v2528_v58 = vor.u32 %v2768_v25, %v2527_v46  ;;  %v2529_v23 = vld [vmem:[%s4302_s7 + $0x58] sm:$0xf0]  ;;  %v2785_v51 = vld [vmem:[%s4302_s7 + $0xe4] sm:$0xf]  ;;  %v1386_v40 = vperm.slane %v3998_v38, 0  ;;  %v1249_v46 = vmul.f32 %v1245_v14, %v3826_v54  ;;  %v1272_v25 = vmul.f32 %v1268_v41, %v3826_v54 }
 0x132   :  { %v2532_v6 = vor.u32 %v2767_v61, %v2529_v23  ;;  %v2784_v54 = vld [vmem:[%s4302_s7 + $0xd4] sm:$0xf0]  ;;  %v2765_v41 = vld [vmem:[%s4302_s7 + $0x44] sm:$0xf]  ;;  %v2593_v61 = vld [vmem:[%s4302_s7 + $0xd8] sm:$0xf0] }
 0x133   :  { %1535 = vrot.lane.b32.xlu2 %v3834_v57, %s2806_s2  ;;  %v2487_v45 = vld [vmem:[%s4302_s7] sm:$0xf] }
 0x135   :  { %1795 = vmatpush.bf16.msra.mxu2 %v2528_v58  ;;  %1821 = vmatpush.bf16.msrb.mxu0 %v2532_v6 }
 0x136   :  { %1455 = vrot.lane.b32.xlu0 %v3841_v7, %s2806_s2  ;;  %1375 = vrot.lane.b32.xlu1 %v3839_v59, %s2806_s2 }
 0x13e   :  { %1537 = vrot.lane.b32.xlu0 %v3848_v0, %s2806_s2  ;;  %1457 = vrot.lane.b32.xlu1 %v3850_v1, %s2806_s2 }
 0x146   :  { %v3861_v3 = vpop.permute.xlu2 %1221 }
 0x147   :  { %v1229_v44 = vsel %vm1225_vm4, 0.0, %v3861_v3 }
 0x148   :  { %v1237_v56 = vmul.f32 %v1233_v37, %v1229_v44  ;;  %v1269_v37 = vperm.slane %v3913_v21, 1  ;;  %v2612_v44 = vor.u32 %v2787_v27, %v2609_v31  ;;  %v2599_v21 = vld [vmem:[%s4302_s7 + $0xe0] sm:$0xf] }
 0x14a   :  { %v1239_v11 = vadd.f32 %v1237_v56, %v1215_v42  ;;  %1832 = vmatpush.bf16.msrb.mxu1 %v2612_v44  ;;  %v2600_v42 = vor.u32 %v2786_v60, %v2599_v21  ;;  %v2601_v56 = vld [vmem:[%s4302_s7 + $0xe8] sm:$0xf0]  ;;  %v1273_v27 = vmul.f32 0.0, %v1269_v37  ;;  %v1216_v44 = vmul.f32 %v1212_v10, %v3807_v36  ;;  %v2766_v37 = vld [vmem:[%s4302_s7 + $0x44] sm:$0xf0] }
 0x14b   :  { %v2591_v36 = vld [vmem:[%s4302_s7 + $0xd0] sm:$0xf]  ;;  %v2604_v14 = vor.u32 %v2785_v51, %v2601_v56  ;;  %v1349_v60 = vperm.slane %v3908_v20, 1 }
 0x14c   :  { %1807 = vmatpush.bf16.msra.mxu3 %v2600_v42  ;;  %v1250_v5 = vadd.f32 %v1248_v62, %v1239_v11  ;;  %v2592_v11 = vor.u32 %v2784_v54, %v2591_v36  ;;  %v1365_v42 = vperm.slane %v3859_v2, 0  ;;  %v1387_v54 = vperm.slane %v3998_v38, 1  ;;  %v2489_v2 = vld [vmem:[%s4302_s7 + $0x8] sm:$0xf0]  ;;  %v2773_v38 = vld [vmem:[%s4302_s7 + $0x84] sm:$0xf] }
 0x14e   :  { %v3930_v30 = vpop.permute.xlu2 %1302  ;;  %1833 = vmatpush.bf16.msrb.mxu1 %v2604_v14  ;;  %v4088_v14 = vmul.f32 0.0, %v1349_v60 }
 0x14f   :  { %v3958_v50 = vsel %vm1225_vm4, 0.0, %v3930_v30 }
 0x150   :  { %1808 = vmatpush.bf16.msra.mxu3 %v2592_v11  ;;  %v1317_v36 = vmul.f32 %v1313_v47, %v3958_v50  ;;  %v2781_v50 = vld [vmem:[%s4302_s7 + $0xc4] sm:$0xf] }
 0x1a0   :  { %v1224_v63 = vpop.permute.xlu1 %1223  ;;  %v1305_v56 = vpop.permute.xlu0 %1304 }
 0x1a1   :  { %v1226_v31 = vsel %vm1225_vm4, %v3861_v3, %v1224_v63  ;;  %v1253_v13 = vsel %vm1225_vm4, %v1224_v63, 0.0  ;;  %v2519_v3 = vld [vmem:[%s4302_s7 + $0x40] sm:$0xf] }
 0x1a2   :  { %v1238_v21 = vmul.f32 %v1234_v32, %v1226_v31  ;;  %v1261_v10 = vmul.f32 %v1257_v33, %v1226_v31  ;;  %v2521_v32 = vld [vmem:[%s4302_s7 + $0x48] sm:$0xf0]  ;;  %v2520_v63 = vor.u32 %v2766_v37, %v2519_v3  ;;  %v2783_v33 = vld [vmem:[%s4302_s7 + $0xd4] sm:$0xf]  ;;  %v2764_v3 = vld [vmem:[%s4302_s7 + $0x34] sm:$0xf0] }
 0x1a3   :  { %v2524_v23 = vor.u32 %v2765_v41, %v2521_v32  ;;  %v2596_v51 = vor.u32 %v2783_v33, %v2593_v61  ;;  %v2583_v37 = vld [vmem:[%s4302_s7 + $0xc0] sm:$0xf]  ;;  %v1306_v41 = vsel %vm1225_vm4, %v3930_v30, %v1305_v56  ;;  %v2762_v30 = vld [vmem:[%s4302_s7 + $0x24] sm:$0xf0]  ;;  %v1328_v61 = vmul.f32 %v1324_v26, %v3813_v17 }
 0x1a4   :  { %v1240_v58 = vadd.f32 %v1238_v21, %v1216_v44  ;;  %v1263_v62 = vadd.f32 %v1261_v10, %v1250_v5  ;;  %v1262_v44 = vmul.f32 %v1258_v52, %v1253_v13  ;;  %1796 = vmatpush.bf16.msra.mxu2 %v2520_v63  ;;  %v2511_v21 = vld [vmem:[%s4302_s7 + $0x30] sm:$0xf]  ;;  %v2782_v13 = vld [vmem:[%s4302_s7 + $0xc4] sm:$0xf0]  ;;  %v2763_v5 = vld [vmem:[%s4302_s7 + $0x34] sm:$0xf]  ;;  %v1297_v63 = vmul.f32 %v1293_v24, %v3813_v17 }
 0x1a5   :  { %v2512_v52 = vor.u32 %v2764_v3, %v2511_v21  ;;  %v2513_v10 = vld [vmem:[%s4302_s7 + $0x38] sm:$0xf0]  ;;  %v2584_v47 = vor.u32 %v2782_v13, %v2583_v37  ;;  %1822 = vmatpush.bf16.msrb.mxu0 %v2524_v23  ;;  %1834 = vmatpush.bf16.msrb.mxu1 %v2596_v51  ;;  %v2503_v33 = vld [vmem:[%s4302_s7 + $0x20] sm:$0xf]  ;;  %v2505_v23 = vld [vmem:[%s4302_s7 + $0x28] sm:$0xf0]  ;;  %v1318_v51 = vmul.f32 %v1314_v12, %v1306_v41 }
 0x1a6   :  { %v1251_v31 = vadd.f32 %v1249_v46, %v1240_v58  ;;  %v1274_v46 = vadd.f32 %v1272_v25, %v1263_v62  ;;  %v2585_v25 = vld [vmem:[%s4302_s7 + $0xc8] sm:$0xf0]  ;;  %v4100_v58 = vmul.f32 0.0, %v1365_v42  ;;  %v2516_v60 = vor.u32 %v2763_v5, %v2513_v10  ;;  %v2780_v62 = vld [vmem:[%s4302_s7 + $0xb4] sm:$0xf0] }
 0x1a7   :  { %1809 = vmatpush.bf16.msra.mxu3 %v2584_v47  ;;  %v2588_v24 = vor.u32 %v2781_v50, %v2585_v25  ;;  %v2761_v42 = vld [vmem:[%s4302_s7 + $0x24] sm:$0xf]  ;;  %v1341_v17 = vmul.f32 %v1337_v49, %v1306_v41  ;;  %v2577_v21 = vld [vmem:[%s4302_s7 + $0xb8] sm:$0xf0]  ;;  %v1333_v3 = vsel %vm1225_vm4, %v1305_v56, 0.0  ;;  %v1329_v49 = vmul.f32 %v1325_v28, %v3824_v53 }
 0x1a8   :  { %v1264_v6 = vadd.f32 %v1262_v44, %v1251_v31  ;;  %v1298_v32 = vadd.f32 %v4010_v55, %v1274_v46  ;;  %1797 = vmatpush.bf16.msra.mxu2 %v2512_v52  ;;  %v2575_v55 = vld [vmem:[%s4302_s7 + $0xb0] sm:$0xf]  ;;  %v2779_v44 = vld [vmem:[%s4302_s7 + $0xb4] sm:$0xf]  ;;  %v1376_v37 = vpop.permute.xlu1 %1375  ;;  %v2508_v29 = vor.u32 %v2761_v42, %v2505_v23  ;;  %v2760_v56 = vld [vmem:[%s4302_s7 + $0x14] sm:$0xf0]  ;;  %v1352_v5 = vmul.f32 %v1348_v35, %v3824_v53 }
 0x1a9   :  { %v2576_v31 = vor.u32 %v2780_v62, %v2575_v55  ;;  %1823 = vmatpush.bf16.msrb.mxu0 %v2516_v60  ;;  %1835 = vmatpush.bf16.msrb.mxu1 %v2588_v24  ;;  %v2580_v12 = vor.u32 %v2779_v44, %v2577_v21  ;;  %v2495_v52 = vld [vmem:[%s4302_s7 + $0x10] sm:$0xf]  ;;  %v2567_v13 = vld [vmem:[%s4302_s7 + $0xa0] sm:$0xf]  ;;  %v2759_v47 = vld [vmem:[%s4302_s7 + $0x14] sm:$0xf]  ;;  %v1342_v20 = vmul.f32 %v1338_v22, %v1333_v3  ;;  %v1378_v55 = vpop.permute.xlu2 %1377 }
 0x1aa   :  { %v1275_v11 = vadd.f32 %v1273_v27, %v1264_v6  ;;  %v1319_v16 = vadd.f32 %v1317_v36, %v1298_v32  ;;  %v2504_v27 = vor.u32 %v2762_v30, %v2503_v33  ;;  %v2496_v10 = vor.u32 %v2760_v56, %v2495_v52  ;;  %v2778_v6 = vld [vmem:[%s4302_s7 + $0xa4] sm:$0xf0]  ;;  %v2497_v53 = vld [vmem:[%s4302_s7 + $0x18] sm:$0xf0]  ;;  %v2777_v41 = vld [vmem:[%s4302_s7 + $0xa4] sm:$0xf] }
 0x1ab   :  { %1810 = vmatpush.bf16.msra.mxu3 %v2576_v31  ;;  %v1382_v50 = vsel %vm1225_vm4, 0.0, %v1376_v37  ;;  %v2568_v25 = vor.u32 %v2778_v6, %v2567_v13  ;;  %v2569_v32 = vld [vmem:[%s4302_s7 + $0xa8] sm:$0xf0]  ;;  %v2758_v22 = vld [vmem:[%s4302_s7 + $0x4] sm:$0xf0]  ;;  %v1370_v33 = vmul.f32 %v1366_v8, %v3839_v59  ;;  %v1401_v30 = vmul.f32 %v1397_v9, %v3839_v59 }
 0x1ac   :  { %v1299_v26 = vadd.f32 %v1297_v63, %v1275_v11  ;;  %v1330_v36 = vadd.f32 %v1328_v61, %v1319_v16  ;;  %1798 = vmatpush.bf16.msra.mxu2 %v2504_v27  ;;  %v2500_v63 = vor.u32 %v2759_v47, %v2497_v53  ;;  %v2559_v11 = vld [vmem:[%s4302_s7 + $0x90] sm:$0xf]  ;;  %v2776_v16 = vld [vmem:[%s4302_s7 + $0x94] sm:$0xf0]  ;;  %v2757_v24 = vld [vmem:[%s4302_s7 + $0x4] sm:$0xf]  ;;  %v1379_v59 = vsel %vm1225_vm4, %v1376_v37, %v1378_v55 }
 0x1ad   :  { %1824 = vmatpush.bf16.msrb.mxu0 %v2508_v29  ;;  %1836 = vmatpush.bf16.msrb.mxu1 %v2580_v12  ;;  %v1410_v8 = vperm.slane %v4155_v18, 0  ;;  %v1390_v9 = vmul.f32 %v1386_v40, %v1382_v50  ;;  %v2775_v62 = vld [vmem:[%s4302_s7 + $0x94] sm:$0xf]  ;;  %v2561_v42 = vld [vmem:[%s4302_s7 + $0x98] sm:$0xf0]  ;;  %v1411_v23 = vperm.slane %v4155_v18, 1  ;;  %v2560_v44 = vor.u32 %v2776_v16, %v2559_v11 }
 0x1ae   :  { %v1320_v46 = vadd.f32 %v1318_v51, %v1299_v26  ;;  %v1343_v28 = vadd.f32 %v1341_v17, %v1330_v36  ;;  %v2572_v17 = vor.u32 %v2777_v41, %v2569_v32  ;;  %v1406_v26 = vsel %vm1225_vm4, %v1378_v55, 0.0  ;;  %v2476_v40 = vld [vmem:[%s4301_s5 + $0x20] ss:$8 sm:$0x3] }
 0x1af   :  { %1811 = vmatpush.bf16.msra.mxu3 %v2568_v25  ;;  %v2492_v21 = vor.u32 %v2757_v24, %v2489_v2  ;;  %v1391_v37 = vmul.f32 %v1387_v54, %v1379_v59  ;;  %v1422_v36 = vperm.slane %v3903_v19, 1  ;;  %v2551_v29 = vld [vmem:[%s4302_s7 + $0x80] sm:$0xf]  ;;  %v2774_v12 = vld [vmem:[%s4302_s7 + $0x84] sm:$0xf0]  ;;  %v1414_v52 = vmul.f32 %v1410_v8, %v1379_v59 }
 0x1b0   :  { %v1331_v35 = vadd.f32 %v1329_v49, %v1320_v46  ;;  %v1354_v60 = vadd.f32 %v1352_v5, %v1343_v28  ;;  %1799 = vmatpush.bf16.msra.mxu2 %v2496_v10  ;;  %v1456_v49 = vpop.permute.xlu0 %1455  ;;  %v2552_v56 = vor.u32 %v2774_v12, %v2551_v29  ;;  %v2553_v54 = vld [vmem:[%s4302_s7 + $0x88] sm:$0xf0]  ;;  %v1446_v13 = vperm.slane %v3885_v39, 1  ;;  %v2477_v5 = vld [vmem:[%s4301_s5 + $0x21] ss:$8 sm:$0x3] }
 0x1b1   :  { %1825 = vmatpush.bf16.msrb.mxu0 %v2500_v63  ;;  %1837 = vmatpush.bf16.msrb.mxu1 %v2572_v17  ;;  %v1402_v18 = vmul.f32 %v1398_v43, %v3817_v48  ;;  %v1425_v28 = vmul.f32 %v1421_v34, %v3817_v48  ;;  %v1415_v6 = vmul.f32 %v1411_v23, %v1406_v26  ;;  %v1466_v47 = vperm.slane %v2476_v40, 0  ;;  %v1458_v43 = vpop.permute.xlu1 %1457  ;;  %v2479_v39 = vld [vmem:[%s4301_s5 + $0x23] ss:$8 sm:$0x3] }
 0x1b2   :  { %v1344_v61 = vadd.f32 %v1342_v20, %v1331_v35  ;;  %v1371_v27 = vadd.f32 %v4100_v58, %v1354_v60  ;;  %v2488_v58 = vor.u32 %v2758_v22, %v2487_v45  ;;  %v1449_v53 = vmul.f32 0.0, %v1445_v15  ;;  %v2480_v22 = vld [vmem:[%s4301_s5 + $0x24] ss:$8 sm:$0x3] }
 0x1b3   :  { %1812 = vmatpush.bf16.msra.mxu3 %v2560_v44  ;;  %v1462_v35 = vsel %vm1225_vm4, 0.0, %v1456_v49  ;;  %v1426_v25 = vmul.f32 0.0, %v1422_v36  ;;  %v2556_v19 = vor.u32 %v2773_v38, %v2553_v54  ;;  %v1477_v48 = vperm.slane %v2477_v5, 0  ;;  %v2481_v2 = vld [vmem:[%s4301_s5 + $0x25] ss:$8 sm:$0x3] }
 0x1b4   :  { %v1355_v51 = vadd.f32 %v4088_v14, %v1344_v61  ;;  %v1392_v31 = vadd.f32 %v1390_v9, %v1371_v27  ;;  %1800 = vmatpush.bf16.msra.mxu2 %v2488_v58  ;;  %v2564_v14 = vor.u32 %v2775_v62, %v2561_v42  ;;  %v1467_v41 = vperm.slane %v2476_v40, 1  ;;  %v1536_v62 = vpop.permute.xlu2 %1535 }
 0x1b5   :  { %1826 = vmatpush.bf16.msrb.mxu0 %v2492_v21  ;;  %v1470_v32 = vmul.f32 %v1466_v47, %v1462_v35  ;;  %v1490_v63 = vperm.slane %v2478_v4, 0  ;;  %v1459_v45 = vsel %vm1225_vm4, %v1456_v49, %v1458_v43  ;;  %v1450_v11 = vmul.f32 %v1446_v13, %v3841_v7 }
 0x1b6   :  { %v1372_v3 = vadd.f32 %v1370_v33, %v1355_v51  ;;  %v1403_v46 = vadd.f32 %v1401_v30, %v1392_v31  ;;  %1838 = vmatpush.bf16.msrb.mxu1 %v2564_v14  ;;  %v1478_v33 = vperm.slane %v2477_v5, 1  ;;  %v1525_v55 = vperm.slane %v2480_v22, 0 }
 0x1b7   :  { %1813 = vmatpush.bf16.msra.mxu3 %v2552_v56  ;;  %v1481_v61 = vmul.f32 %v1477_v48, %v3841_v7  ;;  %v1501_v16 = vperm.slane %v2479_v39, 0  ;;  %v1491_v8 = vperm.slane %v2478_v4, 1  ;;  %v1502_v27 = vperm.slane %v2479_v39, 1  ;;  %v2482_v7 = vld [vmem:[%s4301_s5 + $0x26] ss:$8 sm:$0x3] }
 0x1b8   :  { %v1393_v10 = vadd.f32 %v1391_v37, %v1372_v3  ;;  %v1416_v20 = vadd.f32 %v1414_v52, %v1403_v46  ;;  %v1471_v9 = vmul.f32 %v1467_v41, %v1459_v45  ;;  %v1486_v23 = vsel %vm1225_vm4, %v1458_v43, 0.0  ;;  %v2483_v37 = vld [vmem:[%s4301_s5 + $0x27] ss:$8 sm:$0x3]  ;;  %v1538_v36 = vpop.permute.xlu0 %1537  ;;  %v1589_v4 = vld [vmem:[%s4303_s6] sm:$0x3] }
 0x1b9   :  { %v1494_v51 = vmul.f32 %v1490_v63, %v1459_v45  ;;  %v1526_v17 = vperm.slane %v2480_v22, 1  ;;  %v1482_v58 = vmul.f32 %v1478_v33, %v3850_v1  ;;  %v1505_v40 = vmul.f32 %v1501_v16, %v3850_v1  ;;  %v2484_v52 = vld [vmem:[%s4301_s5 + $0x30] ss:$8 sm:$0x3] }
 0x1ba   :  { %v1404_v50 = vadd.f32 %v1402_v18, %v1393_v10  ;;  %v1427_v34 = vadd.f32 %v1425_v28, %v1416_v20  ;;  %1839 = vmatpush.bf16.msrb.mxu1 %v2556_v19  ;;  %v1546_v31 = vperm.slane %v2481_v2, 0  ;;  %v1529_v44 = vmul.f32 0.0, %v1525_v55 }
 0x1bb   :  { %v1542_v3 = vsel %vm1225_vm4, 0.0, %v1536_v62  ;;  %v1506_v14 = vmul.f32 0.0, %v1502_v27  ;;  %v1495_v12 = vmul.f32 %v1491_v8, %v1486_v23  ;;  %v1557_v49 = vperm.slane %v2482_v7, 0  ;;  %v1853_v27 = vld [vmem:[%s4305_s9] sm:$0x3] }
 0x1bc   :  { %v1417_v15 = vadd.f32 %v1415_v6, %v1404_v50  ;;  %v1451_v60 = vadd.f32 %v1449_v53, %v1427_v34  ;;  %v1547_v1 = vperm.slane %v2481_v2, 1  ;;  %v1550_v38 = vmul.f32 %v1546_v31, %v1542_v3 }
 0x1bd   :  { %v1570_v54 = vperm.slane %v2483_v37, 0  ;;  %v1539_v13 = vsel %vm1225_vm4, %v1536_v62, %v1538_v36  ;;  %v1558_v18 = vperm.slane %v2482_v7, 1  ;;  %v1530_v28 = vmul.f32 %v1526_v17, %v3834_v57 }
 0x1be   :  { %v1428_v30 = vadd.f32 %v1426_v25, %v1417_v15  ;;  %v1472_v24 = vadd.f32 %v1470_v32, %v1451_v60  ;;  %v1561_v6 = vmul.f32 %v1557_v49, %v3834_v57  ;;  %v1581_v47 = vperm.slane %v2484_v52, 0 }
 0x1bf   :  { %v1582_v20 = vperm.slane %v2484_v52, 1  ;;  %v1571_v35 = vperm.slane %v2483_v37, 1  ;;  %v1551_v50 = vmul.f32 %v1547_v1, %v1539_v13  ;;  %v1566_v43 = vsel %vm1225_vm4, %v1538_v36, 0.0 }
 0x1c0   :  { %v1452_v59 = vadd.f32 %v1450_v11, %v1428_v30  ;;  %v1483_v42 = vadd.f32 %v1481_v61, %v1472_v24  ;;  %v1574_v19 = vmul.f32 %v1570_v54, %v1539_v13  ;;  %v1562_v34 = vmul.f32 %v1558_v18, %v3848_v0 }
 0x1c1   :  { %v1585_v15 = vmul.f32 %v1581_v47, %v3848_v0  ;;  %v1591_v41 = vperm.slane %v1589_v4, 0  ;;  %v1575_v32 = vmul.f32 %v1571_v35, %v1566_v43  ;;  %v1586_v63 = vmul.f32 0.0, %v1582_v20  ;;  %v1845_v0 = vld [vmem:[%s4304_s8] sm:$0x3] }
 0x1c2   :  { %v1473_v26 = vadd.f32 %v1471_v9, %v1452_v59  ;;  %v1496_v21 = vadd.f32 %v1494_v51, %v1483_v42  ;;  %v1592_v11 = vperm.slane %v1589_v4, 1  ;;  %v1848_v59 = vperm.slane %v1845_v0, 1 }
 0x1c3   :  { %v1856_v42 = vperm.slane %v1853_v27, 1 }
 0x1c4   :  { %v1484_v29 = vadd.f32 %v1482_v58, %v1473_v26  ;;  %v1507_v46 = vadd.f32 %v1505_v40, %v1496_v21  ;;  %v1847_v58 = vperm.slane %v1845_v0, 0  ;;  %v1863_v26 = vld [vmem:[%s4306_s10] sm:$0x3] }
 0x1c5   :  { %v1866_v37 = vperm.slane %v1863_v26, 1 }
 0x1c6   :  { %v1497_v56 = vadd.f32 %v1495_v12, %v1484_v29  ;;  %v1531_v5 = vadd.f32 %v1529_v44, %v1507_v46  ;;  %v1855_v44 = vperm.slane %v1853_v27, 0  ;;  %v1865_v12 = vperm.slane %v1863_v26, 0 }
 0x1c8   :  { %v1508_v10 = vadd.f32 %v1506_v14, %v1497_v56  ;;  %v1552_v53 = vadd.f32 %v1550_v38, %v1531_v5  ;;  %v1871_v14 = vld [vmem:[%s4307_s11] sm:$0x3] }
 0x1c9   :  { %v1874_v52 = vperm.slane %v1871_v14, 1  ;;  %v1873_v56 = vperm.slane %v1871_v14, 0 }
 0x1ca   :  { %v1532_v25 = vadd.f32 %v1530_v28, %v1508_v10  ;;  %v1563_v48 = vadd.f32 %v1561_v6, %v1552_v53 }
 0x1cc   :  { %v1553_v39 = vadd.f32 %v1551_v50, %v1532_v25  ;;  %v1576_v57 = vadd.f32 %v1574_v19, %v1563_v48 }
 0x1ce   :  { %v1564_v60 = vadd.f32 %v1562_v34, %v1553_v39  ;;  %v1587_v45 = vadd.f32 %v1585_v15, %v1576_v57 }
 0x1d0   :  { %v1577_v22 = vadd.f32 %v1575_v32, %v1564_v60  ;;  %v1595_v33 = vadd.f32 %v1591_v41, %v1587_v45 }
 0x1d2   :  { %v1588_v30 = vadd.f32 %v1586_v63, %v1577_v22  ;;  %v1597_v55 = vmax.f32 %v1595_v33, 0.0 }
 0x1d4   :  { %v1596_v61 = vadd.f32 %v1592_v11, %v1588_v30  ;;  %v1599_v16 = vpack.c.bf16 %v1597_v55, %v1597_v55 }
 0x1d6   :  { %v1598_v24 = vmax.f32 %v1596_v61, 0.0  ;;  %1801 = vmatmul.bf16.vlgmr.msra.gmra.mxu2 %v1599_v16  ;;  %1827 = vmatmul.bf16.vlgmr.msrb.gmra.mxu0 %v1599_v16 }
 0x1d8   :  { %v1600_v2 = vpack.c.bf16 %v1598_v24, %v1598_v24 }
 0x1da   :  { %1814 = vmatmul.bf16.vlgmr.msra.gmra.mxu3 %v1600_v2  ;;  %1840 = vmatmul.bf16.vlgmr.msrb.gmra.mxu1 %v1600_v2 }
 0x253   :  { %v1828_v8 = vpop.f32.mrf.mxu0 }
 0x257   :  { %v1841_v9 = vpop.f32.mrf.mxu1 }
 0x258   :  { %v1842_v62 = vadd.f32 %v1841_v9, %v1828_v8 }
 0x259   :  { %v1802_v51 = vpop.f32.mrf.mxu2 }
 0x25a   :  { %v1852_v23 = vmul.f32 %v1848_v59, %v1842_v62 }
 0x25b   :  { %v1830_v7 = vpop.f32.mrf.mxu0 }
 0x25c   :  { %v1860_v17 = vadd.f32 %v1856_v42, %v1852_v23 }
 0x25d   :  { %v1815_v40 = vpop.f32.mrf.mxu3 }
 0x25e   :  { %v1816_v31 = vadd.f32 %v1815_v40, %v1802_v51  ;;  %v1862_v3 = vmax.f32 %v1860_v17, 0.0 }
 0x25f   :  { %v1843_v21 = vpop.f32.mrf.mxu1 }
 0x260   :  { %v1851_v36 = vmul.f32 %v1847_v58, %v1816_v31  ;;  %v1870_v46 = vmul.f32 %v1866_v37, %v1862_v3 }
 0x261   :  { %v1804_v49 = vpop.f32.mrf.mxu2 }
 0x262   :  { %v1859_v29 = vadd.f32 %v1855_v44, %v1851_v36  ;;  %v1878_v13 = vadd.f32 %v1874_v52, %v1870_v46 }
 0x264   :  { %v1861_v1 = vmax.f32 %v1859_v29, 0.0 }
 0x265   :  { %v1817_v38 = vpop.f32.mrf.mxu3 }
 0x266   :  { %v1869_v54 = vmul.f32 %v1865_v12, %v1861_v1 }
 0x268   :  { %v1877_v5 = vadd.f32 %v1873_v56, %v1869_v54 }
 0x26a   :  { %v1879_v18 = vpack.c.bf16 %v1878_v13, %v1877_v5 }
 0x26c   :  { %1880 = vst [vmem:[%s4308_s12] sm:$0xff] %v1879_v18 }

// kernel: tile.728
= control target key start
LH: loop header
LB: loop body
LE: loop exit
PB: predicated region body
PF: predicated region fallthrough
CT: control target
= control target key end

     0   :  { %s22_s0 = inlined_call_operand.vmem [shape: f32[128], index: 0, kind: input, shape index: {}]   ;;  %s23_s1 = inlined_call_operand.vmem [shape: f32[2,128], index: 1, kind: output, shape index: {}]  }
   0x1   :  { %v4_v0 = vld [vmem:[%s22_s0] ss:$0 sm:$0xff] }
   0x2   :  { %5 = vst [vmem:[%s23_s1] sm:$0x3] %v4_v0 }

// kernel: forward.5
= control target key start
LH: loop header
LB: loop body
LE: loop exit
PB: predicated region body
PF: predicated region fallthrough
CT: control target
= control target key end

     0   :  { %s3998_s0 = inlined_call_operand.vmem [shape: bf16[4,1152], index: 0, kind: input, shape index: {}]   ;;  %s3999_s1 = inlined_call_operand.vmem [shape: bf16[1152,256], index: 1, kind: input, shape index: {}]   ;;  %s4000_s2 = inlined_call_operand.vmem [shape: f32[1,256], index: 2, kind: input, shape index: {}, may-alias: {2,10}]   ;;  %s4001_s3 = inlined_call_operand.vmem [shape: f32[1,256], index: 3, kind: input, shape index: {}, may-alias: {3,11}]   ;;  %s4002_s4 = inlined_call_operand.vmem [shape: f32[4,5], index: 4, kind: input, shape index: {}]   ;;  %s4003_s5 = inlined_call_operand.vmem [shape: f32[25,256], index: 5, kind: input, shape index: {}]   ;;  %s4004_s6 = inlined_call_operand.vmem [shape: f32[1,256], index: 6, kind: input, shape index: {}]   ;;  %s4005_s7 = inlined_call_operand.vmem [shape: bf16[256,256], index: 7, kind: input, shape index: {}]   ;;  %s4006_s8 = inlined_call_operand.vmem [shape: f32[1,256], index: 8, kind: input, shape index: {}]   ;;  %s4007_s9 = inlined_call_operand.vmem [shape: f32[1,256], index: 9, kind: input, shape index: {}]   ;;  %s4008_s10 = inlined_call_operand.vmem [shape: f32[1,256], index: 10, kind: input, shape index: {}, may-alias: {2,10}]   ;;  %s4009_s11 = inlined_call_operand.vmem [shape: f32[1,256], index: 11, kind: input, shape index: {}, may-alias: {3,11}]   ;;  %s4010_s12 = inlined_call_operand.vmem [shape: bf16[128,128], index: 12, kind: input, shape index: {}]   ;;  %s4011_s13 = inlined_call_operand.vmem [shape: f32[1,128], index: 13, kind: input, shape index: {}]   ;;  %s4012_s14 = inlined_call_operand.hbm [shape: f32[2,128], index: 14, kind: output, shape index: {}]  }
   0x1   :  { %v1793_v0 = vld [vmem:[%s3999_s1 + $0x70] sm:$0xf]  ;;  %v2495_v1 = vld [vmem:[%s3999_s1 + $0x74] sm:$0xf0]  ;;  %v1785_v11 = vld [vmem:[%s3999_s1 + $0x60] sm:$0xf] }
   0x2   :  { %v1857_v2 = vld [vmem:[%s3999_s1 + $0xf0] sm:$0xf]  ;;  %v1794_v3 = vor.u32 %v2495_v1, %v1793_v0  ;;  %v2511_v4 = vld [vmem:[%s3999_s1 + $0xf4] sm:$0xf0]  ;;  %v2493_v13 = vld [vmem:[%s3999_s1 + $0x64] sm:$0xf0] }
   0x3   :  { %v1921_v5 = vld [vmem:[%s3999_s1 + $0x170] sm:$0xf]  ;;  %v2527_v6 = vld [vmem:[%s3999_s1 + $0x174] sm:$0xf0]  ;;  %v1858_v7 = vor.u32 %v2511_v4, %v1857_v2  ;;  %v1849_v14 = vld [vmem:[%s3999_s1 + $0xe0] sm:$0xf]  ;;  %v1786_v16 = vor.u32 %v2493_v13, %v1785_v11 }
   0x4   :  { %v1922_v8 = vor.u32 %v2527_v6, %v1921_v5  ;;  %v1985_v9 = vld [vmem:[%s3999_s1 + $0x1f0] sm:$0xf]  ;;  %v2543_v10 = vld [vmem:[%s3999_s1 + $0x1f4] sm:$0xf0]  ;;  %940 = vmatpush.bf16.msra.mxu0 %v1794_v3  ;;  %v2509_v15 = vld [vmem:[%s3999_s1 + $0xe4] sm:$0xf0] }
   0x5   :  { %v1986_v12 = vor.u32 %v2543_v10, %v1985_v9  ;;  %953 = vmatpush.bf16.msra.mxu1 %v1858_v7  ;;  %v1850_v17 = vor.u32 %v2509_v15, %v1849_v14  ;;  %v1913_v18 = vld [vmem:[%s3999_s1 + $0x160] sm:$0xf]  ;;  %v2525_v19 = vld [vmem:[%s3999_s1 + $0x164] sm:$0xf0]  ;;  %v1777_v23 = vld [vmem:[%s3999_s1 + $0x50] sm:$0xf] }
   0x6   :  { %966 = vmatpush.bf16.msra.mxu2 %v1922_v8  ;;  %v1977_v20 = vld [vmem:[%s3999_s1 + $0x1e0] sm:$0xf]  ;;  %v1914_v21 = vor.u32 %v2525_v19, %v1913_v18  ;;  %v2541_v22 = vld [vmem:[%s3999_s1 + $0x1e4] sm:$0xf0]  ;;  %v2491_v24 = vld [vmem:[%s3999_s1 + $0x54] sm:$0xf0] }
   0x7   :  { %979 = vmatpush.bf16.msra.mxu3 %v1986_v12  ;;  %v1978_v25 = vor.u32 %v2541_v22, %v1977_v20  ;;  %v1841_v26 = vld [vmem:[%s3999_s1 + $0xd0] sm:$0xf]  ;;  %v2507_v27 = vld [vmem:[%s3999_s1 + $0xd4] sm:$0xf0]  ;;  %v1778_v29 = vor.u32 %v2491_v24, %v1777_v23  ;;  %v1769_v35 = vld [vmem:[%s3999_s1 + $0x40] sm:$0xf] }
   0x8   :  { %v1905_v28 = vld [vmem:[%s3999_s1 + $0x150] sm:$0xf]  ;;  %941 = vmatpush.bf16.msra.mxu0 %v1786_v16  ;;  %v2523_v30 = vld [vmem:[%s3999_s1 + $0x154] sm:$0xf0]  ;;  %v1842_v33 = vor.u32 %v2507_v27, %v1841_v26  ;;  %v2489_v36 = vld [vmem:[%s3999_s1 + $0x44] sm:$0xf0] }
   0x9   :  { %v1969_v31 = vld [vmem:[%s3999_s1 + $0x1d0] sm:$0xf]  ;;  %v2539_v32 = vld [vmem:[%s3999_s1 + $0x1d4] sm:$0xf0]  ;;  %954 = vmatpush.bf16.msra.mxu1 %v1850_v17  ;;  %v1906_v34 = vor.u32 %v2523_v30, %v1905_v28  ;;  %v1833_v37 = vld [vmem:[%s3999_s1 + $0xc0] sm:$0xf]  ;;  %v1770_v44 = vor.u32 %v2489_v36, %v1769_v35 }
   0xa   :  { %967 = vmatpush.bf16.msra.mxu2 %v1914_v21  ;;  %v1970_v38 = vor.u32 %v2539_v32, %v1969_v31  ;;  %v2505_v39 = vld [vmem:[%s3999_s1 + $0xc4] sm:$0xf0]  ;;  %v1897_v40 = vld [vmem:[%s3999_s1 + $0x140] sm:$0xf]  ;;  %v1761_v47 = vld [vmem:[%s3999_s1 + $0x30] sm:$0xf] }
   0xb   :  { %980 = vmatpush.bf16.msra.mxu3 %v1978_v25  ;;  %v2521_v41 = vld [vmem:[%s3999_s1 + $0x144] sm:$0xf0]  ;;  %v1961_v42 = vld [vmem:[%s3999_s1 + $0x1c0] sm:$0xf]  ;;  %v1834_v45 = vor.u32 %v2505_v39, %v1833_v37  ;;  %v2487_v48 = vld [vmem:[%s3999_s1 + $0x34] sm:$0xf0] }
   0xc   :  { %v2537_v43 = vld [vmem:[%s3999_s1 + $0x1c4] sm:$0xf0]  ;;  %942 = vmatpush.bf16.msra.mxu0 %v1778_v29  ;;  %v1898_v46 = vor.u32 %v2521_v41, %v1897_v40  ;;  %v1825_v49 = vld [vmem:[%s3999_s1 + $0xb0] sm:$0xf]  ;;  %v2503_v51 = vld [vmem:[%s3999_s1 + $0xb4] sm:$0xf0]  ;;  %v1762_v56 = vor.u32 %v2487_v48, %v1761_v47 }
   0xd   :  { %955 = vmatpush.bf16.msra.mxu1 %v1842_v33  ;;  %v1962_v50 = vor.u32 %v2537_v43, %v1961_v42  ;;  %v1889_v52 = vld [vmem:[%s3999_s1 + $0x130] sm:$0xf]  ;;  %v2519_v53 = vld [vmem:[%s3999_s1 + $0x134] sm:$0xf0]  ;;  %v1826_v57 = vor.u32 %v2503_v51, %v1825_v49  ;;  %v1753_v59 = vld [vmem:[%s3999_s1 + $0x20] sm:$0xf] }
   0xe   :  { %968 = vmatpush.bf16.msra.mxu2 %v1906_v34  ;;  %v1953_v54 = vld [vmem:[%s3999_s1 + $0x1b0] sm:$0xf]  ;;  %v2535_v55 = vld [vmem:[%s3999_s1 + $0x1b4] sm:$0xf0]  ;;  %v1890_v58 = vor.u32 %v2519_v53, %v1889_v52  ;;  %v2485_v60 = vld [vmem:[%s3999_s1 + $0x24] sm:$0xf0] }
   0xf   :  { %981 = vmatpush.bf16.msra.mxu3 %v1970_v38  ;;  %v1817_v61 = vld [vmem:[%s3999_s1 + $0xa0] sm:$0xf]  ;;  %v1954_v62 = vor.u32 %v2535_v55, %v1953_v54  ;;  %v2501_v63 = vld [vmem:[%s3999_s1 + $0xa4] sm:$0xf0]  ;;  %v1754_v4 = vor.u32 %v2485_v60, %v1753_v59  ;;  %v1745_v7 = vld [vmem:[%s3999_s1 + $0x10] sm:$0xf] }
  0x10   :  { %943 = vmatpush.bf16.msra.mxu0 %v1770_v44  ;;  %v1881_v0 = vld [vmem:[%s3999_s1 + $0x120] sm:$0xf]  ;;  %v2517_v1 = vld [vmem:[%s3999_s1 + $0x124] sm:$0xf0]  ;;  %v1818_v5 = vor.u32 %v2501_v63, %v1817_v61  ;;  %v2483_v8 = vld [vmem:[%s3999_s1 + $0x14] sm:$0xf0] }
  0x11   :  { %956 = vmatpush.bf16.msra.mxu1 %v1834_v45  ;;  %v1945_v2 = vld [vmem:[%s3999_s1 + $0x1a0] sm:$0xf]  ;;  %v2533_v3 = vld [vmem:[%s3999_s1 + $0x1a4] sm:$0xf0]  ;;  %v1882_v6 = vor.u32 %v2517_v1, %v1881_v0  ;;  %v1809_v9 = vld [vmem:[%s3999_s1 + $0x90] sm:$0xf]  ;;  %v1746_v16 = vor.u32 %v2483_v8, %v1745_v7 }
  0x12   :  { %969 = vmatpush.bf16.msra.mxu2 %v1898_v46  ;;  %v1946_v10 = vor.u32 %v2533_v3, %v1945_v2  ;;  %v2499_v11 = vld [vmem:[%s3999_s1 + $0x94] sm:$0xf0]  ;;  %v1873_v12 = vld [vmem:[%s3999_s1 + $0x110] sm:$0xf]  ;;  %v1737_v17 = vld [vmem:[%s3999_s1] sm:$0xf] }
  0x13   :  { %982 = vmatpush.bf16.msra.mxu3 %v1962_v50  ;;  %v2515_v13 = vld [vmem:[%s3999_s1 + $0x114] sm:$0xf0]  ;;  %v1937_v14 = vld [vmem:[%s3999_s1 + $0x190] sm:$0xf]  ;;  %v2481_v18 = vld [vmem:[%s3999_s1 + $0x4] sm:$0xf0]  ;;  %v1810_v19 = vor.u32 %v2499_v11, %v1809_v9 }
  0x14   :  { %944 = vmatpush.bf16.msra.mxu0 %v1762_v56  ;;  %v2531_v15 = vld [vmem:[%s3999_s1 + $0x194] sm:$0xf0]  ;;  %v1874_v20 = vor.u32 %v2515_v13, %v1873_v12  ;;  %v1801_v21 = vld [vmem:[%s3999_s1 + $0x80] sm:$0xf]  ;;  %v2497_v22 = vld [vmem:[%s3999_s1 + $0x84] sm:$0xf0]  ;;  %v1738_v31 = vor.u32 %v2481_v18, %v1737_v17 }
  0x15   :  { %957 = vmatpush.bf16.msra.mxu1 %v1826_v57  ;;  %v1865_v23 = vld [vmem:[%s3999_s1 + $0x100] sm:$0xf]  ;;  %v1938_v24 = vor.u32 %v2531_v15, %v1937_v14  ;;  %v2513_v25 = vld [vmem:[%s3999_s1 + $0x104] sm:$0xf0]  ;;  %v2049_v26 = vld [vmem:[%s3999_s1 + $0x270] sm:$0xf]  ;;  %v1802_v35 = vor.u32 %v2497_v22, %v1801_v21 }
  0x16   :  { %970 = vmatpush.bf16.msra.mxu2 %v1890_v58  ;;  %v2559_v27 = vld [vmem:[%s3999_s1 + $0x274] sm:$0xf0]  ;;  %v2113_v28 = vld [vmem:[%s3999_s1 + $0x2f0] sm:$0xf]  ;;  %v1929_v33 = vld [vmem:[%s3999_s1 + $0x180] sm:$0xf]  ;;  %v1866_v36 = vor.u32 %v2513_v25, %v1865_v23 }
  0x17   :  { %983 = vmatpush.bf16.msra.mxu3 %v1954_v62  ;;  %v2575_v29 = vld [vmem:[%s3999_s1 + $0x2f4] sm:$0xf0]  ;;  %v2177_v30 = vld [vmem:[%s3999_s1 + $0x370] sm:$0xf]  ;;  %v2529_v34 = vld [vmem:[%s3999_s1 + $0x184] sm:$0xf0]  ;;  %v2050_v39 = vor.u32 %v2559_v27, %v2049_v26 }
  0x18   :  { %945 = vmatpush.bf16.msra.mxu0 %v1754_v4  ;;  %v2591_v32 = vld [vmem:[%s3999_s1 + $0x374] sm:$0xf0]  ;;  %v2241_v37 = vld [vmem:[%s3999_s1 + $0x3f0] sm:$0xf]  ;;  %v2114_v40 = vor.u32 %v2575_v29, %v2113_v28  ;;  %v2041_v41 = vld [vmem:[%s3999_s1 + $0x260] sm:$0xf]  ;;  %v1930_v43 = vor.u32 %v2529_v34, %v1929_v33 }
  0x19   :  { %958 = vmatpush.bf16.msra.mxu1 %v1818_v5  ;;  %v2607_v38 = vld [vmem:[%s3999_s1 + $0x3f4] sm:$0xf0]  ;;  %v2178_v42 = vor.u32 %v2591_v32, %v2177_v30  ;;  %v2557_v44 = vld [vmem:[%s3999_s1 + $0x264] sm:$0xf0]  ;;  %v2105_v45 = vld [vmem:[%s3999_s1 + $0x2e0] sm:$0xf] }
  0x1a   :  { %971 = vmatpush.bf16.msra.mxu2 %v1882_v6  ;;  %v2573_v46 = vld [vmem:[%s3999_s1 + $0x2e4] sm:$0xf0]  ;;  %v2242_v47 = vor.u32 %v2607_v38, %v2241_v37  ;;  %v2169_v48 = vld [vmem:[%s3999_s1 + $0x360] sm:$0xf]  ;;  %v2042_v52 = vor.u32 %v2557_v44, %v2041_v41  ;;  %v2033_v54 = vld [vmem:[%s3999_s1 + $0x250] sm:$0xf] }
  0x1b   :  { %984 = vmatpush.bf16.msra.mxu3 %v1946_v10  ;;  %v2589_v49 = vld [vmem:[%s3999_s1 + $0x364] sm:$0xf0]  ;;  %v2233_v50 = vld [vmem:[%s3999_s1 + $0x3e0] sm:$0xf]  ;;  %v2106_v53 = vor.u32 %v2573_v46, %v2105_v45  ;;  %v2555_v55 = vld [vmem:[%s3999_s1 + $0x254] sm:$0xf0] }
  0x1c   :  { %946 = vmatpush.bf16.msra.mxu0 %v1746_v16  ;;  %v2605_v51 = vld [vmem:[%s3999_s1 + $0x3e4] sm:$0xf0]  ;;  %v48_v56 = vld [vmem:[%s3998_s0] sm:$0xff]  ;;  %v2170_v57 = vor.u32 %v2589_v49, %v2169_v48  ;;  %v2097_v58 = vld [vmem:[%s3999_s1 + $0x2d0] sm:$0xf]  ;;  %v2034_v1 = vor.u32 %v2555_v55, %v2033_v54 }
  0x1d   :  { %959 = vmatpush.bf16.msra.mxu1 %v1810_v19  ;;  %v2571_v59 = vld [vmem:[%s3999_s1 + $0x2d4] sm:$0xf0]  ;;  %196 = vst [vmem:[#allocation1] ss:$4 sm:$0xff] %v48_v56  ;;  %v2234_v60 = vor.u32 %v2605_v51, %v2233_v50  ;;  %v2161_v61 = vld [vmem:[%s3999_s1 + $0x350] sm:$0xf] }
  0x1e   :  { %972 = vmatpush.bf16.msra.mxu2 %v1874_v20  ;;  %v2587_v62 = vld [vmem:[%s3999_s1 + $0x354] sm:$0xf0]  ;;  %v2225_v63 = vld [vmem:[%s3999_s1 + $0x3d0] sm:$0xf]  ;;  %v2098_v2 = vor.u32 %v2571_v59, %v2097_v58  ;;  %v2025_v3 = vld [vmem:[%s3999_s1 + $0x240] sm:$0xf] }
  0x1f   :  { %985 = vmatpush.bf16.msra.mxu3 %v1938_v24  ;;  %v2603_v0 = vld [vmem:[%s3999_s1 + $0x3d4] sm:$0xf0]  ;;  %v2553_v4 = vld [vmem:[%s3999_s1 + $0x244] sm:$0xf0]  ;;  %v2162_v5 = vor.u32 %v2587_v62, %v2161_v61  ;;  %v2089_v6 = vld [vmem:[%s3999_s1 + $0x2c0] sm:$0xf] }
  0x20   :  { %947 = vmatpush.bf16.msra.mxu0 %v1738_v31  ;;  %v2569_v7 = vld [vmem:[%s3999_s1 + $0x2c4] sm:$0xf0]  ;;  %v2153_v8 = vld [vmem:[%s3999_s1 + $0x340] sm:$0xf]  ;;  %v2226_v9 = vor.u32 %v2603_v0, %v2225_v63  ;;  %v2017_v13 = vld [vmem:[%s3999_s1 + $0x230] sm:$0xf]  ;;  %v2026_v18 = vor.u32 %v2553_v4, %v2025_v3 }
  0x21   :  { %960 = vmatpush.bf16.msra.mxu1 %v1802_v35  ;;  %v2585_v10 = vld [vmem:[%s3999_s1 + $0x344] sm:$0xf0]  ;;  %v2217_v11 = vld [vmem:[%s3999_s1 + $0x3c0] sm:$0xf]  ;;  %v2551_v14 = vld [vmem:[%s3999_s1 + $0x234] sm:$0xf0]  ;;  %v2090_v19 = vor.u32 %v2569_v7, %v2089_v6 }
  0x22   :  { %973 = vmatpush.bf16.msra.mxu2 %v1866_v36  ;;  %v2601_v12 = vld [vmem:[%s3999_s1 + $0x3c4] sm:$0xf0]  ;;  %v2081_v15 = vld [vmem:[%s3999_s1 + $0x2b0] sm:$0xf]  ;;  %v2567_v16 = vld [vmem:[%s3999_s1 + $0x2b4] sm:$0xf0]  ;;  %v2154_v22 = vor.u32 %v2585_v10, %v2153_v8  ;;  %v2018_v30 = vor.u32 %v2551_v14, %v2017_v13 }
  0x23   :  { %986 = vmatpush.bf16.msra.mxu3 %v1930_v43  ;;  %v50_v17 = vld [vmem:[%s3998_s0 + $0x10] sm:$0x3]  ;;  %v2218_v25 = vor.u32 %v2601_v12, %v2217_v11  ;;  %v2583_v27 = vld [vmem:[%s3999_s1 + $0x334] sm:$0xf0]  ;;  %v2082_v31 = vor.u32 %v2567_v16, %v2081_v15  ;;  %v2009_v32 = vld [vmem:[%s3999_s1 + $0x220] sm:$0xf] }
  0x24   :  { %992 = vmatpush.bf16.msrb.mxu0 %v2050_v39  ;;  %v3084_v20 = vld.sshfl [vmem:[#allocation1 + $0x10] sm:$0xff pattern:$0x73625140]  ;;  %v3086_v21 = vld.sshfl [vmem:[#allocation1] sm:$0xff pattern:$0x73625140] }
  0x25   :  { %1005 = vmatpush.bf16.msrb.mxu1 %v2114_v40  ;;  %948 = vmatmul.bf16.vlgmr.msra.gmra.mxu0 %v3086_v21  ;;  %v3089_v23 = vld.sshfl [vmem:[#allocation1 + $0x18] sm:$0xff pattern:$0x73625140]  ;;  %v3091_v24 = vld.sshfl [vmem:[#allocation1 + $0x8] sm:$0xff pattern:$0x73625140] }
  0x26   :  { %1018 = vmatpush.bf16.msrb.mxu2 %v2178_v42  ;;  %v2145_v26 = vld [vmem:[%s3999_s1 + $0x330] sm:$0xf]  ;;  %209 = vst [vmem:[#allocation1] ss:$4 sm:$0xff] %v50_v17  ;;  %987 = vmatmul.bf16.vlgmr.msra.gmra.mxu3 %v3089_v23  ;;  %v2599_v29 = vld [vmem:[%s3999_s1 + $0x3b4] sm:$0xf0] }
  0x27   :  { %1031 = vmatpush.bf16.msrb.mxu3 %v2242_v47  ;;  %974 = vmatmul.bf16.vlgmr.msra.gmra.mxu2 %v3084_v20  ;;  %v2209_v28 = vld [vmem:[%s3999_s1 + $0x3b0] sm:$0xf]  ;;  %v2146_v33 = vor.u32 %v2583_v27, %v2145_v26  ;;  %v2549_v34 = vld [vmem:[%s3999_s1 + $0x224] sm:$0xf0]  ;;  %v2073_v35 = vld [vmem:[%s3999_s1 + $0x2a0] sm:$0xf] }
  0x28   :  { %993 = vmatpush.bf16.msrb.mxu0 %v2042_v52  ;;  %961 = vmatmul.bf16.vlgmr.msra.gmra.mxu1 %v3091_v24  ;;  %v2565_v36 = vld [vmem:[%s3999_s1 + $0x2a4] sm:$0xf0]  ;;  %v2210_v37 = vor.u32 %v2599_v29, %v2209_v28  ;;  %v2137_v38 = vld [vmem:[%s3999_s1 + $0x320] sm:$0xf]  ;;  %v2010_v43 = vor.u32 %v2549_v34, %v2009_v32  ;;  %v2001_v45 = vld [vmem:[%s3999_s1 + $0x210] sm:$0xf] }
  0x29   :  { %1006 = vmatpush.bf16.msrb.mxu1 %v2106_v53  ;;  %v2581_v39 = vld [vmem:[%s3999_s1 + $0x324] sm:$0xf0]  ;;  %v2201_v40 = vld [vmem:[%s3999_s1 + $0x3a0] sm:$0xf]  ;;  %v2074_v44 = vor.u32 %v2565_v36, %v2073_v35  ;;  %v2547_v47 = vld [vmem:[%s3999_s1 + $0x214] sm:$0xf0] }
  0x2a   :  { %1019 = vmatpush.bf16.msrb.mxu2 %v2170_v57  ;;  %v2597_v41 = vld [vmem:[%s3999_s1 + $0x3a4] sm:$0xf0]  ;;  %v2138_v46 = vor.u32 %v2581_v39, %v2137_v38  ;;  %v2065_v48 = vld [vmem:[%s3999_s1 + $0x290] sm:$0xf]  ;;  %v2563_v49 = vld [vmem:[%s3999_s1 + $0x294] sm:$0xf0]  ;;  %v2002_v55 = vor.u32 %v2547_v47, %v2001_v45 }
  0x2b   :  { %1032 = vmatpush.bf16.msrb.mxu3 %v2234_v60  ;;  %v49_v42 = vld [vmem:[%s3998_s0 + $0x8] sm:$0xff]  ;;  %v2202_v50 = vor.u32 %v2597_v41, %v2201_v40  ;;  %v2129_v51 = vld [vmem:[%s3999_s1 + $0x310] sm:$0xf]  ;;  %v2579_v52 = vld [vmem:[%s3999_s1 + $0x314] sm:$0xf0]  ;;  %v2066_v56 = vor.u32 %v2563_v49, %v2065_v48 }
  0x2c   :  { %994 = vmatpush.bf16.msrb.mxu0 %v2034_v1  ;;  %199 = vst [vmem:[#allocation1 + $0x20] ss:$4 sm:$0xff] %v49_v42  ;;  %v2193_v53 = vld [vmem:[%s3999_s1 + $0x390] sm:$0xf]  ;;  %v2595_v54 = vld [vmem:[%s3999_s1 + $0x394] sm:$0xf0]  ;;  %v2130_v60 = vor.u32 %v2579_v52, %v2129_v51 }
  0x2d   :  { %1007 = vmatpush.bf16.msrb.mxu1 %v2098_v2  ;;  %v1993_v57 = vld [vmem:[%s3999_s1 + $0x200] sm:$0xf]  ;;  %v2545_v58 = vld [vmem:[%s3999_s1 + $0x204] sm:$0xf0]  ;;  %v2194_v0 = vor.u32 %v2595_v54, %v2193_v53  ;;  %v2305_v1 = vld [vmem:[%s3999_s1 + $0x470] sm:$0xf] }
  0x2e   :  { %1020 = vmatpush.bf16.msrb.mxu2 %v2162_v5  ;;  %v2057_v59 = vld [vmem:[%s3999_s1 + $0x280] sm:$0xf]  ;;  %v2561_v61 = vld [vmem:[%s3999_s1 + $0x284] sm:$0xf0]  ;;  %v2623_v2 = vld [vmem:[%s3999_s1 + $0x474] sm:$0xf0]  ;;  %v1994_v7 = vor.u32 %v2545_v58, %v1993_v57 }
  0x2f   :  { %1033 = vmatpush.bf16.msrb.mxu3 %v2226_v9  ;;  %v2121_v62 = vld [vmem:[%s3999_s1 + $0x300] sm:$0xf]  ;;  %v2577_v63 = vld [vmem:[%s3999_s1 + $0x304] sm:$0xf0]  ;;  %v2494_v3 = vld [vmem:[%s3999_s1 + $0x74] sm:$0xf]  ;;  %v2058_v8 = vor.u32 %v2561_v61, %v2057_v59  ;;  %v2306_v13 = vor.u32 %v2623_v2, %v2305_v1 }
  0x30   :  { %995 = vmatpush.bf16.msrb.mxu0 %v2026_v18  ;;  %v1795_v4 = vld [vmem:[%s3999_s1 + $0x78] sm:$0xf0]  ;;  %v2510_v5 = vld [vmem:[%s3999_s1 + $0xf4] sm:$0xf]  ;;  %v2185_v9 = vld [vmem:[%s3999_s1 + $0x380] sm:$0xf]  ;;  %v2122_v12 = vor.u32 %v2577_v63, %v2121_v62 }
  0x31   :  { %1008 = vmatpush.bf16.msrb.mxu1 %v2090_v19  ;;  %v1859_v6 = vld [vmem:[%s3999_s1 + $0xf8] sm:$0xf0]  ;;  %v2593_v10 = vld [vmem:[%s3999_s1 + $0x384] sm:$0xf0]  ;;  %v2526_v11 = vld [vmem:[%s3999_s1 + $0x174] sm:$0xf]  ;;  %v1798_v17 = vor.u32 %v2494_v3, %v1795_v4 }
  0x32   :  { %1021 = vmatpush.bf16.msrb.mxu2 %v2154_v22  ;;  %v1923_v14 = vld [vmem:[%s3999_s1 + $0x178] sm:$0xf0]  ;;  %v2297_v15 = vld [vmem:[%s3999_s1 + $0x460] sm:$0xf]  ;;  %v2621_v16 = vld [vmem:[%s3999_s1 + $0x464] sm:$0xf0]  ;;  %v1862_v18 = vor.u32 %v2510_v5, %v1859_v6  ;;  %v2186_v26 = vor.u32 %v2593_v10, %v2185_v9 }
  0x33   :  { %1034 = vmatpush.bf16.msrb.mxu3 %v2218_v25  ;;  %v2492_v19 = vld [vmem:[%s3999_s1 + $0x64] sm:$0xf]  ;;  %v1787_v22 = vld [vmem:[%s3999_s1 + $0x68] sm:$0xf0]  ;;  %v2289_v32 = vld [vmem:[%s3999_s1 + $0x450] sm:$0xf]  ;;  %v2298_v34 = vor.u32 %v2621_v16, %v2297_v15 }
  0x34   :  { %996 = vmatpush.bf16.msrb.mxu0 %v2018_v30  ;;  %v2508_v25 = vld [vmem:[%s3999_s1 + $0xe4] sm:$0xf]  ;;  %v1851_v27 = vld [vmem:[%s3999_s1 + $0xe8] sm:$0xf0]  ;;  %v1926_v30 = vor.u32 %v2526_v11, %v1923_v14  ;;  %v2619_v35 = vld [vmem:[%s3999_s1 + $0x454] sm:$0xf0]  ;;  %v1790_v36 = vor.u32 %v2492_v19, %v1787_v22 }
  0x35   :  { %1009 = vmatpush.bf16.msrb.mxu1 %v2082_v31  ;;  %v2524_v28 = vld [vmem:[%s3999_s1 + $0x164] sm:$0xf]  ;;  %v1915_v29 = vld [vmem:[%s3999_s1 + $0x168] sm:$0xf0]  ;;  %v2490_v39 = vld [vmem:[%s3999_s1 + $0x54] sm:$0xf]  ;;  %v2290_v45 = vor.u32 %v2619_v35, %v2289_v32 }
  0x36   :  { %1022 = vmatpush.bf16.msrb.mxu2 %v2146_v33  ;;  %v3231_v31 = vld.sshfl [vmem:[#allocation1 + $0x20] sm:$0xff pattern:$0x73625140]  ;;  %v3236_v33 = vld.sshfl [vmem:[#allocation1 + $0x30] sm:$0xff pattern:$0x73625140] }
  0x37   :  { %1035 = vmatpush.bf16.msrb.mxu3 %v2210_v37  ;;  %v1854_v37 = vor.u32 %v2508_v25, %v1851_v27  ;;  %v3241_v38 = vld.sshfl [vmem:[#allocation1 + $0x28] sm:$0xff pattern:$0x73625140]  ;;  %v1779_v40 = vld [vmem:[%s3999_s1 + $0x58] sm:$0xf0]  ;;  %v2699_v4 = vmov 1  }
  0x38   :  { %997 = vmatpush.bf16.msrb.mxu0 %v2010_v43  ;;  %v2506_v41 = vld [vmem:[%s3999_s1 + $0xd4] sm:$0xf]  ;;  %v1843_v42 = vld [vmem:[%s3999_s1 + $0xd8] sm:$0xf0]  ;;  %v1782_v48 = vor.u32 %v2490_v39, %v1779_v40  ;;  %v2617_v51 = vld [vmem:[%s3999_s1 + $0x444] sm:$0xf0]  ;;  %2668 = vset.pattern.permute.xlu0 %v2699_v4 }
  0x39   :  { %1010 = vmatpush.bf16.msrb.mxu1 %v2074_v44  ;;  %v3257_v43 = vld.sshfl [vmem:[#allocation1 + $0x38] sm:$0xff pattern:$0x73625140]  ;;  %v1918_v44 = vor.u32 %v2524_v28, %v1915_v29  ;;  %v1846_v49 = vor.u32 %v2506_v41, %v1843_v42  ;;  %v2488_v52 = vld [vmem:[%s3999_s1 + $0x44] sm:$0xf] }
  0x3a   :  { %1023 = vmatpush.bf16.msrb.mxu2 %v2138_v46  ;;  %v2522_v46 = vld [vmem:[%s3999_s1 + $0x154] sm:$0xf]  ;;  %v1907_v47 = vld [vmem:[%s3999_s1 + $0x158] sm:$0xf0]  ;;  %v1771_v53 = vld [vmem:[%s3999_s1 + $0x48] sm:$0xf0] }
  0x3b   :  { %1036 = vmatpush.bf16.msrb.mxu3 %v2202_v50  ;;  %v2281_v50 = vld [vmem:[%s3999_s1 + $0x440] sm:$0xf]  ;;  %v2504_v54 = vld [vmem:[%s3999_s1 + $0xc4] sm:$0xf]  ;;  %v1899_v59 = vld [vmem:[%s3999_s1 + $0x148] sm:$0xf0]  ;;  %v1774_v61 = vor.u32 %v2488_v52, %v1771_v53 }
  0x3c   :  { %998 = vmatpush.bf16.msrb.mxu0 %v2002_v55  ;;  %v1835_v55 = vld [vmem:[%s3999_s1 + $0xc8] sm:$0xf0]  ;;  %v2282_v57 = vor.u32 %v2617_v51, %v2281_v50  ;;  %v2520_v58 = vld [vmem:[%s3999_s1 + $0x144] sm:$0xf]  ;;  %v2615_v63 = vld [vmem:[%s3999_s1 + $0x434] sm:$0xf0] }
  0x3d   :  { %1011 = vmatpush.bf16.msrb.mxu1 %v2066_v56  ;;  %v1910_v56 = vor.u32 %v2522_v46, %v1907_v47  ;;  %v1838_v62 = vor.u32 %v2504_v54, %v1835_v55  ;;  %v1763_v1 = vld [vmem:[%s3999_s1 + $0x38] sm:$0xf0]  ;;  %v2502_v2 = vld [vmem:[%s3999_s1 + $0xb4] sm:$0xf]  ;;  %v1902_v5 = vor.u32 %v2520_v58, %v1899_v59  ;;  %v2265_v11 = vld [vmem:[%s3999_s1 + $0x420] sm:$0xf] }
  0x3e   :  { %1024 = vmatpush.bf16.msrb.mxu2 %v2130_v60  ;;  %v2273_v60 = vld [vmem:[%s3999_s1 + $0x430] sm:$0xf]  ;;  %v1827_v3 = vld [vmem:[%s3999_s1 + $0xb8] sm:$0xf0]  ;;  %v1755_v14 = vld [vmem:[%s3999_s1 + $0x28] sm:$0xf0] }
  0x3f   :  { %1037 = vmatpush.bf16.msrb.mxu3 %v2194_v0  ;;  %v2486_v0 = vld [vmem:[%s3999_s1 + $0x34] sm:$0xf]  ;;  %v2274_v6 = vor.u32 %v2615_v63, %v2273_v60  ;;  %v1830_v10 = vor.u32 %v2502_v2, %v1827_v3  ;;  %v2500_v15 = vld [vmem:[%s3999_s1 + $0xa4] sm:$0xf]  ;;  %v1819_v16 = vld [vmem:[%s3999_s1 + $0xa8] sm:$0xf0] }
  0x40   :  { %999 = vmatpush.bf16.msrb.mxu0 %v1994_v7  ;;  %v2518_v7 = vld [vmem:[%s3999_s1 + $0x134] sm:$0xf]  ;;  %v1766_v9 = vor.u32 %v2486_v0, %v1763_v1  ;;  %v2516_v19 = vld [vmem:[%s3999_s1 + $0x124] sm:$0xf]  ;;  %v1883_v22 = vld [vmem:[%s3999_s1 + $0x128] sm:$0xf0]  ;;  %v1822_v27 = vor.u32 %v2500_v15, %v1819_v16 }
  0x41   :  { %1012 = vmatpush.bf16.msrb.mxu1 %v2058_v8  ;;  %v1891_v8 = vld [vmem:[%s3999_s1 + $0x138] sm:$0xf0]  ;;  %v1199_v25 = vld [vmem:[%s4002_s4] sm:$0xf]  ;;  %v2257_v28 = vld [vmem:[%s3999_s1 + $0x410] sm:$0xf] }
  0x42   :  { %1025 = vmatpush.bf16.msrb.mxu2 %v2122_v12  ;;  %v2613_v12 = vld [vmem:[%s3999_s1 + $0x424] sm:$0xf0]  ;;  %v2611_v29 = vld [vmem:[%s3999_s1 + $0x414] sm:$0xf0]  ;;  %v1747_v32 = vld [vmem:[%s3999_s1 + $0x18] sm:$0xf0]  ;;  %1202 = vperm.xlu0 %2668, %v1199_v25  }
  0x43   :  { %1038 = vmatpush.bf16.msrb.mxu3 %v2186_v26  ;;  %1000 = vmatmul.bf16.vlgmr.msrb.gmra.mxu0 %v3231_v31  ;;  %v1811_v35 = vld [vmem:[%s3999_s1 + $0x98] sm:$0xf0]  ;;  %v2258_v40 = vor.u32 %v2611_v29, %v2257_v28  ;;  %v2249_v41 = vld [vmem:[%s3999_s1 + $0x400] sm:$0xf]  ;;  %v2609_v42 = vld [vmem:[%s3999_s1 + $0x404] sm:$0xf0] }
  0x44   :  { %1044 = vmatpush.bf16.msra.mxu0 %v2306_v13  ;;  %1013 = vmatmul.bf16.vlgmr.msrb.gmra.mxu1 %v3241_v38  ;;  %v2484_v13 = vld [vmem:[%s3999_s1 + $0x24] sm:$0xf]  ;;  %v1875_v39 = vld [vmem:[%s3999_s1 + $0x118] sm:$0xf0]  ;;  %v1739_v47 = vld [vmem:[%s3999_s1 + $0x8] sm:$0xf0] }
  0x45   :  { %1057 = vmatpush.bf16.msra.mxu1 %v1798_v17  ;;  %1026 = vmatmul.bf16.vlgmr.msrb.gmra.mxu2 %v3236_v33  ;;  %v1894_v17 = vor.u32 %v2518_v7, %v1891_v8  ;;  %v1758_v26 = vor.u32 %v2484_v13, %v1755_v14  ;;  %v2542_v50 = vld [vmem:[%s3999_s1 + $0x1f4] sm:$0xf]  ;;  %v1987_v51 = vld [vmem:[%s3999_s1 + $0x1f8] sm:$0xf0]  ;;  %v2700_v52 = vmov 3  }
  0x46   :  { %1070 = vmatpush.bf16.msra.mxu2 %v1862_v18  ;;  %1039 = vmatmul.bf16.vlgmr.msrb.gmra.mxu3 %v3257_v43  ;;  %v2266_v18 = vor.u32 %v2613_v12, %v2265_v11  ;;  %v2558_v54 = vld [vmem:[%s3999_s1 + $0x274] sm:$0xf]  ;;  %v2051_v55 = vld [vmem:[%s3999_s1 + $0x278] sm:$0xf0]  ;;  %v1990_v63 = vor.u32 %v2542_v50, %v1987_v51  ;;  %v2540_v4 = vld [vmem:[%s3999_s1 + $0x1e4] sm:$0xf] }
  0x47   :  { %1083 = vmatpush.bf16.msra.mxu3 %v1926_v30  ;;  %v2482_v30 = vld [vmem:[%s3999_s1 + $0x14] sm:$0xf]  ;;  %2670 = vset.pattern.permute.xlu1 %v2700_v52  ;;  %v2115_v58 = vld [vmem:[%s3999_s1 + $0x2f8] sm:$0xf0]  ;;  %v2054_v0 = vor.u32 %v2558_v54, %v2051_v55  ;;  %v1979_v7 = vld [vmem:[%s3999_s1 + $0x1e8] sm:$0xf0] }
  0x48   :  { %1045 = vmatpush.bf16.msra.mxu0 %v2298_v34  ;;  %v2498_v34 = vld [vmem:[%s3999_s1 + $0x94] sm:$0xf]  ;;  %1287 = vperm.xlu1 %2670, %v1199_v25   ;;  %v3409_v1 = vld.sshfl [vmem:[#allocation1] sm:$0xff pattern:$0x73625140]  ;;  %v1982_v14 = vor.u32 %v2540_v4, %v1979_v7 }
  0x49   :  { %1058 = vmatpush.bf16.msra.mxu1 %v1790_v36  ;;  %v1886_v36 = vor.u32 %v2516_v19, %v1883_v22  ;;  %v1814_v46 = vor.u32 %v2498_v34, %v1811_v35  ;;  %v2590_v2 = vld [vmem:[%s3999_s1 + $0x374] sm:$0xf]  ;;  %v2179_v3 = vld [vmem:[%s3999_s1 + $0x378] sm:$0xf0]  ;;  %v2556_v8 = vld [vmem:[%s3999_s1 + $0x264] sm:$0xf] }
  0x4a   :  { %1071 = vmatpush.bf16.msra.mxu2 %v1854_v37  ;;  %v2514_v37 = vld [vmem:[%s3999_s1 + $0x114] sm:$0xf]  ;;  %v2572_v11 = vld [vmem:[%s3999_s1 + $0x2e4] sm:$0xf]  ;;  %v2107_v12 = vld [vmem:[%s3999_s1 + $0x2e8] sm:$0xf0]  ;;  %v2182_v13 = vor.u32 %v2590_v2, %v2179_v3 }
  0x4b   :  { %1084 = vmatpush.bf16.msra.mxu3 %v1918_v44  ;;  %v2480_v44 = vld [vmem:[%s3999_s1 + $0x4] sm:$0xf]  ;;  %v1878_v53 = vor.u32 %v2514_v37, %v1875_v39  ;;  %v2110_v19 = vor.u32 %v2572_v11, %v2107_v12  ;;  %v1971_v22 = vld [vmem:[%s3999_s1 + $0x1d8] sm:$0xf0] }
  0x4c   :  { %1046 = vmatpush.bf16.msra.mxu0 %v2290_v45  ;;  %v1750_v45 = vor.u32 %v2482_v30, %v1747_v32  ;;  %v1742_v59 = vor.u32 %v2480_v44, %v1739_v47  ;;  %v2588_v16 = vld [vmem:[%s3999_s1 + $0x364] sm:$0xf]  ;;  %v2099_v28 = vld [vmem:[%s3999_s1 + $0x2d8] sm:$0xf0]  ;;  %v2586_v30 = vld [vmem:[%s3999_s1 + $0x354] sm:$0xf] }
  0x4d   :  { %1059 = vmatpush.bf16.msra.mxu1 %v1782_v48  ;;  %v2496_v48 = vld [vmem:[%s3999_s1 + $0x84] sm:$0xf]  ;;  %v2163_v32 = vld [vmem:[%s3999_s1 + $0x358] sm:$0xf0] }
  0x4e   :  { %1072 = vmatpush.bf16.msra.mxu2 %v1846_v49  ;;  %v1803_v49 = vld [vmem:[%s3999_s1 + $0x88] sm:$0xf0]  ;;  %v2552_v39 = vld [vmem:[%s3999_s1 + $0x244] sm:$0xf] }
  0x4f   :  { %1085 = vmatpush.bf16.msra.mxu3 %v1910_v56  ;;  %v2250_v56 = vor.u32 %v2609_v42, %v2249_v41  ;;  %v1806_v60 = vor.u32 %v2496_v48, %v1803_v49 }
  0x50   :  { %1047 = vmatpush.bf16.msra.mxu0 %v2282_v57  ;;  %v2574_v57 = vld [vmem:[%s3999_s1 + $0x2f4] sm:$0xf] }
  0x51   :  { %1060 = vmatpush.bf16.msra.mxu1 %v1774_v61  ;;  %v2512_v61 = vld [vmem:[%s3999_s1 + $0x104] sm:$0xf] }
  0x52   :  { %1073 = vmatpush.bf16.msra.mxu2 %v1838_v62  ;;  %v1867_v62 = vld [vmem:[%s3999_s1 + $0x108] sm:$0xf0] }
  0x53   :  { %1086 = vmatpush.bf16.msra.mxu3 %v1902_v5  ;;  %v2701_v5 = vmov 2  }
  0x54   :  { %1048 = vmatpush.bf16.msra.mxu0 %v2274_v6  ;;  %2669 = vset.pattern.permute.xlu0 %v2701_v5  ;;  %v2118_v6 = vor.u32 %v2574_v57, %v2115_v58 }
  0x55   :  { %1061 = vmatpush.bf16.msra.mxu1 %v1766_v9  ;;  %v2043_v9 = vld [vmem:[%s3999_s1 + $0x268] sm:$0xf0]  ;;  %1241 = vperm.xlu0 %2669, %v1199_v25   ;;  %v2554_v25 = vld [vmem:[%s3999_s1 + $0x254] sm:$0xf] }
  0x56   :  { %1074 = vmatpush.bf16.msra.mxu2 %v1830_v10  ;;  %v1870_v10 = vor.u32 %v2512_v61, %v1867_v62  ;;  %v2046_v15 = vor.u32 %v2556_v8, %v2043_v9 }
  0x57   :  { %1087 = vmatpush.bf16.msra.mxu3 %v1894_v17  ;;  %v2171_v17 = vld [vmem:[%s3999_s1 + $0x368] sm:$0xf0] }
  0x58   :  { %1049 = vmatpush.bf16.msra.mxu0 %v2266_v18  ;;  %v2538_v18 = vld [vmem:[%s3999_s1 + $0x1d4] sm:$0xf]  ;;  %v2174_v29 = vor.u32 %v2588_v16, %v2171_v17 }
  0x59   :  { %1062 = vmatpush.bf16.msra.mxu1 %v1758_v26  ;;  %v2035_v26 = vld [vmem:[%s3999_s1 + $0x258] sm:$0xf0]  ;;  %v1974_v34 = vor.u32 %v2538_v18, %v1971_v22 }
  0x5a   :  { %1075 = vmatpush.bf16.msra.mxu2 %v1822_v27  ;;  %v2570_v27 = vld [vmem:[%s3999_s1 + $0x2d4] sm:$0xf]  ;;  %v2038_v35 = vor.u32 %v2554_v25, %v2035_v26 }
  0x5b   :  { %1088 = vmatpush.bf16.msra.mxu3 %v1886_v36  ;;  %v1963_v36 = vld [vmem:[%s3999_s1 + $0x1c8] sm:$0xf0]  ;;  %v2102_v37 = vor.u32 %v2570_v27, %v2099_v28 }
  0x5c   :  { %1050 = vmatpush.bf16.msra.mxu0 %v2258_v40 }
  0x5d   :  { %1063 = vmatpush.bf16.msra.mxu1 %v1750_v45 }
  0x5e   :  { %1076 = vmatpush.bf16.msra.mxu2 %v1814_v46 }
  0x5f   :  { %1089 = vmatpush.bf16.msra.mxu3 %v1878_v53 }
  0x60   :  { %1051 = vmatpush.bf16.msra.mxu0 %v2250_v56 }
  0x61   :  { %1064 = vmatpush.bf16.msra.mxu1 %v1742_v59 }
  0x62   :  { %1077 = vmatpush.bf16.msra.mxu2 %v1806_v60 }
  0x63   :  { %1052 = vmatmul.bf16.vlgmr.msra.gmra.mxu0 %v3409_v1  ;;  %1090 = vmatpush.bf16.msra.mxu3 %v1870_v10 }
  0x64   :  { %1096 = vmatpush.bf16.msrb.mxu0 %v1990_v63  ;;  %1065 = vmatmul.bf16.vlgmr.msra.gmra.mxu1 %v3086_v21  ;;  %v2027_v21 = vld [vmem:[%s3999_s1 + $0x248] sm:$0xf0] }
  0x65   :  { %1109 = vmatpush.bf16.msrb.mxu1 %v2054_v0  ;;  %1078 = vmatmul.bf16.vlgmr.msra.gmra.mxu2 %v3091_v24  ;;  %v2536_v24 = vld [vmem:[%s3999_s1 + $0x1c4] sm:$0xf] }
  0x66   :  { %1122 = vmatpush.bf16.msrb.mxu2 %v2118_v6  ;;  %1091 = vmatmul.bf16.vlgmr.msra.gmra.mxu3 %v3084_v20 }
  0x67   :  { %1135 = vmatpush.bf16.msrb.mxu3 %v2182_v13 }
  0x68   :  { %1097 = vmatpush.bf16.msrb.mxu0 %v1982_v14 }
  0x69   :  { %1110 = vmatpush.bf16.msrb.mxu1 %v2046_v15 }
  0x6a   :  { %1123 = vmatpush.bf16.msrb.mxu2 %v2110_v19 }
  0x6b   :  { %19 = vsyncpa [#allocation3], 0  ;;  %v2568_v40 = vld [vmem:[%s3999_s1 + $0x2c4] sm:$0xf]  ;;  %v2091_v41 = vld [vmem:[%s3999_s1 + $0x2c8] sm:$0xf0]  ;;  %2671 = vset.pattern.permute.xlu0 %v2700_v52  ;;  %1136 = vmatpush.bf16.msrb.mxu3 %v2174_v29  ;;  %v2166_v42 = vor.u32 %v2586_v30, %v2163_v32  ;;  %v1966_v44 = vor.u32 %v2536_v24, %v1963_v36  ;;  %v2030_v45 = vor.u32 %v2552_v39, %v2027_v21 }
  0x6c   :  { %1098 = vmatpush.bf16.msrb.mxu0 %v1974_v34  ;;  %v2584_v20 = vld [vmem:[%s3999_s1 + $0x344] sm:$0xf]  ;;  %v2155_v46 = vld [vmem:[%s3999_s1 + $0x348] sm:$0xf0]  ;;  %v2534_v47 = vld [vmem:[%s3999_s1 + $0x1b4] sm:$0xf]  ;;  %v2094_v48 = vor.u32 %v2568_v40, %v2091_v41 }
  0x6d   :  { %1111 = vmatpush.bf16.msrb.mxu1 %v2038_v35  ;;  %v1955_v49 = vld [vmem:[%s3999_s1 + $0x1b8] sm:$0xf0]  ;;  %v2550_v50 = vld [vmem:[%s3999_s1 + $0x234] sm:$0xf]  ;;  %v2158_v54 = vor.u32 %v2584_v20, %v2155_v46  ;;  %v2532_v59 = vld [vmem:[%s3999_s1 + $0x1a4] sm:$0xf] }
  0x6e   :  { %1124 = vmatpush.bf16.msrb.mxu2 %v2102_v37  ;;  %v2019_v51 = vld [vmem:[%s3999_s1 + $0x238] sm:$0xf0]  ;;  %v2566_v52 = vld [vmem:[%s3999_s1 + $0x2b4] sm:$0xf]  ;;  %v1958_v55 = vor.u32 %v2534_v47, %v1955_v49  ;;  %v1947_v61 = vld [vmem:[%s3999_s1 + $0x1a8] sm:$0xf0] }
  0x6f   :  { %v2083_v53 = vld [vmem:[%s3999_s1 + $0x2b8] sm:$0xf0]  ;;  %1137 = vmatpush.bf16.msrb.mxu3 %v2166_v42  ;;  %v2022_v56 = vor.u32 %v2550_v50, %v2019_v51  ;;  %v2582_v57 = vld [vmem:[%s3999_s1 + $0x334] sm:$0xf]  ;;  %v2548_v62 = vld [vmem:[%s3999_s1 + $0x224] sm:$0xf]  ;;  %v1950_v4 = vor.u32 %v2532_v59, %v1947_v61 }
  0x70   :  { %1099 = vmatpush.bf16.msrb.mxu0 %v1966_v44  ;;  %v2147_v58 = vld [vmem:[%s3999_s1 + $0x338] sm:$0xf0]  ;;  %v2086_v60 = vor.u32 %v2566_v52, %v2083_v53  ;;  %v2011_v63 = vld [vmem:[%s3999_s1 + $0x228] sm:$0xf0]  ;;  %v2564_v0 = vld [vmem:[%s3999_s1 + $0x2a4] sm:$0xf] }
  0x71   :  { %1112 = vmatpush.bf16.msrb.mxu1 %v2030_v45  ;;  %v2075_v2 = vld [vmem:[%s3999_s1 + $0x2a8] sm:$0xf0]  ;;  %v2150_v3 = vor.u32 %v2582_v57, %v2147_v58  ;;  %v2014_v5 = vor.u32 %v2548_v62, %v2011_v63  ;;  %v2580_v6 = vld [vmem:[%s3999_s1 + $0x324] sm:$0xf]  ;;  %v2530_v8 = vld [vmem:[%s3999_s1 + $0x194] sm:$0xf] }
  0x72   :  { %1125 = vmatpush.bf16.msrb.mxu2 %v2094_v48  ;;  %v2139_v7 = vld [vmem:[%s3999_s1 + $0x328] sm:$0xf0]  ;;  %v2078_v9 = vor.u32 %v2564_v0, %v2075_v2  ;;  %v1939_v10 = vld [vmem:[%s3999_s1 + $0x198] sm:$0xf0]  ;;  %v2546_v11 = vld [vmem:[%s3999_s1 + $0x214] sm:$0xf] }
  0x73   :  { %1138 = vmatpush.bf16.msrb.mxu3 %v2158_v54  ;;  %v2003_v12 = vld [vmem:[%s3999_s1 + $0x218] sm:$0xf0]  ;;  %v2562_v13 = vld [vmem:[%s3999_s1 + $0x294] sm:$0xf]  ;;  %v2142_v15 = vor.u32 %v2580_v6, %v2139_v7  ;;  %v1942_v17 = vor.u32 %v2530_v8, %v1939_v10  ;;  %v2528_v22 = vld [vmem:[%s3999_s1 + $0x184] sm:$0xf] }
  0x74   :  { %1100 = vmatpush.bf16.msrb.mxu0 %v1958_v55  ;;  %v2067_v14 = vld [vmem:[%s3999_s1 + $0x298] sm:$0xf0]  ;;  %v2578_v16 = vld [vmem:[%s3999_s1 + $0x314] sm:$0xf]  ;;  %v2006_v18 = vor.u32 %v2546_v11, %v2003_v12  ;;  %v1931_v25 = vld [vmem:[%s3999_s1 + $0x188] sm:$0xf0] }
  0x75   :  { %1113 = vmatpush.bf16.msrb.mxu1 %v2022_v56  ;;  %v2131_v19 = vld [vmem:[%s3999_s1 + $0x318] sm:$0xf0]  ;;  %v2070_v26 = vor.u32 %v2562_v13, %v2067_v14  ;;  %v2544_v27 = vld [vmem:[%s3999_s1 + $0x204] sm:$0xf]  ;;  %v1995_v28 = vld [vmem:[%s3999_s1 + $0x208] sm:$0xf0]  ;;  %v1934_v37 = vor.u32 %v2528_v22, %v1931_v25 }
  0x76   :  { %1126 = vmatpush.bf16.msrb.mxu2 %v2086_v60  ;;  %v2560_v29 = vld [vmem:[%s3999_s1 + $0x284] sm:$0xf]  ;;  %v2059_v30 = vld [vmem:[%s3999_s1 + $0x288] sm:$0xf0]  ;;  %v2606_v32 = vld [vmem:[%s3999_s1 + $0x3f4] sm:$0xf]  ;;  %v2134_v35 = vor.u32 %v2578_v16, %v2131_v19  ;;  %v1998_v39 = vor.u32 %v2544_v27, %v1995_v28 }
  0x77   :  { %1139 = vmatpush.bf16.msrb.mxu3 %v2150_v3  ;;  %v2243_v34 = vld [vmem:[%s3999_s1 + $0x3f8] sm:$0xf0]  ;;  %v2622_v24 = vld [vmem:[%s3999_s1 + $0x474] sm:$0xf]  ;;  %v2576_v21 = vld [vmem:[%s3999_s1 + $0x304] sm:$0xf]  ;;  %v2062_v41 = vor.u32 %v2560_v29, %v2059_v30 }
  0x78   :  { %1101 = vmatpush.bf16.msrb.mxu0 %v1950_v4  ;;  %v2307_v36 = vld [vmem:[%s3999_s1 + $0x478] sm:$0xf0]  ;;  %v2123_v40 = vld [vmem:[%s3999_s1 + $0x308] sm:$0xf0]  ;;  %v2246_v42 = vor.u32 %v2606_v32, %v2243_v34  ;;  %v2604_v45 = vld [vmem:[%s3999_s1 + $0x3e4] sm:$0xf] }
  0x79   :  { %1114 = vmatpush.bf16.msrb.mxu1 %v2014_v5  ;;  %v2310_v44 = vor.u32 %v2622_v24, %v2307_v36  ;;  %v2235_v20 = vld [vmem:[%s3999_s1 + $0x3e8] sm:$0xf0]  ;;  %v2126_v46 = vor.u32 %v2576_v21, %v2123_v40  ;;  %v2620_v47 = vld [vmem:[%s3999_s1 + $0x464] sm:$0xf]  ;;  %v2602_v51 = vld [vmem:[%s3999_s1 + $0x3d4] sm:$0xf] }
  0x7a   :  { %1127 = vmatpush.bf16.msrb.mxu2 %v2078_v9  ;;  %v2299_v48 = vld [vmem:[%s3999_s1 + $0x468] sm:$0xf0]  ;;  %v2238_v49 = vor.u32 %v2604_v45, %v2235_v20  ;;  %v2227_v52 = vld [vmem:[%s3999_s1 + $0x3d8] sm:$0xf0]  ;;  %v2618_v53 = vld [vmem:[%s3999_s1 + $0x454] sm:$0xf] }
  0x7b   :  { %1140 = vmatpush.bf16.msrb.mxu3 %v2142_v15  ;;  %v2302_v50 = vor.u32 %v2620_v47, %v2299_v48  ;;  %v2291_v54 = vld [vmem:[%s3999_s1 + $0x458] sm:$0xf0]  ;;  %v2230_v55 = vor.u32 %v2602_v51, %v2227_v52  ;;  %v2219_v57 = vld [vmem:[%s3999_s1 + $0x3c8] sm:$0xf0]  ;;  %v2598_v59 = vld [vmem:[%s3999_s1 + $0x3b4] sm:$0xf] }
  0x7c   :  { %1102 = vmatpush.bf16.msrb.mxu0 %v1942_v17  ;;  %v2294_v56 = vor.u32 %v2618_v53, %v2291_v54  ;;  %v2211_v60 = vld [vmem:[%s3999_s1 + $0x3b8] sm:$0xf0]  ;;  %v2614_v61 = vld [vmem:[%s3999_s1 + $0x434] sm:$0xf]  ;;  %v2596_v2 = vld [vmem:[%s3999_s1 + $0x3a4] sm:$0xf] }
  0x7d   :  { %1115 = vmatpush.bf16.msrb.mxu1 %v2006_v18  ;;  %v2275_v62 = vld [vmem:[%s3999_s1 + $0x438] sm:$0xf0]  ;;  %v2214_v63 = vor.u32 %v2598_v59, %v2211_v60  ;;  %v2203_v3 = vld [vmem:[%s3999_s1 + $0x3a8] sm:$0xf0]  ;;  %v2612_v4 = vld [vmem:[%s3999_s1 + $0x424] sm:$0xf] }
  0x7e   :  { %1128 = vmatpush.bf16.msrb.mxu2 %v2070_v26  ;;  %v2278_v0 = vor.u32 %v2614_v61, %v2275_v62  ;;  %v2267_v5 = vld [vmem:[%s3999_s1 + $0x428] sm:$0xf0]  ;;  %v2206_v6 = vor.u32 %v2596_v2, %v2203_v3  ;;  %v2594_v8 = vld [vmem:[%s3999_s1 + $0x394] sm:$0xf]  ;;  %v2195_v9 = vld [vmem:[%s3999_s1 + $0x398] sm:$0xf0] }
  0x7f   :  { %1141 = vmatpush.bf16.msrb.mxu3 %v2134_v35  ;;  %v2270_v7 = vor.u32 %v2612_v4, %v2267_v5  ;;  %v2610_v10 = vld [vmem:[%s3999_s1 + $0x414] sm:$0xf]  ;;  %v2259_v11 = vld [vmem:[%s3999_s1 + $0x418] sm:$0xf0]  ;;  %v2198_v12 = vor.u32 %v2594_v8, %v2195_v9  ;;  %v2592_v14 = vld [vmem:[%s3999_s1 + $0x384] sm:$0xf] }
  0x80   :  { %1103 = vmatpush.bf16.msrb.mxu0 %v1934_v37  ;;  %v2262_v13 = vor.u32 %v2610_v10, %v2259_v11  ;;  %v2187_v15 = vld [vmem:[%s3999_s1 + $0x388] sm:$0xf0]  ;;  %v2608_v16 = vld [vmem:[%s3999_s1 + $0x404] sm:$0xf]  ;;  %v2655_v59 = vld [vmem:[%s4005_s7 + $0xf4] sm:$0xf0] }
  0x81   :  { %1116 = vmatpush.bf16.msrb.mxu1 %v1998_v39  ;;  %v2251_v17 = vld [vmem:[%s3999_s1 + $0x408] sm:$0xf0]  ;;  %v2190_v18 = vor.u32 %v2592_v14, %v2187_v15  ;;  %v2654_v61 = vld [vmem:[%s4005_s7 + $0xf4] sm:$0xf]  ;;  %v2444_v62 = vld [vmem:[%s4005_s7 + $0xf8] sm:$0xf0] }
  0x82   :  { %1129 = vmatpush.bf16.msrb.mxu2 %v2062_v41  ;;  %v2254_v19 = vor.u32 %v2608_v16, %v2251_v17  ;;  %v2637_v2 = vld [vmem:[%s4005_s7 + $0x64] sm:$0xf0]  ;;  %v2636_v3 = vld [vmem:[%s4005_s7 + $0x64] sm:$0xf]  ;;  %v2372_v5 = vld [vmem:[%s4005_s7 + $0x68] sm:$0xf0] }
  0x83   :  { %1142 = vmatpush.bf16.msrb.mxu3 %v2126_v46  ;;  %1104 = vmatmul.bf16.vlgmr.msrb.gmra.mxu0 %v3089_v23  ;;  %v2600_v23 = vld [vmem:[%s3999_s1 + $0x3c4] sm:$0xf]  ;;  %v2653_v9 = vld [vmem:[%s4005_s7 + $0xe4] sm:$0xf0]  ;;  %v2436_v14 = vld [vmem:[%s4005_s7 + $0xe8] sm:$0xf0] }
  0x84   :  { %1148 = vmatpush.bf16.msra.mxu0 %v2246_v42  ;;  %1117 = vmatmul.bf16.vlgmr.msrb.gmra.mxu1 %v3231_v31  ;;  %v2283_v31 = vld [vmem:[%s3999_s1 + $0x448] sm:$0xf0]  ;;  %v2222_v58 = vor.u32 %v2600_v23, %v2219_v57  ;;  %v2652_v10 = vld [vmem:[%s4005_s7 + $0xe4] sm:$0xf]  ;;  %v2362_v15 = vld [vmem:[%s4005_s7 + $0x50] sm:$0xf] }
  0x85   :  { %1161 = vmatpush.bf16.msra.mxu1 %v2310_v44  ;;  %1130 = vmatmul.bf16.vlgmr.msrb.gmra.mxu2 %v3241_v38  ;;  %v2616_v38 = vld [vmem:[%s3999_s1 + $0x444] sm:$0xf]  ;;  %v2635_v16 = vld [vmem:[%s4005_s7 + $0x54] sm:$0xf0]  ;;  %vm1196_vm0 = vcmask 1040384   ;;  %vm1283_vm1 = vcmask 1042432  }
  0x86   :  { %1143 = vmatmul.bf16.vlgmr.msrb.gmra.mxu3 %v3236_v33  ;;  %v2286_v33 = vor.u32 %v2616_v38, %v2283_v31  ;;  %v2638_v38 = vld [vmem:[%s4005_s7 + $0x74] sm:$0xf]  ;;  %v2380_v31 = vld [vmem:[%s4005_s7 + $0x78] sm:$0xf0]  ;;  %vm1616_vm2 = vcmask 1041408  }
  0x88   :  { %1149 = vmatpush.bf16.msra.mxu0 %v2238_v49 }
  0x89   :  { %1162 = vmatpush.bf16.msra.mxu1 %v2302_v50 }
  0x8c   :  { %1150 = vmatpush.bf16.msra.mxu0 %v2230_v55  ;;  %v2378_v55 = vld [vmem:[%s4005_s7 + $0x70] sm:$0xf] }
  0x8d   :  { %1163 = vmatpush.bf16.msra.mxu1 %v2294_v56  ;;  %v2639_v56 = vld [vmem:[%s4005_s7 + $0x74] sm:$0xf0] }
  0x8e   :  { %v2379_v57 = vor.u32 %v2639_v56, %v2378_v55  ;;  %v2631_v55 = vld [vmem:[%s4005_s7 + $0x34] sm:$0xf0]  ;;  %v2630_v56 = vld [vmem:[%s4005_s7 + $0x34] sm:$0xf] }
  0x90   :  { %1151 = vmatpush.bf16.msra.mxu0 %v2222_v58  ;;  %v2383_v58 = vor.u32 %v2638_v38, %v2380_v31  ;;  %1529 = vmatpush.bf16.msra.mxu2 %v2379_v57  ;;  %v3821_v57 = vld [vmem:[%s4001_s3] sm:$0x3]  ;;  %v2410_v31 = vld [vmem:[%s4005_s7 + $0xb0] sm:$0xf] }
  0x91   :  { %1164 = vmatpush.bf16.msra.mxu1 %v2286_v33  ;;  %v2442_v33 = vld [vmem:[%s4005_s7 + $0xf0] sm:$0xf] }
  0x92   :  { %v2443_v60 = vor.u32 %v2655_v59, %v2442_v33  ;;  %v2646_v59 = vld [vmem:[%s4005_s7 + $0xb4] sm:$0xf] }
  0x94   :  { %1152 = vmatpush.bf16.msra.mxu0 %v2214_v63  ;;  %v2447_v63 = vor.u32 %v2654_v61, %v2444_v62  ;;  %1542 = vmatpush.bf16.msra.mxu3 %v2443_v60  ;;  %v2412_v60 = vld [vmem:[%s4005_s7 + $0xb8] sm:$0xf0]  ;;  %v1184_v62 = vperm.slane %v3821_v57, 0 }
  0x95   :  { %1165 = vmatpush.bf16.msra.mxu1 %v2278_v0  ;;  %v2370_v0 = vld [vmem:[%s4005_s7 + $0x60] sm:$0xf] }
  0x96   :  { %v2371_v4 = vor.u32 %v2637_v2, %v2370_v0  ;;  %v2415_v0 = vor.u32 %v2646_v59, %v2412_v60  ;;  %v2338_v2 = vld [vmem:[%s4005_s7 + $0x20] sm:$0xf] }
  0x98   :  { %1153 = vmatpush.bf16.msra.mxu0 %v2206_v6  ;;  %v2375_v6 = vor.u32 %v2636_v3, %v2372_v5  ;;  %1530 = vmatpush.bf16.msra.mxu2 %v2371_v4  ;;  %v2629_v3 = vld [vmem:[%s4005_s7 + $0x24] sm:$0xf0]  ;;  %v2628_v5 = vld [vmem:[%s4005_s7 + $0x24] sm:$0xf] }
  0x99   :  { %1166 = vmatpush.bf16.msra.mxu1 %v2270_v7  ;;  %v2434_v7 = vld [vmem:[%s4005_s7 + $0xe0] sm:$0xf]  ;;  %v2339_v4 = vor.u32 %v2629_v3, %v2338_v2 }
  0x9c   :  { %1154 = vmatpush.bf16.msra.mxu0 %v2198_v12 }
  0x9d   :  { %1167 = vmatpush.bf16.msra.mxu1 %v2262_v13  ;;  %v2435_v13 = vor.u32 %v2653_v9, %v2434_v7  ;;  %v2645_v9 = vld [vmem:[%s4005_s7 + $0xa4] sm:$0xf0] }
  0x9f   :  { %1543 = vmatpush.bf16.msra.mxu3 %v2435_v13 }
  0xa0   :  { %1155 = vmatpush.bf16.msra.mxu0 %v2190_v18 }
  0xa1   :  { %1168 = vmatpush.bf16.msra.mxu1 %v2254_v19  ;;  %v2439_v19 = vor.u32 %v2652_v10, %v2436_v14  ;;  %v2644_v10 = vld [vmem:[%s4005_s7 + $0xa4] sm:$0xf]  ;;  %v2330_v14 = vld [vmem:[%s4005_s7 + $0x10] sm:$0xf] }
  0xa2   :  { %v949_v22 = vpop.f32.mrf.mxu0 }
  0xa3   :  { %1156 = vmatmul.bf16.vlgmr.msra.gmra.mxu0 %v3257_v43 }
  0xa4   :  { %1169 = vmatmul.bf16.vlgmr.msra.gmra.mxu1 %v3409_v1  ;;  %1555 = vmatpush.bf16.msrb.mxu0 %v2383_v58  ;;  %v2647_v58 = vld [vmem:[%s4005_s7 + $0xb4] sm:$0xf0] }
  0xa5   :  { %v962_v25 = vpop.f32.mrf.mxu1  ;;  %1568 = vmatpush.bf16.msrb.mxu1 %v2447_v63  ;;  %v2411_v33 = vor.u32 %v2647_v58, %v2410_v31  ;;  %v2313_v58 = vld [vmem:[%s4003_s5 + $0x10] ss:$8 sm:$0x3] }
  0xa6   :  { %v963_v26 = vadd.f32 %v962_v25, %v949_v22  ;;  %v2363_v22 = vor.u32 %v2635_v16, %v2362_v15  ;;  %v2634_v25 = vld [vmem:[%s4005_s7 + $0x54] sm:$0xf]  ;;  %v2627_v15 = vld [vmem:[%s4005_s7 + $0x14] sm:$0xf0] }
  0xa7   :  { %v2626_v16 = vld [vmem:[%s4005_s7 + $0x14] sm:$0xf] }
  0xa8   :  { %1556 = vmatpush.bf16.msrb.mxu0 %v2375_v6  ;;  %1531 = vmatpush.bf16.msra.mxu2 %v2363_v22  ;;  %v2340_v6 = vld [vmem:[%s4005_s7 + $0x28] sm:$0xf0]  ;;  %v2331_v22 = vor.u32 %v2627_v15, %v2330_v14 }
  0xa9   :  { %v988_v29 = vpop.f32.mrf.mxu3  ;;  %1569 = vmatpush.bf16.msrb.mxu1 %v2439_v19  ;;  %v2343_v7 = vor.u32 %v2628_v5, %v2340_v6  ;;  %v1232_v5 = vperm.slane %v2313_v58, 0  ;;  %v1233_v6 = vperm.slane %v2313_v58, 1 }
  0xaa   :  { %v975_v27 = vpop.f32.mrf.mxu2  ;;  %v951_v30 = vpop.f32.mrf.mxu0 }
  0xab   :  { %v976_v28 = vadd.f32 %v975_v27, %v963_v26  ;;  %v2364_v26 = vld [vmem:[%s4005_s7 + $0x58] sm:$0xf0]  ;;  %v2426_v27 = vld [vmem:[%s4005_s7 + $0xd0] sm:$0xf]  ;;  %v2650_v30 = vld [vmem:[%s4005_s7 + $0xd4] sm:$0xf] }
  0xad   :  { %v989_v32 = vadd.f32 %v988_v29, %v976_v28  ;;  %v964_v34 = vpop.f32.mrf.mxu1  ;;  %v2367_v28 = vor.u32 %v2634_v25, %v2364_v26  ;;  %v2651_v29 = vld [vmem:[%s4005_s7 + $0xd4] sm:$0xf0]  ;;  %v2332_v25 = vld [vmem:[%s4005_s7 + $0x18] sm:$0xf0]  ;;  %v2394_v26 = vld [vmem:[%s4005_s7 + $0x90] sm:$0xf] }
  0xae   :  { %v3779_v34 = vld [vmem:[%s4000_s2] sm:$0x3] }
  0xaf   :  { %1557 = vmatpush.bf16.msrb.mxu0 %v2367_v28  ;;  %v2335_v28 = vor.u32 %v2626_v16, %v2332_v25  ;;  %v2318_v25 = vld [vmem:[%s4003_s5 + $0x21] ss:$8 sm:$0x3] }
  0xb1   :  { %v990_v24 = vpop.f32.mrf.mxu3 }
  0xb2   :  { %v977_v35 = vpop.f32.mrf.mxu2  ;;  %v2427_v24 = vor.u32 %v2651_v29, %v2426_v27  ;;  %v2643_v27 = vld [vmem:[%s4005_s7 + $0x94] sm:$0xf0]  ;;  %v2642_v29 = vld [vmem:[%s4005_s7 + $0x94] sm:$0xf] }
  0xb4   :  { %1544 = vmatpush.bf16.msra.mxu3 %v2427_v24  ;;  %v2624_v24 = vld [vmem:[%s4005_s7 + $0x4] sm:$0xf] }
  0xc0   :  { %v1001_v36 = vpop.f32.mrf.mxu0 }
  0xc1   :  { %v1002_v37 = vadd.f32 %v1001_v36, %v989_v32  ;;  %v1014_v39 = vpop.f32.mrf.mxu1  ;;  %v2428_v32 = vld [vmem:[%s4005_s7 + $0xd8] sm:$0xf0] }
  0xc2   :  { %v2431_v36 = vor.u32 %v2650_v30, %v2428_v32  ;;  %v2322_v30 = vld [vmem:[%s4005_s7] sm:$0xf]  ;;  %v2395_v32 = vor.u32 %v2643_v27, %v2394_v26 }
  0xc3   :  { %v1015_v21 = vadd.f32 %v1014_v39, %v1002_v37  ;;  %v2354_v37 = vld [vmem:[%s4005_s7 + $0x40] sm:$0xf]  ;;  %v2633_v39 = vld [vmem:[%s4005_s7 + $0x44] sm:$0xf0] }
  0xc4   :  { %1570 = vmatpush.bf16.msrb.mxu1 %v2431_v36  ;;  %v2324_v36 = vld [vmem:[%s4005_s7 + $0x8] sm:$0xf0] }
  0xc8   :  { %v1027_v40 = vpop.f32.mrf.mxu2  ;;  %v1003_v43 = vpop.f32.mrf.mxu0 }
  0xc9   :  { %v1028_v41 = vadd.f32 %v1027_v40, %v1015_v21  ;;  %v1040_v42 = vpop.f32.mrf.mxu3  ;;  %v1016_v1 = vpop.f32.mrf.mxu1  ;;  %v2355_v21 = vor.u32 %v2633_v39, %v2354_v37  ;;  %v2632_v40 = vld [vmem:[%s4005_s7 + $0x44] sm:$0xf] }
  0xca   :  { %v2649_v1 = vld [vmem:[%s4005_s7 + $0xc4] sm:$0xf0] }
  0xcb   :  { %v3692_v44 = vadd.f32 %v1040_v42, %v1028_v41  ;;  %v2356_v41 = vld [vmem:[%s4005_s7 + $0x48] sm:$0xf0]  ;;  %v2418_v42 = vld [vmem:[%s4005_s7 + $0xc0] sm:$0xf]  ;;  %1532 = vmatpush.bf16.msra.mxu2 %v2355_v21 }
  0xcc   :  { %v2359_v43 = vor.u32 %v2632_v40, %v2356_v41  ;;  %v2386_v21 = vld [vmem:[%s4005_s7 + $0x80] sm:$0xf]  ;;  %v2641_v40 = vld [vmem:[%s4005_s7 + $0x84] sm:$0xf0] }
  0xce   :  { %1558 = vmatpush.bf16.msrb.mxu0 %v2359_v43 }
  0xd0   :  { %v1029_v45 = vpop.f32.mrf.mxu2 }
  0xd1   :  { %v1042_v20 = vpop.f32.mrf.mxu3  ;;  %v1176_v45 = vperm.slane %v3779_v34, 0 }
  0xe0   :  { %v3694_v46 = vpop.f32.mrf.mxu0 }
  0xe1   :  { %v1066_v47 = vpop.f32.mrf.mxu1 }
  0xe8   :  { %v1079_v48 = vpop.f32.mrf.mxu2  ;;  %v1055_v49 = vpop.f32.mrf.mxu0 }
  0xe9   :  { %v1092_v50 = vpop.f32.mrf.mxu3  ;;  %v1068_v51 = vpop.f32.mrf.mxu1  ;;  %v1080_v11 = vadd.f32 %v1079_v48, %v1066_v47  ;;  %v2419_v47 = vor.u32 %v2649_v1, %v2418_v42  ;;  %v2648_v48 = vld [vmem:[%s4005_s7 + $0xc4] sm:$0xf]  ;;  %v2420_v49 = vld [vmem:[%s4005_s7 + $0xc8] sm:$0xf0] }
  0xea   :  { %v2640_v42 = vld [vmem:[%s4005_s7 + $0x84] sm:$0xf]  ;;  %v2388_v1 = vld [vmem:[%s4005_s7 + $0x88] sm:$0xf0] }
  0xeb   :  { %v1093_v35 = vadd.f32 %v1092_v50, %v1080_v11  ;;  %v1054_v50 = vadd.f32 %v3694_v46, %v3692_v44  ;;  %1545 = vmatpush.bf16.msra.mxu3 %v2419_v47  ;;  %v2404_v11 = vld [vmem:[%s4005_s7 + $0xa8] sm:$0xf0]  ;;  %v2327_v47 = vor.u32 %v2624_v24, %v2324_v36 }
  0xec   :  { %v2407_v13 = vor.u32 %v2644_v10, %v2404_v11  ;;  %v2317_v11 = vld [vmem:[%s4003_s5 + $0x20] ss:$8 sm:$0x3] }
  0xed   :  { %v1180_v61 = vmul.f32 %v1176_v45, %v1054_v50  ;;  %v1203_v45 = vpop.permute.xlu0 %1202  ;;  %v1177_v50 = vperm.slane %v3779_v34, 1 }
  0xef   :  { %1546 = vmatpush.bf16.msra.mxu3 %v2411_v33  ;;  %v2314_v33 = vld [vmem:[%s4003_s5 + $0x13] ss:$8 sm:$0x3] }
  0xf0   :  { %v1081_v52 = vpop.f32.mrf.mxu2 }
  0xf1   :  { %v1094_v53 = vpop.f32.mrf.mxu3  ;;  %v2423_v52 = vor.u32 %v2648_v48, %v2420_v49 }
  0xf2   :  { %v2346_v53 = vld [vmem:[%s4005_s7 + $0x30] sm:$0xf] }
  0xf3   :  { %v2347_v46 = vor.u32 %v2631_v55, %v2346_v53  ;;  %1571 = vmatpush.bf16.msrb.mxu1 %v2423_v52  ;;  %v2391_v52 = vor.u32 %v2640_v42, %v2388_v1  ;;  %v2312_v55 = vld [vmem:[%s4003_s5 + $0x7] ss:$8 sm:$0x3] }
  0xf5   :  { %1533 = vmatpush.bf16.msra.mxu2 %v2347_v46  ;;  %v1242_v3 = vpop.permute.xlu0 %1241 }
  0xf7   :  { %1572 = vmatpush.bf16.msrb.mxu1 %v2415_v0 }
  0xf9   :  { %1534 = vmatpush.bf16.msra.mxu2 %v2339_v4  ;;  %v1222_v4 = vperm.slane %v2312_v55, 1 }
  0xfb   :  { %1573 = vmatpush.bf16.msrb.mxu1 %v2407_v13 }
  0xfd   :  { %1535 = vmatpush.bf16.msra.mxu2 %v2331_v22 }
 0x100   :  { %v3696_v54 = vpop.f32.mrf.mxu0 }
 0x101   :  { %v3704_v23 = vpop.f32.mrf.mxu1  ;;  %v1106_v51 = vadd.f32 %v3696_v54, %v1093_v35  ;;  %v2348_v54 = vld [vmem:[%s4005_s7 + $0x38] sm:$0xf0]  ;;  %v2625_v35 = vld [vmem:[%s4005_s7 + $0x4] sm:$0xf0] }
 0x102   :  { %v2351_v38 = vor.u32 %v2630_v56, %v2348_v54  ;;  %v2323_v39 = vor.u32 %v2625_v35, %v2322_v30  ;;  %v1288_v35 = vpop.permute.xlu1 %1287 }
 0x103   :  { %v1119_v63 = vadd.f32 %v3704_v23, %v1106_v51  ;;  %v2402_v23 = vld [vmem:[%s4005_s7 + $0xa0] sm:$0xf]  ;;  %v2387_v51 = vor.u32 %v2641_v40, %v2386_v21  ;;  %v1306_v21 = vperm.slane %v2318_v25, 0 }
 0x104   :  { %1559 = vmatpush.bf16.msrb.mxu0 %v2351_v38  ;;  %1536 = vmatpush.bf16.msra.mxu2 %v2323_v39  ;;  %v1221_v38 = vperm.slane %v2312_v55, 0  ;;  %v1296_v39 = vperm.slane %v2317_v11, 1 }
 0x108   :  { %v3739_v8 = vpop.f32.mrf.mxu2  ;;  %v1107_v12 = vpop.f32.mrf.mxu0  ;;  %1560 = vmatpush.bf16.msrb.mxu0 %v2343_v7 }
 0x109   :  { %v3756_v17 = vpop.f32.mrf.mxu3  ;;  %v1120_v18 = vpop.f32.mrf.mxu1  ;;  %v2403_v12 = vor.u32 %v2645_v9, %v2402_v23  ;;  %v1132_v19 = vadd.f32 %v3739_v8, %v1119_v63  ;;  %v2396_v8 = vld [vmem:[%s4005_s7 + $0x98] sm:$0xf0]  ;;  %v1250_v9 = vperm.slane %v2314_v33, 1 }
 0x10a   :  { %v3873_v18 = vadd.f32 %v1184_v62, %v1180_v61  ;;  %v2399_v37 = vor.u32 %v2642_v29, %v2396_v8  ;;  %v1249_v62 = vperm.slane %v2314_v33, 0  ;;  %v1295_v29 = vperm.slane %v2317_v11, 0  ;;  %v2662_v11 = vld [vmem:[%s4010_s12 + $0x30] sm:$0xff] }
 0x10b   :  { %1547 = vmatpush.bf16.msra.mxu3 %v2403_v12  ;;  %v1145_v43 = vadd.f32 %v3756_v17, %v1132_v19  ;;  %v2311_v17 = vld [vmem:[%s4003_s5 + $0x6] ss:$8 sm:$0x3]  ;;  %v2316_v19 = vld [vmem:[%s4003_s5 + $0x15] ss:$8 sm:$0x3] }
 0x10c   :  { %v1192_v41 = vrot.slane %v3873_v18, 7  ;;  %1561 = vmatpush.bf16.msrb.mxu0 %v2335_v28  ;;  %1574 = vmatpush.bf16.msrb.mxu1 %v2399_v37  ;;  %v1210_v34 = vperm.slane %v2311_v17, 0  ;;  %v1211_v60 = vperm.slane %v2311_v17, 1  ;;  %v1279_v23 = vrot.slane %v3873_v18, 1 }
 0x10d   :  { %v1253_v14 = vmul.f32 0.0, %v1249_v62  ;;  %v1244_v16 = vmul.f32 %v1242_v3, %v3873_v18  ;;  %v1237_v28 = vmul.f32 0.0, %v1233_v6  ;;  %v1272_v30 = vperm.slane %v2316_v19, 1 }
 0x10e   :  { %v1197_v53 = vsel %vm1196_vm0, 0.0, %v1192_v41  ;;  %v1214_v61 = vmul.f32 0.0, %v1210_v34  ;;  %v1284_v8 = vsel %vm1283_vm1, %v1279_v23, 0.0  ;;  %v1271_v37 = vperm.slane %v2316_v19, 0 }
 0x10f   :  { %1548 = vmatpush.bf16.msra.mxu3 %v2395_v32  ;;  %v1205_v54 = vmul.f32 %v1203_v45, %v1197_v53  ;;  %v1254_v40 = vmul.f32 %v1250_v9, %v1244_v16  ;;  %v1299_v1 = vmul.f32 0.0, %v1295_v29 }
 0x110   :  { %v1133_v20 = vpop.f32.mrf.mxu2  ;;  %1562 = vmatpush.bf16.msrb.mxu0 %v2327_v47  ;;  %1575 = vmatpush.bf16.msrb.mxu1 %v2391_v52  ;;  %v1307_v52 = vperm.slane %v2318_v25, 1 }
 0x111   :  { %v1146_v44 = vpop.f32.mrf.mxu3  ;;  %v1225_v2 = vmul.f32 %v1221_v38, %v1205_v54  ;;  %v1215_v13 = vmul.f32 %v1211_v60, %v1205_v54 }
 0x112   :  { %v1185_v44 = vperm.slane %v3821_v57, 1  ;;  %v2315_v57 = vld [vmem:[%s4003_s5 + $0x14] ss:$8 sm:$0x3] }
 0x113   :  { %1549 = vmatpush.bf16.msra.mxu3 %v2387_v51  ;;  %v1260_v10 = vperm.slane %v2315_v57, 0  ;;  %v1261_v15 = vperm.slane %v2315_v57, 1  ;;  %v1227_v22 = vadd.f32 %v1225_v2, %v1214_v61 }
 0x115   :  { %v1264_v41 = vmul.f32 %v1260_v10, %v1244_v16  ;;  %v2663_v10 = vld [vmem:[%s4010_s12 + $0x38] sm:$0xff]  ;;  %v1581_v16 = vld [vmem:[%s4006_s8] sm:$0x3] }
 0x116   :  { %1705 = vmatpush.bf16.msrb.mxu2 %v2663_v10  ;;  %v1584_v25 = vperm.slane %v1581_v16, 1 }
 0x11a   :  { %1706 = vmatpush.bf16.msrb.mxu2 %v2662_v11 }
 0x120   :  { %v1157_v20 = vpop.f32.mrf.mxu0 }
 0x121   :  { %v1158_v48 = vadd.f32 %v1157_v20, %v1145_v43  ;;  %v1170_v49 = vpop.f32.mrf.mxu1  ;;  %v1276_v20 = vmul.f32 0.0, %v1272_v30  ;;  %v2656_v30 = vld [vmem:[%s4010_s12] sm:$0xff] }
 0x123   :  { %v1171_v56 = vadd.f32 %v1170_v49, %v1158_v48  ;;  %v2319_v48 = vld [vmem:[%s4003_s5 + $0x22] ss:$8 sm:$0x3] }
 0x124   :  { %v1318_v53 = vperm.slane %v2319_v48, 1  ;;  %v1317_v34 = vperm.slane %v2319_v48, 0 }
 0x125   :  { %v1181_v46 = vmul.f32 %v1177_v50, %v1171_v56 }
 0x126   :  { %v1322_v57 = vmul.f32 0.0, %v1318_v53 }
 0x127   :  { %v1189_v31 = vadd.f32 %v1185_v44, %v1181_v46  ;;  %v1325_v46 = vld [vmem:[%s4004_s6] sm:$0x3]  ;;  %s1726_s6 = sshll.u32 %s4012_s14, 4  ;;  %s1727_s6 = int_to_ptr.hbm [resolvable:$true] %s1726_s6 }
 0x128   :  { %v1159_v59 = vpop.f32.mrf.mxu0  ;;  %v1327_v33 = vperm.slane %v1325_v46, 0  ;;  %v1328_v2 = vperm.slane %v1325_v46, 1 }
 0x129   :  { %v1193_v63 = vrot.slane %v1189_v31, 7  ;;  %v1172_v0 = vpop.f32.mrf.mxu1  ;;  %v1280_v32 = vrot.slane %v1189_v31, 1  ;;  %v1245_v36 = vmul.f32 %v1242_v3, %v1189_v31 }
 0x12b   :  { %v1198_v7 = vsel %vm1196_vm0, 0.0, %v1193_v63  ;;  %v1285_v47 = vsel %vm1283_vm1, %v1280_v32, 0.0  ;;  %v1265_v50 = vmul.f32 %v1261_v15, %v1245_v36  ;;  %v1275_v17 = vmul.f32 %v1271_v37, %v1245_v36  ;;  %v2658_v15 = vld [vmem:[%s4010_s12 + $0x10] sm:$0xff] }
 0x12c   :  { %v1206_v12 = vmul.f32 %v1203_v45, %v1198_v7  ;;  %v1290_v45 = vmul.f32 %v1288_v35, %v1284_v8  ;;  %v1291_v44 = vmul.f32 %v1288_v35, %v1285_v47 }
 0x12e   :  { %v1226_v26 = vmul.f32 %v1222_v4, %v1206_v12  ;;  %v1236_v27 = vmul.f32 %v1232_v5, %v1206_v12  ;;  %v1300_v54 = vmul.f32 %v1296_v39, %v1290_v45  ;;  %v1310_v38 = vmul.f32 %v1306_v21, %v1290_v45  ;;  %v2661_v12 = vld [vmem:[%s4010_s12 + $0x28] sm:$0xff] }
 0x12f   :  { %v1311_v59 = vmul.f32 %v1307_v52, %v1291_v44  ;;  %v1321_v61 = vmul.f32 %v1317_v34, %v1291_v44  ;;  %1707 = vmatpush.bf16.msrb.mxu2 %v2661_v12 }
 0x130   :  { %v1228_v24 = vadd.f32 %v1226_v26, %v1215_v13  ;;  %v1238_v18 = vadd.f32 %v1236_v27, %v1227_v22  ;;  %v2660_v13 = vld [vmem:[%s4010_s12 + $0x20] sm:$0xff]  ;;  %v2657_v26 = vld [vmem:[%s4010_s12 + $0x8] sm:$0xff] }
 0x131   :  { %v1589_v22 = vld [vmem:[%s4007_s9] sm:$0x3] }
 0x132   :  { %v1239_v43 = vadd.f32 %v1237_v28, %v1228_v24  ;;  %v1255_v42 = vadd.f32 %v1253_v14, %v1238_v18  ;;  %v2659_v14 = vld [vmem:[%s4010_s12 + $0x18] sm:$0xff]  ;;  %v1592_v29 = vperm.slane %v1589_v22, 1  ;;  %v1583_v24 = vperm.slane %v1581_v16, 0  ;;  %v1599_v18 = vld [vmem:[%s4008_s10] sm:$0x3]  ;;  %s2702_s12 = smov [#allocation2]  }
 0x133   :  { %1708 = vmatpush.bf16.msrb.mxu2 %v2660_v13  ;;  %v1591_v21 = vperm.slane %v1589_v22, 0  ;;  %s1724_s25 = sshll.u32 %s2702_s12, 4  ;;  %s1725_s25 = int_to_ptr.vmem [resolvable:$true] %s1724_s25 }
 0x134   :  { %v1256_v49 = vadd.f32 %v1254_v40, %v1239_v43  ;;  %v1266_v51 = vadd.f32 %v1264_v41, %v1255_v42  ;;  %v1602_v43 = vperm.slane %v1599_v18, 1 }
 0x136   :  { %v1267_v55 = vadd.f32 %v1265_v50, %v1256_v49  ;;  %v1277_v56 = vadd.f32 %v1275_v17, %v1266_v51 }
 0x137   :  { %1709 = vmatpush.bf16.msrb.mxu2 %v2659_v14 }
 0x138   :  { %v1278_v31 = vadd.f32 %v1276_v20, %v1267_v55  ;;  %v1301_v58 = vadd.f32 %v1299_v1, %v1277_v56  ;;  %v1607_v1 = vld [vmem:[%s4009_s11] sm:$0x3]  ;;  %v1601_v20 = vperm.slane %v1599_v18, 0 }
 0x139   :  { %v1610_v49 = vperm.slane %v1607_v1, 1  ;;  %v1609_v51 = vperm.slane %v1607_v1, 0 }
 0x13a   :  { %v1312_v60 = vadd.f32 %v1310_v38, %v1301_v58  ;;  %v1302_v62 = vadd.f32 %v1300_v54, %v1278_v31 }
 0x13b   :  { %1710 = vmatpush.bf16.msrb.mxu2 %v2658_v15 }
 0x13c   :  { %v1323_v63 = vadd.f32 %v1321_v61, %v1312_v60  ;;  %v1313_v0 = vadd.f32 %v1311_v59, %v1302_v62 }
 0x13e   :  { %v1331_v3 = vadd.f32 %v1327_v33, %v1323_v63  ;;  %v1324_v4 = vadd.f32 %v1322_v57, %v1313_v0 }
 0x13f   :  { %1711 = vmatpush.bf16.msrb.mxu2 %v2657_v26 }
 0x140   :  { %v1333_v5 = vmax.f32 %v1331_v3, 0.0  ;;  %v1332_v6 = vadd.f32 %v1328_v2, %v1324_v4 }
 0x142   :  { %v1335_v23 = vpack.c.bf16 %v1333_v5, %v1333_v5  ;;  %v1334_v7 = vmax.f32 %v1332_v6, 0.0  ;;  %v2672_v5 = vld [vmem:[%s4011_s13] ss:$0 sm:$0xff] }
 0x143   :  { %1712 = vmatpush.bf16.msrb.mxu2 %v2656_v30 }
 0x144   :  { %1537 = vmatmul.bf16.vlgmr.msra.gmra.mxu2 %v1335_v23  ;;  %1563 = vmatmul.bf16.vlgmr.msrb.gmra.mxu0 %v1335_v23  ;;  %v1336_v9 = vpack.c.bf16 %v1334_v7, %v1334_v7 }
 0x146   :  { %1550 = vmatmul.bf16.vlgmr.msra.gmra.mxu3 %v1336_v9  ;;  %1576 = vmatmul.bf16.vlgmr.msrb.gmra.mxu1 %v1336_v9 }
 0x1c1   :  { %v1564_v19 = vpop.f32.mrf.mxu0 }
 0x1c3   :  { %v1577_v27 = vpop.f32.mrf.mxu1 }
 0x1c4   :  { %v1578_v28 = vadd.f32 %v1577_v27, %v1564_v19 }
 0x1c6   :  { %v1588_v8 = vmul.f32 %v1584_v25, %v1578_v28 }
 0x1c7   :  { %v1538_v32 = vpop.f32.mrf.mxu2 }
 0x1c8   :  { %v1596_v35 = vadd.f32 %v1592_v29, %v1588_v8 }
 0x1c9   :  { %v1551_v36 = vpop.f32.mrf.mxu3  ;;  %v1566_v37 = vpop.f32.mrf.mxu0 }
 0x1ca   :  { %v1552_v39 = vadd.f32 %v1551_v36, %v1538_v32  ;;  %v1598_v41 = vmax.f32 %v1596_v35, 0.0 }
 0x1cb   :  { %v1579_v40 = vpop.f32.mrf.mxu1 }
 0x1cc   :  { %v1587_v42 = vmul.f32 %v1583_v24, %v1552_v39  ;;  %v1606_v48 = vmul.f32 %v1602_v43, %v1598_v41 }
 0x1ce   :  { %v1595_v45 = vadd.f32 %v1591_v21, %v1587_v42  ;;  %v1614_v53 = vadd.f32 %v1610_v49, %v1606_v48 }
 0x1cf   :  { %v1540_v47 = vpop.f32.mrf.mxu2 }
 0x1d0   :  { %v1597_v50 = vmax.f32 %v1595_v45, 0.0 }
 0x1d1   :  { %v1553_v17 = vpop.f32.mrf.mxu3 }
 0x1d2   :  { %v1605_v52 = vmul.f32 %v1601_v20, %v1597_v50 }
 0x1d4   :  { %v1613_v55 = vadd.f32 %v1609_v51, %v1605_v52 }
 0x1d6   :  { %v1615_v56 = vadd.f32 %v1614_v53, %v1613_v55 }
 0x1d8   :  { %v1617_v44 = vsel %vm1616_vm2, %v1615_v56, 0.0  ;;  %v1625_v34 = vrot.slane %v1615_v56, 2 }
 0x1d9   :  { %v1618_v46 = vrot.slane %v1617_v44, 4 }
 0x1da   :  { %v1627_v54 = vsel %vm1616_vm2, %v1625_v34, 0.0 }
 0x1db   :  { %v1619_v38 = vadd.f32 %v1618_v46, %v1617_v44  ;;  %v1628_v31 = vrot.slane %v1627_v54, 4 }
 0x1dd   :  { %v1620_v58 = vrot.slane %v1619_v38, 2  ;;  %v1629_v33 = vadd.f32 %v1628_v31, %v1627_v54 }
 0x1df   :  { %v1621_v57 = vadd.f32 %v1620_v58, %v1619_v38  ;;  %v1630_v59 = vrot.slane %v1629_v33, 2 }
 0x1e1   :  { %v1622_v60 = vrot.slane %v1621_v57, 1  ;;  %v1631_v61 = vadd.f32 %v1630_v59, %v1629_v33 }
 0x1e3   :  { %v1632_v62 = vrot.slane %v1631_v61, 1  ;;  %v1623_v63 = vadd.f32 %v1622_v60, %v1621_v57 }
 0x1e5   :  { %v1633_v0 = vadd.f32 %v1632_v62, %v1631_v61 }
 0x1e7   :  { %v1634_v2 = vsel %vm1196_vm0, %v1623_v63, %v1633_v0 }
 0x1e8   :  { %v1635_v3 = vmul.f32 0.25, %v1634_v2 }
 0x1ea   :  { %v1636_v4 = vpack.c.bf16 %v1635_v3, %v1635_v3 }
 0x1ec   :  { %1713 = vmatmul.bf16.vlgmr.msrb.gmra.mxu2 %v1636_v4 }
 0x26f   :  { %v1714_v6 = vpop.f32.mrf.mxu2 }
 0x270   :  { %v1715_v23 = vadd.f32 %v2672_v5, %v1714_v6 }
 0x272   :  { %1718 = vst [vmem:[#allocation2] sm:$0x3] %v1715_v23 }
 0x273   :  { %1729 = dma.vmem_to_hbm [thread:$0]  %s1725_s25, 32, %s1727_s6, [#allocation3]  }
 0x277   :  { %v1716_v7 = vpop.f32.mrf.mxu2 }
 0x278   :  { %2697 = dma.done.wait [#allocation3], 32  }
 0x279   :  { %2698 = vsyncadd [#allocation3], 4294967264 }
 0x27a   :  { %1734 = vsyncpa [#allocation3], 1 }

</bundles_post_ra>
